<compile_context>
chip_gen: v6e
topology: v6e:2x2x1
jax: 0.10.0
libtpu: 0.0.40
codegen_flags: <defaults>
</compile_context>

<pallas_src>
import functools

import jax
import jax.numpy as jnp
from jax.experimental import pallas as pl
from jax.experimental.pallas import tpu as pltpu

LANE = 128


def _round_up(x, m):
    return ((x + m - 1) // m) * m


def _double_conv_kernel(patches_ref, w1_ref, b1_ref, w2_ref, b2_ref,
                        out_ref, mid_ref, acc_ref, *, Wp, W, r0, compute_dtype):
    # patches_ref: (1, L, Kp)   im2col rows for conv1 (bf16/f32), L = H*Wp
    # w1_ref:      (Kp, Cp)     conv1 weights, (dy*3+dx)*Cin+c -> lane-padded
    # b1_ref:      (1, Cp)      f32
    # w2_ref:      (9, Cp, Cp)  conv2 per-tap weights
    # b2_ref:      (1, Cp)      f32
    # out_ref:     (1, L, Cp)   lane-dense output rows (wrapper slices interior)
    # mid_ref:     (P, Cp) f32  flat zero-padded conv1 activation
    # acc_ref:     (L, Cp) f32  conv2 accumulator
    L = out_ref.shape[1]
    P = mid_ref.shape[0]
    Cp = mid_ref.shape[1]

    # ---- conv1: single im2col matmul on the MXU (f32 accumulation) ----
    act1 = jnp.dot(patches_ref[0], w1_ref[...],
                   preferred_element_type=jnp.float32)
    act1 = jnp.maximum(act1 + b1_ref[...], 0.0)

    # Mask rows that are not interior image columns (ix >= W) so conv2 sees a
    # correct zero halo. Row i of the computed range maps to padded column i % Wp.
    ix = jax.lax.broadcasted_iota(jnp.int32, (L, 1), 0) % Wp
    act1 = jnp.where(ix < W, act1, 0.0)

    # Zero only the top/bottom halo strips of the scratch (cheap, done every step so the
    # kernel is correct under megacore "parallel" scheduling), then store the activation.
    # All three stores are 8-sublane aligned (r0, L, P are multiples of 8).
    mid_ref[pl.ds(0, r0), :] = jnp.zeros((r0, Cp), mid_ref.dtype)
    mid_ref[pl.ds(r0 + L, P - r0 - L), :] = jnp.zeros((P - r0 - L, Cp), mid_ref.dtype)
    mid_ref[pl.ds(r0, L), :] = act1

    # ---- conv2: 9 contiguous row-slice taps, each a (L,128)x(128,128) MXU matmul ----
    for k in range(9):
        dy, dx = k // 3, k % 3
        off = r0 + (dy - 1) * Wp + (dx - 1)          # static start, contiguous L rows
        tap = mid_ref[pl.ds(off, L), :].astype(compute_dtype)
        contrib = jnp.dot(tap, w2_ref[k], preferred_element_type=jnp.float32)
        if k == 0:
            acc_ref[...] = contrib
        else:
            acc_ref[...] += contrib

    out_ref[0] = jnp.maximum(acc_ref[...] + b2_ref[...], 0.0).astype(out_ref.dtype)


@functools.partial(jax.jit, static_argnames=("compute_dtype",))
def double_conv_nchw(x_nchw, w1, b1, w2, b2, *, compute_dtype=jnp.bfloat16):
    """DoubleConv forward. x_nchw: (N, Cin, H, W). w1: (3,3,Cin,Cout), b1: (Cout,), ..."""
    N, Cin, H, W = x_nchw.shape
    KH, KW, _, Cout = w1.shape
    assert (KH, KW) == (3, 3)

    K = 9 * Cin
    Kp = _round_up(K, LANE)          # lane-padded im2col depth
    Cp = _round_up(Cout, LANE)       # lane-padded output channels

    # Flat padded-grid geometry (row-major over a zero-padded image placed at
    # y in [1, H], x in [x0, x0+W)). x0=8 makes the interior start 8-sublane aligned.
    x0 = 8
    Wp = _round_up(x0 + W + 1, 8)    # padded width (>= 1-col halo on each side)
    r0 = Wp + x0                     # first computed flat row (multiple of 8)
    L = H * Wp                       # rows computed per image (multiple of 8)
    P = _round_up(r0 + Wp + 1 + L, 8)  # scratch rows incl. bottom halo / tap overshoot

    # ---- im2col for conv1 (layout plumbing in plain XLA) ----
    x_nhwc = jnp.transpose(x_nchw, (0, 2, 3, 1))                 # (N,H,W,Cin)
    xp = jnp.pad(x_nhwc, ((0, 0), (1, 1), (1, 1), (0, 0)))       # (N,H+2,W+2,Cin)
    taps = [xp[:, dy:dy + H, dx:dx + W, :] for dy in range(3) for dx in range(3)]
    patches = jnp.concatenate(taps, axis=-1)                     # (N,H,W,9*Cin)
    patches_p = jnp.zeros((N, H, Wp, Kp), compute_dtype)
    patches_p = patches_p.at[:, :, :W, :K].set(patches.astype(compute_dtype))
    patches_p = patches_p.reshape(N, L, Kp)                      # sublane/lane aligned

    # ---- lane-padded weights / biases ----
    w1_p = jnp.zeros((Kp, Cp), compute_dtype).at[:K, :Cout].set(
        w1.reshape(K, Cout).astype(compute_dtype))
    w2_p = jnp.zeros((9, Cp, Cp), compute_dtype).at[:, :Cout, :Cout].set(
        w2.reshape(9, Cout, Cout).astype(compute_dtype))
    b1_p = jnp.zeros((1, Cp), jnp.float32).at[0, :Cout].set(b1.astype(jnp.float32))
    b2_p = jnp.zeros((1, Cp), jnp.float32).at[0, :Cout].set(b2.astype(jnp.float32))

    kernel = functools.partial(_double_conv_kernel, Wp=Wp, W=W, r0=r0,
                               compute_dtype=compute_dtype)

    out_flat = pl.pallas_call(
        kernel,
        out_shape=jax.ShapeDtypeStruct((N, L, Cp), x_nchw.dtype),
        grid_spec=pltpu.PrefetchScalarGridSpec(
            num_scalar_prefetch=0,
            grid=(N,),
            in_specs=[
                pl.BlockSpec((1, L, Kp), lambda n: (n, 0, 0)),
                pl.BlockSpec((Kp, Cp), lambda n: (0, 0)),
                pl.BlockSpec((1, Cp), lambda n: (0, 0)),
                pl.BlockSpec((9, Cp, Cp), lambda n: (0, 0, 0)),
                pl.BlockSpec((1, Cp), lambda n: (0, 0)),
            ],
            out_specs=pl.BlockSpec((1, L, Cp), lambda n: (n, 0, 0)),
            scratch_shapes=[
                pltpu.VMEM((P, Cp), jnp.float32),   # mid: zero-padded conv1 activation
                pltpu.VMEM((L, Cp), jnp.float32),   # acc: conv2 accumulator
            ],
        ),
        compiler_params=pltpu.CompilerParams(
            dimension_semantics=("parallel",)),
    )(patches_p, w1_p, b1_p, w2_p, b2_p)

    # Extract interior rows / real channels and go back to NCHW.
    out_nhwc = out_flat.reshape(N, H, Wp, Cp)[:, :, :W, :Cout]
    return jnp.transpose(out_nhwc, (0, 3, 1, 2))


def _reference_double_conv(x_nchw, w1, b1, w2, b2):
    """Pure-JAX reference using lax.conv_general_dilated (NCHW / OIHW, like PyTorch)."""
    w1_oihw = jnp.transpose(w1, (3, 2, 0, 1))
    w2_oihw = jnp.transpose(w2, (3, 2, 0, 1))
    dn = ("NCHW", "OIHW", "NCHW")
    y = jax.lax.conv_general_dilated(x_nchw, w1_oihw, (1, 1), [(1, 1), (1, 1)],
                                     dimension_numbers=dn)
    y = jnp.maximum(y + b1[None, :, None, None], 0.0)
    y = jax.lax.conv_general_dilated(y, w2_oihw, (1, 1), [(1, 1), (1, 1)],
                                     dimension_numbers=dn)
    y = jnp.maximum(y + b2[None, :, None, None], 0.0)
    return y


if __name__ == "__main__":
    # Shapes consistent with DoubleConv(in_ch=4, out_ch=8) on a 2x4x16x16 input.
    N, Cin, Cout, H, W = 2, 4, 8, 16, 16

    key = jax.random.PRNGKey(0)
    kx, kw1, kb1, kw2, kb2 = jax.random.split(key, 5)

    x = jax.random.normal(kx, (N, Cin, H, W), dtype=jnp.float32)
    w1 = jax.random.normal(kw1, (3, 3, Cin, Cout), dtype=jnp.float32) * 0.1
    b1 = jax.random.normal(kb1, (Cout,), dtype=jnp.float32) * 0.1
    w2 = jax.random.normal(kw2, (3, 3, Cout, Cout), dtype=jnp.float32) * 0.1
    b2 = jax.random.normal(kb2, (Cout,), dtype=jnp.float32) * 0.1

    ref = _reference_double_conv(x, w1, b1, w2, b2)

    # Exact-structure check with f32 MXU operands.
    out_f32 = double_conv_nchw(x, w1, b1, w2, b2, compute_dtype=jnp.float32)
    out_f32 = jax.block_until_ready(out_f32)
    assert out_f32.shape == (N, Cout, H, W), out_f32.shape
    assert jnp.allclose(out_f32, ref, atol=1e-4, rtol=1e-4), "f32 kernel mismatch vs reference"

    # Fast path: bf16 MXU operands, f32 accumulation (looser tolerance from bf16 rounding).
    out_bf16 = double_conv_nchw(x, w1, b1, w2, b2)
    out_bf16 = jax.block_until_ready(out_bf16)
    assert out_bf16.shape == (N, Cout, H, W), out_bf16.shape
    assert jnp.allclose(out_bf16, ref, atol=5e-2, rtol=5e-2), "bf16 kernel mismatch vs reference"

    print("KERNEL_OK")
</pallas_src>

<mosaic_0001>
module attributes {stable_mosaic.version = 11 : i64} {
  func.func @_double_conv_kernel(%arg0: i32, %arg1: memref<1x512x128xf32, #tpu.memory_space<vmem>>, %arg2: memref<128x128xf32, #tpu.memory_space<vmem>>, %arg3: memref<1x128xf32, #tpu.memory_space<vmem>>, %arg4: memref<9x128x128xf32, #tpu.memory_space<vmem>>, %arg5: memref<1x128xf32, #tpu.memory_space<vmem>>, %arg6: memref<1x512x128xf32, #tpu.memory_space<vmem>>, %arg7: memref<592x128xf32, #tpu.memory_space<vmem>>, %arg8: memref<512x128xf32, #tpu.memory_space<vmem>>) attributes {dimension_semantics = [#tpu.dimension_semantics<parallel>], iteration_bounds = array<i64: 2>, scalar_prefetch = 0 : i64, scratch_operands = 2 : i64, tpu.core_type = #tpu.core_type<tc>, window_params = [{transform_indices = @transform_0, window_bounds = array<i64: 1, 512, 128>}, {pipeline_mode = #tpu.pipeline_mode<synchronous>, transform_indices = @transform_1, window_bounds = array<i64: 128, 128>}, {pipeline_mode = #tpu.pipeline_mode<synchronous>, transform_indices = @transform_2, window_bounds = array<i64: 1, 128>}, {pipeline_mode = #tpu.pipeline_mode<synchronous>, transform_indices = @transform_3, window_bounds = array<i64: 9, 128, 128>}, {pipeline_mode = #tpu.pipeline_mode<synchronous>, transform_indices = @transform_4, window_bounds = array<i64: 1, 128>}, {transform_indices = @transform_5, window_bounds = array<i64: 1, 512, 128>}]} {
    %c0 = arith.constant 0 : index
    %c0_0 = arith.constant 0 : index
    %c0_1 = arith.constant 0 : index
    %0 = vector.load %arg1[%c0, %c0_0, %c0_1] : memref<1x512x128xf32, #tpu.memory_space<vmem>>, vector<1x512x128xf32>
    %1 = vector.shape_cast %0 : vector<1x512x128xf32> to vector<512x128xf32>
    %c0_2 = arith.constant 0 : index
    %c0_3 = arith.constant 0 : index
    %2 = vector.load %arg2[%c0_2, %c0_3] : memref<128x128xf32, #tpu.memory_space<vmem>>, vector<128x128xf32>
    %cst = arith.constant dense<0.000000e+00> : vector<512x128xf32>
    %3 = tpu.matmul %1, %2, %cst {dimension_numbers = #tpu.dot_dimension_numbers<[1], [0], [0], [1], [0, 0, 1, 1], [], []>} : vector<512x128xf32>, vector<128x128xf32>, vector<512x128xf32> -> vector<512x128xf32>
    %c0_4 = arith.constant 0 : index
    %c0_5 = arith.constant 0 : index
    %4 = vector.load %arg3[%c0_4, %c0_5] : memref<1x128xf32, #tpu.memory_space<vmem>>, vector<1x128xf32>
    %5 = vector.broadcast %4 : vector<1x128xf32> to vector<512x128xf32>
    %6 = arith.addf %3, %5 : vector<512x128xf32>
    %cst_6 = arith.constant 0.000000e+00 : f32
    %7 = vector.broadcast %cst_6 : f32 to vector<512x128xf32>
    %8 = arith.maximumf %6, %7 : vector<512x128xf32>
    %9 = tpu.iota {dimensions = array<i32: 0>} : vector<512x1xi32>
    %c32_i32 = arith.constant 32 : i32
    %c0_i32 = arith.constant 0 : i32
    %10 = arith.cmpi eq, %c32_i32, %c0_i32 : i32
    %c1_i32 = arith.constant 1 : i32
    %11 = arith.select %10, %c1_i32, %c32_i32 : i32
    %12 = vector.broadcast %11 : i32 to vector<512x1xi32>
    %13 = arith.remsi %9, %12 : vector<512x1xi32>
    %c0_i32_7 = arith.constant 0 : i32
    %14 = vector.broadcast %c0_i32_7 : i32 to vector<512x1xi32>
    %15 = arith.cmpi ne, %13, %14 : vector<512x1xi32>
    %c0_i32_8 = arith.constant 0 : i32
    %16 = vector.broadcast %c0_i32_8 : i32 to vector<512x1xi32>
    %17 = arith.cmpi slt, %13, %16 : vector<512x1xi32>
    %c0_i32_9 = arith.constant 0 : i32
    %18 = arith.cmpi slt, %11, %c0_i32_9 : i32
    %19 = vector.broadcast %18 : i1 to vector<512x1xi1>
    %20 = vector.broadcast %19 : vector<512x1xi1> to vector<512x1xi1>
    %21 = arith.xori %17, %20 : vector<512x1xi1>
    %22 = arith.andi %21, %15 : vector<512x1xi1>
    %23 = vector.broadcast %11 : i32 to vector<512x1xi32>
    %24 = arith.addi %13, %23 : vector<512x1xi32>
    %25 = arith.select %22, %24, %13 : vector<512x1xi1>, vector<512x1xi32>
    %c16_i32 = arith.constant 16 : i32
    %26 = vector.broadcast %c16_i32 : i32 to vector<512x1xi32>
    %27 = arith.cmpi slt, %25, %26 : vector<512x1xi32>
    %cst_10 = arith.constant 0.000000e+00 : f32
    %28 = vector.shape_cast %27 : vector<512x1xi1> to vector<512x1xi1>
    %29 = vector.broadcast %28 : vector<512x1xi1> to vector<512x128xi1>
    %30 = vector.broadcast %cst_10 : f32 to vector<512x128xf32>
    %31 = arith.select %29, %8, %30 : vector<512x128xi1>, vector<512x128xf32>
    %cst_11 = arith.constant 0.000000e+00 : f32
    %32 = vector.broadcast %cst_11 : f32 to vector<40x128xf32>
    %c0_12 = arith.constant 0 : index
    %c0_13 = arith.constant 0 : index
    %33 = vector.load %arg7[%c0_12, %c0_13] : memref<592x128xf32, #tpu.memory_space<vmem>>, vector<40x128xf32>
    tpu.vector_store %arg7[%c0_12, %c0_13], %32 {strides = array<i32>} : memref<592x128xf32, #tpu.memory_space<vmem>>, vector<40x128xf32>,
    %cst_14 = arith.constant 0.000000e+00 : f32
    %34 = vector.broadcast %cst_14 : f32 to vector<40x128xf32>
    %c552 = arith.constant 552 : index
    %c0_15 = arith.constant 0 : index
    %35 = vector.load %arg7[%c552, %c0_15] : memref<592x128xf32, #tpu.memory_space<vmem>>, vector<40x128xf32>
    tpu.vector_store %arg7[%c552, %c0_15], %34 {strides = array<i32>} : memref<592x128xf32, #tpu.memory_space<vmem>>, vector<40x128xf32>,
    %c40 = arith.constant 40 : index
    %c0_16 = arith.constant 0 : index
    %36 = vector.load %arg7[%c40, %c0_16] : memref<592x128xf32, #tpu.memory_space<vmem>>, vector<512x128xf32>
    tpu.vector_store %arg7[%c40, %c0_16], %31 {strides = array<i32>} : memref<592x128xf32, #tpu.memory_space<vmem>>, vector<512x128xf32>,
    %c7 = arith.constant 7 : index
    %c0_17 = arith.constant 0 : index
    %37 = vector.load %arg7[%c7, %c0_17] : memref<592x128xf32, #tpu.memory_space<vmem>>, vector<512x128xf32>
    %c0_18 = arith.constant 0 : index
    %c0_19 = arith.constant 0 : index
    %c0_20 = arith.constant 0 : index
    %38 = vector.load %arg4[%c0_18, %c0_19, %c0_20] : memref<9x128x128xf32, #tpu.memory_space<vmem>>, vector<1x128x128xf32>
    %39 = vector.shape_cast %38 : vector<1x128x128xf32> to vector<128x128xf32>
    %cst_21 = arith.constant dense<0.000000e+00> : vector<512x128xf32>
    %40 = tpu.matmul %37, %39, %cst_21 {dimension_numbers = #tpu.dot_dimension_numbers<[1], [0], [0], [1], [0, 0, 1, 1], [], []>} : vector<512x128xf32>, vector<128x128xf32>, vector<512x128xf32> -> vector<512x128xf32>
    %c0_22 = arith.constant 0 : index
    %c0_23 = arith.constant 0 : index
    %41 = vector.load %arg8[%c0_22, %c0_23] : memref<512x128xf32, #tpu.memory_space<vmem>>, vector<512x128xf32>
    tpu.vector_store %arg8[%c0_22, %c0_23], %40 {strides = array<i32>} : memref<512x128xf32, #tpu.memory_space<vmem>>, vector<512x128xf32>,
    %c8 = arith.constant 8 : index
    %c0_24 = arith.constant 0 : index
    %42 = vector.load %arg7[%c8, %c0_24] : memref<592x128xf32, #tpu.memory_space<vmem>>, vector<512x128xf32>
    %c1 = arith.constant 1 : index
    %c0_25 = arith.constant 0 : index
    %c0_26 = arith.constant 0 : index
    %43 = vector.load %arg4[%c1, %c0_25, %c0_26] : memref<9x128x128xf32, #tpu.memory_space<vmem>>, vector<1x128x128xf32>
    %44 = vector.shape_cast %43 : vector<1x128x128xf32> to vector<128x128xf32>
    %cst_27 = arith.constant dense<0.000000e+00> : vector<512x128xf32>
    %45 = tpu.matmul %42, %44, %cst_27 {dimension_numbers = #tpu.dot_dimension_numbers<[1], [0], [0], [1], [0, 0, 1, 1], [], []>} : vector<512x128xf32>, vector<128x128xf32>, vector<512x128xf32> -> vector<512x128xf32>
    %c0_28 = arith.constant 0 : index
    %c0_29 = arith.constant 0 : index
    %46 = vector.load %arg8[%c0_28, %c0_29] : memref<512x128xf32, #tpu.memory_space<vmem>>, vector<512x128xf32>
    %47 = arith.addf %46, %45 : vector<512x128xf32>
    %c0_30 = arith.constant 0 : index
    %c0_31 = arith.constant 0 : index
    %48 = vector.load %arg8[%c0_30, %c0_31] : memref<512x128xf32, #tpu.memory_space<vmem>>, vector<512x128xf32>
    tpu.vector_store %arg8[%c0_30, %c0_31], %47 {strides = array<i32>} : memref<512x128xf32, #tpu.memory_space<vmem>>, vector<512x128xf32>,
    %c9 = arith.constant 9 : index
    %c0_32 = arith.constant 0 : index
    %49 = vector.load %arg7[%c9, %c0_32] : memref<592x128xf32, #tpu.memory_space<vmem>>, vector<512x128xf32>
    %c2 = arith.constant 2 : index
    %c0_33 = arith.constant 0 : index
    %c0_34 = arith.constant 0 : index
    %50 = vector.load %arg4[%c2, %c0_33, %c0_34] : memref<9x128x128xf32, #tpu.memory_space<vmem>>, vector<1x128x128xf32>
    %51 = vector.shape_cast %50 : vector<1x128x128xf32> to vector<128x128xf32>
    %cst_35 = arith.constant dense<0.000000e+00> : vector<512x128xf32>
    %52 = tpu.matmul %49, %51, %cst_35 {dimension_numbers = #tpu.dot_dimension_numbers<[1], [0], [0], [1], [0, 0, 1, 1], [], []>} : vector<512x128xf32>, vector<128x128xf32>, vector<512x128xf32> -> vector<512x128xf32>
    %c0_36 = arith.constant 0 : index
    %c0_37 = arith.constant 0 : index
    %53 = vector.load %arg8[%c0_36, %c0_37] : memref<512x128xf32, #tpu.memory_space<vmem>>, vector<512x128xf32>
    %54 = arith.addf %53, %52 : vector<512x128xf32>
    %c0_38 = arith.constant 0 : index
    %c0_39 = arith.constant 0 : index
    %55 = vector.load %arg8[%c0_38, %c0_39] : memref<512x128xf32, #tpu.memory_space<vmem>>, vector<512x128xf32>
    tpu.vector_store %arg8[%c0_38, %c0_39], %54 {strides = array<i32>} : memref<512x128xf32, #tpu.memory_space<vmem>>, vector<512x128xf32>,
    %c39 = arith.constant 39 : index
    %c0_40 = arith.constant 0 : index
    %56 = vector.load %arg7[%c39, %c0_40] : memref<592x128xf32, #tpu.memory_space<vmem>>, vector<512x128xf32>
    %c3 = arith.constant 3 : index
    %c0_41 = arith.constant 0 : index
    %c0_42 = arith.constant 0 : index
    %57 = vector.load %arg4[%c3, %c0_41, %c0_42] : memref<9x128x128xf32, #tpu.memory_space<vmem>>, vector<1x128x128xf32>
    %58 = vector.shape_cast %57 : vector<1x128x128xf32> to vector<128x128xf32>
    %cst_43 = arith.constant dense<0.000000e+00> : vector<512x128xf32>
    %59 = tpu.matmul %56, %58, %cst_43 {dimension_numbers = #tpu.dot_dimension_numbers<[1], [0], [0], [1], [0, 0, 1, 1], [], []>} : vector<512x128xf32>, vector<128x128xf32>, vector<512x128xf32> -> vector<512x128xf32>
    %c0_44 = arith.constant 0 : index
    %c0_45 = arith.constant 0 : index
    %60 = vector.load %arg8[%c0_44, %c0_45] : memref<512x128xf32, #tpu.memory_space<vmem>>, vector<512x128xf32>
    %61 = arith.addf %60, %59 : vector<512x128xf32>
    %c0_46 = arith.constant 0 : index
    %c0_47 = arith.constant 0 : index
    %62 = vector.load %arg8[%c0_46, %c0_47] : memref<512x128xf32, #tpu.memory_space<vmem>>, vector<512x128xf32>
    tpu.vector_store %arg8[%c0_46, %c0_47], %61 {strides = array<i32>} : memref<512x128xf32, #tpu.memory_space<vmem>>, vector<512x128xf32>,
    %c40_48 = arith.constant 40 : index
    %c0_49 = arith.constant 0 : index
    %63 = vector.load %arg7[%c40_48, %c0_49] : memref<592x128xf32, #tpu.memory_space<vmem>>, vector<512x128xf32>
    %c4 = arith.constant 4 : index
    %c0_50 = arith.constant 0 : index
    %c0_51 = arith.constant 0 : index
    %64 = vector.load %arg4[%c4, %c0_50, %c0_51] : memref<9x128x128xf32, #tpu.memory_space<vmem>>, vector<1x128x128xf32>
    %65 = vector.shape_cast %64 : vector<1x128x128xf32> to vector<128x128xf32>
    %cst_52 = arith.constant dense<0.000000e+00> : vector<512x128xf32>
    %66 = tpu.matmul %63, %65, %cst_52 {dimension_numbers = #tpu.dot_dimension_numbers<[1], [0], [0], [1], [0, 0, 1, 1], [], []>} : vector<512x128xf32>, vector<128x128xf32>, vector<512x128xf32> -> vector<512x128xf32>
    %c0_53 = arith.constant 0 : index
    %c0_54 = arith.constant 0 : index
    %67 = vector.load %arg8[%c0_53, %c0_54] : memref<512x128xf32, #tpu.memory_space<vmem>>, vector<512x128xf32>
    %68 = arith.addf %67, %66 : vector<512x128xf32>
    %c0_55 = arith.constant 0 : index
    %c0_56 = arith.constant 0 : index
    %69 = vector.load %arg8[%c0_55, %c0_56] : memref<512x128xf32, #tpu.memory_space<vmem>>, vector<512x128xf32>
    tpu.vector_store %arg8[%c0_55, %c0_56], %68 {strides = array<i32>} : memref<512x128xf32, #tpu.memory_space<vmem>>, vector<512x128xf32>,
    %c41 = arith.constant 41 : index
    %c0_57 = arith.constant 0 : index
    %70 = vector.load %arg7[%c41, %c0_57] : memref<592x128xf32, #tpu.memory_space<vmem>>, vector<512x128xf32>
    %c5 = arith.constant 5 : index
    %c0_58 = arith.constant 0 : index
    %c0_59 = arith.constant 0 : index
    %71 = vector.load %arg4[%c5, %c0_58, %c0_59] : memref<9x128x128xf32, #tpu.memory_space<vmem>>, vector<1x128x128xf32>
    %72 = vector.shape_cast %71 : vector<1x128x128xf32> to vector<128x128xf32>
    %cst_60 = arith.constant dense<0.000000e+00> : vector<512x128xf32>
    %73 = tpu.matmul %70, %72, %cst_60 {dimension_numbers = #tpu.dot_dimension_numbers<[1], [0], [0], [1], [0, 0, 1, 1], [], []>} : vector<512x128xf32>, vector<128x128xf32>, vector<512x128xf32> -> vector<512x128xf32>
    %c0_61 = arith.constant 0 : index
    %c0_62 = arith.constant 0 : index
    %74 = vector.load %arg8[%c0_61, %c0_62] : memref<512x128xf32, #tpu.memory_space<vmem>>, vector<512x128xf32>
    %75 = arith.addf %74, %73 : vector<512x128xf32>
    %c0_63 = arith.constant 0 : index
    %c0_64 = arith.constant 0 : index
    %76 = vector.load %arg8[%c0_63, %c0_64] : memref<512x128xf32, #tpu.memory_space<vmem>>, vector<512x128xf32>
    tpu.vector_store %arg8[%c0_63, %c0_64], %75 {strides = array<i32>} : memref<512x128xf32, #tpu.memory_space<vmem>>, vector<512x128xf32>,
    %c71 = arith.constant 71 : index
    %c0_65 = arith.constant 0 : index
    %77 = vector.load %arg7[%c71, %c0_65] : memref<592x128xf32, #tpu.memory_space<vmem>>, vector<512x128xf32>
    %c6 = arith.constant 6 : index
    %c0_66 = arith.constant 0 : index
    %c0_67 = arith.constant 0 : index
    %78 = vector.load %arg4[%c6, %c0_66, %c0_67] : memref<9x128x128xf32, #tpu.memory_space<vmem>>, vector<1x128x128xf32>
    %79 = vector.shape_cast %78 : vector<1x128x128xf32> to vector<128x128xf32>
    %cst_68 = arith.constant dense<0.000000e+00> : vector<512x128xf32>
    %80 = tpu.matmul %77, %79, %cst_68 {dimension_numbers = #tpu.dot_dimension_numbers<[1], [0], [0], [1], [0, 0, 1, 1], [], []>} : vector<512x128xf32>, vector<128x128xf32>, vector<512x128xf32> -> vector<512x128xf32>
    %c0_69 = arith.constant 0 : index
    %c0_70 = arith.constant 0 : index
    %81 = vector.load %arg8[%c0_69, %c0_70] : memref<512x128xf32, #tpu.memory_space<vmem>>, vector<512x128xf32>
    %82 = arith.addf %81, %80 : vector<512x128xf32>
    %c0_71 = arith.constant 0 : index
    %c0_72 = arith.constant 0 : index
    %83 = vector.load %arg8[%c0_71, %c0_72] : memref<512x128xf32, #tpu.memory_space<vmem>>, vector<512x128xf32>
    tpu.vector_store %arg8[%c0_71, %c0_72], %82 {strides = array<i32>} : memref<512x128xf32, #tpu.memory_space<vmem>>, vector<512x128xf32>,
    %c72 = arith.constant 72 : index
    %c0_73 = arith.constant 0 : index
    %84 = vector.load %arg7[%c72, %c0_73] : memref<592x128xf32, #tpu.memory_space<vmem>>, vector<512x128xf32>
    %c7_74 = arith.constant 7 : index
    %c0_75 = arith.constant 0 : index
    %c0_76 = arith.constant 0 : index
    %85 = vector.load %arg4[%c7_74, %c0_75, %c0_76] : memref<9x128x128xf32, #tpu.memory_space<vmem>>, vector<1x128x128xf32>
    %86 = vector.shape_cast %85 : vector<1x128x128xf32> to vector<128x128xf32>
    %cst_77 = arith.constant dense<0.000000e+00> : vector<512x128xf32>
    %87 = tpu.matmul %84, %86, %cst_77 {dimension_numbers = #tpu.dot_dimension_numbers<[1], [0], [0], [1], [0, 0, 1, 1], [], []>} : vector<512x128xf32>, vector<128x128xf32>, vector<512x128xf32> -> vector<512x128xf32>
    %c0_78 = arith.constant 0 : index
    %c0_79 = arith.constant 0 : index
    %88 = vector.load %arg8[%c0_78, %c0_79] : memref<512x128xf32, #tpu.memory_space<vmem>>, vector<512x128xf32>
    %89 = arith.addf %88, %87 : vector<512x128xf32>
    %c0_80 = arith.constant 0 : index
    %c0_81 = arith.constant 0 : index
    %90 = vector.load %arg8[%c0_80, %c0_81] : memref<512x128xf32, #tpu.memory_space<vmem>>, vector<512x128xf32>
    tpu.vector_store %arg8[%c0_80, %c0_81], %89 {strides = array<i32>} : memref<512x128xf32, #tpu.memory_space<vmem>>, vector<512x128xf32>,
    %c73 = arith.constant 73 : index
    %c0_82 = arith.constant 0 : index
    %91 = vector.load %arg7[%c73, %c0_82] : memref<592x128xf32, #tpu.memory_space<vmem>>, vector<512x128xf32>
    %c8_83 = arith.constant 8 : index
    %c0_84 = arith.constant 0 : index
    %c0_85 = arith.constant 0 : index
    %92 = vector.load %arg4[%c8_83, %c0_84, %c0_85] : memref<9x128x128xf32, #tpu.memory_space<vmem>>, vector<1x128x128xf32>
    %93 = vector.shape_cast %92 : vector<1x128x128xf32> to vector<128x128xf32>
    %cst_86 = arith.constant dense<0.000000e+00> : vector<512x128xf32>
    %94 = tpu.matmul %91, %93, %cst_86 {dimension_numbers = #tpu.dot_dimension_numbers<[1], [0], [0], [1], [0, 0, 1, 1], [], []>} : vector<512x128xf32>, vector<128x128xf32>, vector<512x128xf32> -> vector<512x128xf32>
    %c0_87 = arith.constant 0 : index
    %c0_88 = arith.constant 0 : index
    %95 = vector.load %arg8[%c0_87, %c0_88] : memref<512x128xf32, #tpu.memory_space<vmem>>, vector<512x128xf32>
    %96 = arith.addf %95, %94 : vector<512x128xf32>
    %c0_89 = arith.constant 0 : index
    %c0_90 = arith.constant 0 : index
    %97 = vector.load %arg8[%c0_89, %c0_90] : memref<512x128xf32, #tpu.memory_space<vmem>>, vector<512x128xf32>
    tpu.vector_store %arg8[%c0_89, %c0_90], %96 {strides = array<i32>} : memref<512x128xf32, #tpu.memory_space<vmem>>, vector<512x128xf32>,
    %c0_91 = arith.constant 0 : index
    %c0_92 = arith.constant 0 : index
    %98 = vector.load %arg8[%c0_91, %c0_92] : memref<512x128xf32, #tpu.memory_space<vmem>>, vector<512x128xf32>
    %c0_93 = arith.constant 0 : index
    %c0_94 = arith.constant 0 : index
    %99 = vector.load %arg5[%c0_93, %c0_94] : memref<1x128xf32, #tpu.memory_space<vmem>>, vector<1x128xf32>
    %100 = vector.broadcast %99 : vector<1x128xf32> to vector<512x128xf32>
    %101 = arith.addf %98, %100 : vector<512x128xf32>
    %cst_95 = arith.constant 0.000000e+00 : f32
    %102 = vector.broadcast %cst_95 : f32 to vector<512x128xf32>
    %103 = arith.maximumf %101, %102 : vector<512x128xf32>
    %c0_96 = arith.constant 0 : index
    %c0_97 = arith.constant 0 : index
    %c0_98 = arith.constant 0 : index
    %104 = vector.load %arg6[%c0_96, %c0_97, %c0_98] : memref<1x512x128xf32, #tpu.memory_space<vmem>>, vector<1x512x128xf32>
    %105 = vector.shape_cast %104 : vector<1x512x128xf32> to vector<512x128xf32>
    %106 = vector.shape_cast %103 : vector<512x128xf32> to vector<1x512x128xf32>
    tpu.vector_store %arg6[%c0_96, %c0_97, %c0_98], %106 {strides = array<i32>} : memref<1x512x128xf32, #tpu.memory_space<vmem>>, vector<1x512x128xf32>,
    return
  }
  func.func @transform_0(%arg0: i32) -> (i32, i32, i32) {
    %c0_i32 = arith.constant 0 : i32
    %c0_i32_0 = arith.constant 0 : i32
    %c0_i32_1 = arith.constant 0 : i32
    return %arg0, %c0_i32, %c0_i32_0 : i32, i32, i32
  }
  func.func @transform_1(%arg0: i32) -> (i32, i32) {
    %c0_i32 = arith.constant 0 : i32
    %c0_i32_0 = arith.constant 0 : i32
    %c0_i32_1 = arith.constant 0 : i32
    return %c0_i32, %c0_i32_0 : i32, i32
  }
  func.func @transform_2(%arg0: i32) -> (i32, i32) {
    %c0_i32 = arith.constant 0 : i32
    %c0_i32_0 = arith.constant 0 : i32
    %c0_i32_1 = arith.constant 0 : i32
    return %c0_i32, %c0_i32_0 : i32, i32
  }
  func.func @transform_3(%arg0: i32) -> (i32, i32, i32) {
    %c0_i32 = arith.constant 0 : i32
    %c0_i32_0 = arith.constant 0 : i32
    %c0_i32_1 = arith.constant 0 : i32
    %c0_i32_2 = arith.constant 0 : i32
    return %c0_i32, %c0_i32_0, %c0_i32_1 : i32, i32, i32
  }
  func.func @transform_4(%arg0: i32) -> (i32, i32) {
    %c0_i32 = arith.constant 0 : i32
    %c0_i32_0 = arith.constant 0 : i32
    %c0_i32_1 = arith.constant 0 : i32
    return %c0_i32, %c0_i32_0 : i32, i32
  }
  func.func @transform_5(%arg0: i32) -> (i32, i32, i32) {
    %c0_i32 = arith.constant 0 : i32
    %c0_i32_0 = arith.constant 0 : i32
    %c0_i32_1 = arith.constant 0 : i32
    return %arg0, %c0_i32, %c0_i32_0 : i32, i32, i32
  }
}

</mosaic_0001>

<bundles_post_ra>
// kernel: double_conv_nchw.1
= control target key start
LH: loop header
LB: loop body
LE: loop exit
PB: predicated region body
PF: predicated region fallthrough
CT: control target
= control target key end

     0   :  { %s10309_s18 = smov 0   ;;  %s12527_s0 = inlined_call_operand.vmem [shape: f32[2,512,128], index: 0, kind: input, shape index: {}]   ;;  %s12528_s1 = inlined_call_operand.vmem [shape: f32[128,128], index: 1, kind: input, shape index: {}]   ;;  %s12529_s2 = inlined_call_operand.vmem [shape: f32[1,128], index: 2, kind: input, shape index: {}]   ;;  %s12530_s3 = inlined_call_operand.vmem [shape: f32[9,128,128], index: 3, kind: input, shape index: {}]   ;;  %s12531_s4 = inlined_call_operand.vmem [shape: f32[1,128], index: 4, kind: input, shape index: {}]   ;;  %s12532_s5 = inlined_call_operand.vmem [shape: f32[2,512,128], index: 5, kind: output, shape index: {}]  }
   0x1 LB: > { %s8035_s19 = sadd.s32 4294967295, %s10276_s18   ;;  %p8039_p0 = scmp.ge.s32.totalorder %s10276_s18, 1  ;;  %s10276_s18 = sphi %s10309_s18, %s15_s18  }
   0x2   : > { %p187_p1 = scmp.lt.s32.totalorder %s10276_s18, 3 }
   0x4   : > { %p188_p2 = pnand %p8039_p0, %p187_p1 }
   0x6   : > { %191 = sbr.rel (%p188_p2) target bundleno = 1083 (0x43b), region = 40 }
   0xb   : > { %v304_v0 = vld [vmem:[%s12528_s1 + $0x78] sm:$0xff]  ;;  %v303_v1 = vld [vmem:[%s12528_s1 + $0x70] sm:$0xff]  ;;  %p215_p3 = scmp.lt.s32.totalorder %s8035_s19, 1  ;;  %v302_v2 = vld [vmem:[%s12528_s1 + $0x68] sm:$0xff] }
   0xc   : > { %8978 = vmatprep.subr.mxu0 %v304_v0  ;;  %v301_v3 = vld [vmem:[%s12528_s1 + $0x60] sm:$0xff]  ;;  %v300_v4 = vld [vmem:[%s12528_s1 + $0x58] sm:$0xff]  ;;  %v299_v6 = vld [vmem:[%s12528_s1 + $0x50] sm:$0xff] }
   0xd   : > { %8979 = vmatpush3.msra.mxu0 %v304_v0  ;;  %s12789_s19 = smov (!%p215_p3, %s8035_s19), 1  ;;  %v298_v7 = vld [vmem:[%s12528_s1 + $0x48] sm:$0xff]  ;;  %v297_v8 = vld [vmem:[%s12528_s1 + $0x40] sm:$0xff]  ;;  %v296_v9 = vld [vmem:[%s12528_s1 + $0x38] sm:$0xff] }
   0xe   : > { %8980 = vmatprep.subr.mxu0 %v303_v1  ;;  %s8176_s28 = sshll.u32 %s12789_s19, 9  ;;  %v295_v10 = vld [vmem:[%s12528_s1 + $0x30] sm:$0xff]  ;;  %v294_v11 = vld [vmem:[%s12528_s1 + $0x28] sm:$0xff]  ;;  %v293_v12 = vld [vmem:[%s12528_s1 + $0x20] sm:$0xff] }
   0xf   : > { %8981 = vmatpush3.msra.mxu0 %v303_v1  ;;  %s10337_s6 = scalar_lea.vmem %s12527_s0, %s8176_s28  ;;  %v292_v13 = vld [vmem:[%s12528_s1 + $0x18] sm:$0xff]  ;;  %v291_v14 = vld [vmem:[%s12528_s1 + $0x10] sm:$0xff]  ;;  %v290_v16 = vld [vmem:[%s12528_s1 + $0x8] sm:$0xff]  ;;  %s12241_s23 = scalar_lea.vmem %s12532_s5, %s8176_s28 }
  0x10   : > { %8982 = vmatprep.subr.mxu0 %v302_v2  ;;  %v225_v5 = vld [vmem:[%s10337_s6] sm:$0xff]  ;;  %v2003_v15 = vld [vmem:[%s12530_s3 + $0x78] sm:$0xff]  ;;  %v2002_v17 = vld [vmem:[%s12530_s3 + $0x70] sm:$0xff] }
  0x11   : > { %8983 = vmatpush3.msra.mxu0 %v302_v2  ;;  %9010 = vmatprep.mubr.f32.mxu0 %v225_v5  ;;  %v2001_v18 = vld [vmem:[%s12530_s3 + $0x68] sm:$0xff]  ;;  %v289_v19 = vld [vmem:[%s12528_s1] sm:$0xff]  ;;  %v8060_v22 = vld [vmem:[%s12530_s3 + $0xf8] sm:$0xff] }
  0x12   : > { %8984 = vmatprep.subr.mxu0 %v301_v3  ;;  %9106 = vmatprep.subr.mxu1 %v2003_v15  ;;  %v2000_v20 = vld [vmem:[%s12530_s3 + $0x60] sm:$0xff]  ;;  %v226_v21 = vld [vmem:[%s10337_s6 + $0x8] sm:$0xff]  ;;  %v227_v23 = vld [vmem:[%s10337_s6 + $0x10] sm:$0xff] }
  0x13   : > { %8985 = vmatpush3.msra.mxu0 %v301_v3  ;;  %9107 = vmatpush3.msra.mxu1 %v2003_v15  ;;  %v8059_v24 = vld [vmem:[%s12530_s3 + $0xf0] sm:$0xff]  ;;  %v1999_v25 = vld [vmem:[%s12530_s3 + $0x58] sm:$0xff]  ;;  %v8058_v27 = vld [vmem:[%s12530_s3 + $0xe8] sm:$0xff]  ;;  %v10278_v15 = vmov 0.0  }
  0x14   : > { %8986 = vmatprep.subr.mxu0 %v300_v4  ;;  %9108 = vmatprep.subr.mxu1 %v2002_v17  ;;  %v228_v26 = vld [vmem:[%s10337_s6 + $0x18] sm:$0xff]  ;;  %v229_v28 = vld [vmem:[%s10337_s6 + $0x20] sm:$0xff]  ;;  %v1998_v30 = vld [vmem:[%s12530_s3 + $0x50] sm:$0xff]  ;;  %1850 = vst [vmem:[#allocation2] sm:$0xff] %v10278_v15 }
  0x15   : > { %8987 = vmatpush3.msra.mxu0 %v300_v4  ;;  %9109 = vmatpush3.msra.mxu1 %v2002_v17  ;;  %v8057_v29 = vld [vmem:[%s12530_s3 + $0xe0] sm:$0xff]  ;;  %v230_v31 = vld [vmem:[%s10337_s6 + $0x28] sm:$0xff]  ;;  %v8056_v32 = vld [vmem:[%s12530_s3 + $0xd8] sm:$0xff]  ;;  %1851 = vst [vmem:[#allocation2 + $0x8] sm:$0xff] %v10278_v15 }
  0x16   : > { %8988 = vmatprep.subr.mxu0 %v299_v6  ;;  %9110 = vmatprep.subr.mxu1 %v2001_v18  ;;  %v231_v33 = vld [vmem:[%s10337_s6 + $0x30] sm:$0xff]  ;;  %v1997_v35 = vld [vmem:[%s12530_s3 + $0x48] sm:$0xff]  ;;  %v232_v36 = vld [vmem:[%s10337_s6 + $0x38] sm:$0xff]  ;;  %1852 = vst [vmem:[#allocation2 + $0x10] sm:$0xff] %v10278_v15 }
  0x17   : > { %8989 = vmatpush3.msra.mxu0 %v299_v6  ;;  %9111 = vmatpush3.msra.mxu1 %v2001_v18  ;;  %v8055_v34 = vld [vmem:[%s12530_s3 + $0xd0] sm:$0xff]  ;;  %v8054_v37 = vld [vmem:[%s12530_s3 + $0xc8] sm:$0xff]  ;;  %v233_v38 = vld [vmem:[%s10337_s6 + $0x40] sm:$0xff]  ;;  %1853 = vst [vmem:[#allocation2 + $0x18] sm:$0xff] %v10278_v15 }
  0x18   : > { %8990 = vmatprep.subr.mxu0 %v298_v7  ;;  %9112 = vmatprep.subr.mxu1 %v2000_v20  ;;  %v1996_v39 = vld [vmem:[%s12530_s3 + $0x40] sm:$0xff]  ;;  %v234_v41 = vld [vmem:[%s10337_s6 + $0x48] sm:$0xff]  ;;  %v1995_v42 = vld [vmem:[%s12530_s3 + $0x38] sm:$0xff]  ;;  %1854 = vst [vmem:[#allocation2 + $0x20] sm:$0xff] %v10278_v15 }
  0x19   : > { %8991 = vmatpush3.msra.mxu0 %v298_v7  ;;  %9113 = vmatpush3.msra.mxu1 %v2000_v20  ;;  %v8053_v40 = vld [vmem:[%s12530_s3 + $0xc0] sm:$0xff]  ;;  %v235_v43 = vld [vmem:[%s10337_s6 + $0x50] sm:$0xff]  ;;  %v8052_v44 = vld [vmem:[%s12530_s3 + $0xb8] sm:$0xff]  ;;  %1855 = vst [vmem:[#allocation2 + $0x228] sm:$0xff] %v10278_v15 }
  0x1a   : > { %8992 = vmatprep.subr.mxu0 %v297_v8  ;;  %9114 = vmatprep.subr.mxu1 %v1999_v25  ;;  %v1994_v45 = vld [vmem:[%s12530_s3 + $0x30] sm:$0xff]  ;;  %v236_v46 = vld [vmem:[%s10337_s6 + $0x58] sm:$0xff]  ;;  %v237_v48 = vld [vmem:[%s10337_s6 + $0x60] sm:$0xff]  ;;  %1856 = vst [vmem:[#allocation2 + $0x230] sm:$0xff] %v10278_v15 }
  0x1b   : > { %8993 = vmatpush3.msra.mxu0 %v297_v8  ;;  %9115 = vmatpush3.msra.mxu1 %v1999_v25  ;;  %v8051_v47 = vld [vmem:[%s12530_s3 + $0xb0] sm:$0xff]  ;;  %v1993_v49 = vld [vmem:[%s12530_s3 + $0x28] sm:$0xff]  ;;  %v1992_v52 = vld [vmem:[%s12530_s3 + $0x20] sm:$0xff]  ;;  %1857 = vst [vmem:[#allocation2 + $0x238] sm:$0xff] %v10278_v15 }
  0x1c   : > { %8994 = vmatprep.subr.mxu0 %v296_v9  ;;  %9116 = vmatprep.subr.mxu1 %v1998_v30  ;;  %v8050_v50 = vld [vmem:[%s12530_s3 + $0xa8] sm:$0xff]  ;;  %v239_v53 = vld [vmem:[%s10337_s6 + $0x70] sm:$0xff]  ;;  %v8049_v54 = vld [vmem:[%s12530_s3 + $0xa0] sm:$0xff]  ;;  %1858 = vst [vmem:[#allocation2 + $0x240] sm:$0xff] %v10278_v15 }
  0x1d   : > { %8995 = vmatpush3.msra.mxu0 %v296_v9  ;;  %9117 = vmatpush3.msra.mxu1 %v1998_v30  ;;  %v238_v51 = vld [vmem:[%s10337_s6 + $0x68] sm:$0xff]  ;;  %v1991_v55 = vld [vmem:[%s12530_s3 + $0x18] sm:$0xff]  ;;  %v241_v58 = vld [vmem:[%s10337_s6 + $0x80] sm:$0xff]  ;;  %1859 = vst [vmem:[#allocation2 + $0x248] sm:$0xff] %v10278_v15 }
  0x1e   : > { %8996 = vmatprep.subr.mxu0 %v295_v10  ;;  %9118 = vmatprep.subr.mxu1 %v1997_v35  ;;  %v240_v56 = vld [vmem:[%s10337_s6 + $0x78] sm:$0xff]  ;;  %v242_v59 = vld [vmem:[%s10337_s6 + $0x88] sm:$0xff]  ;;  %v243_v60 = vld [vmem:[%s10337_s6 + $0x90] sm:$0xff]  ;;  %1862 = vst [vmem:[#allocation2 + $0x38] sm:$0xff] %v10278_v15 }
  0x1f   : > { %8997 = vmatpush3.msra.mxu0 %v295_v10  ;;  %9119 = vmatpush3.msra.mxu1 %v1997_v35  ;;  %v8048_v57 = vld [vmem:[%s12530_s3 + $0x98] sm:$0xff]  ;;  %v245_v62 = vld [vmem:[%s10337_s6 + $0xa0] sm:$0xff]  ;;  %v246_v63 = vld [vmem:[%s10337_s6 + $0xa8] sm:$0xff]  ;;  %1863 = vst [vmem:[#allocation2 + $0x40] sm:$0xff] %v10278_v15 }
  0x20   : > { %8998 = vmatprep.subr.mxu0 %v294_v11  ;;  %9120 = vmatprep.subr.mxu1 %v1996_v39  ;;  %v244_v61 = vld [vmem:[%s10337_s6 + $0x98] sm:$0xff]  ;;  %v247_v0 = vld [vmem:[%s10337_s6 + $0xb0] sm:$0xff]  ;;  %v249_v2 = vld [vmem:[%s10337_s6 + $0xc0] sm:$0xff]  ;;  %1866 = vst [vmem:[#allocation2 + $0x58] sm:$0xff] %v10278_v15 }
  0x21   : > { %8999 = vmatpush3.msra.mxu0 %v294_v11  ;;  %9121 = vmatpush3.msra.mxu1 %v1996_v39  ;;  %v248_v1 = vld [vmem:[%s10337_s6 + $0xb8] sm:$0xff]  ;;  %v250_v3 = vld [vmem:[%s10337_s6 + $0xc8] sm:$0xff]  ;;  %v251_v4 = vld [vmem:[%s10337_s6 + $0xd0] sm:$0xff]  ;;  %1867 = vst [vmem:[#allocation2 + $0x60] sm:$0xff] %v10278_v15 }
  0x22   : > { %9000 = vmatprep.subr.mxu0 %v293_v12  ;;  %9122 = vmatprep.subr.mxu1 %v1995_v42  ;;  %v252_v5 = vld [vmem:[%s10337_s6 + $0xd8] sm:$0xff]  ;;  %v253_v6 = vld [vmem:[%s10337_s6 + $0xe0] sm:$0xff]  ;;  %v254_v7 = vld [vmem:[%s10337_s6 + $0xe8] sm:$0xff]  ;;  %1870 = vst [vmem:[#allocation2 + $0x78] sm:$0xff] %v10278_v15 }
  0x23   : > { %9001 = vmatpush3.msra.mxu0 %v293_v12  ;;  %9123 = vmatpush3.msra.mxu1 %v1995_v42  ;;  %v255_v8 = vld [vmem:[%s10337_s6 + $0xf0] sm:$0xff]  ;;  %v256_v9 = vld [vmem:[%s10337_s6 + $0xf8] sm:$0xff]  ;;  %v257_v11 = vld [vmem:[%s10337_s6 + $0x100] sm:$0xff]  ;;  %1871 = vst [vmem:[#allocation2 + $0x80] sm:$0xff] %v10278_v15 }
  0x24   : > { %9002 = vmatprep.subr.mxu0 %v292_v13  ;;  %9124 = vmatprep.subr.mxu1 %v1994_v45  ;;  %v8047_v10 = vld [vmem:[%s12530_s3 + $0x90] sm:$0xff]  ;;  %v8046_v12 = vld [vmem:[%s12530_s3 + $0x88] sm:$0xff]  ;;  %1874 = vst [vmem:[#allocation2 + $0x98] sm:$0xff] %v10278_v15  ;;  %1875 = vst [vmem:[#allocation2 + $0xa0] sm:$0xff] %v10278_v15 }
  0x25   : > { %9003 = vmatpush3.msra.mxu0 %v292_v13  ;;  %9125 = vmatpush3.msra.mxu1 %v1994_v45  ;;  %v258_v13 = vld [vmem:[%s10337_s6 + $0x108] sm:$0xff]  ;;  %1878 = vst [vmem:[#allocation2 + $0xb8] sm:$0xff] %v10278_v15  ;;  %1879 = vst [vmem:[#allocation2 + $0xc0] sm:$0xff] %v10278_v15  ;;  %v1990_v17 = vld [vmem:[%s12530_s3 + $0x10] sm:$0xff] }
  0x26   : > { %9004 = vmatprep.subr.mxu0 %v291_v14  ;;  %9126 = vmatprep.subr.mxu1 %v1993_v49  ;;  %1882 = vst [vmem:[#allocation2 + $0xd8] sm:$0xff] %v10278_v15  ;;  %1883 = vst [vmem:[#allocation2 + $0xe0] sm:$0xff] %v10278_v15  ;;  %v260_v18 = vld [vmem:[%s10337_s6 + $0x118] sm:$0xff]  ;;  %v261_v20 = vld [vmem:[%s10337_s6 + $0x120] sm:$0xff] }
  0x27   : > { %9005 = vmatpush3.msra.mxu0 %v291_v14  ;;  %9127 = vmatpush3.msra.mxu1 %v1993_v49  ;;  %v8045_v14 = vld [vmem:[%s12530_s3 + $0x80] sm:$0xff]  ;;  %1886 = vst [vmem:[#allocation2 + $0xf8] sm:$0xff] %v10278_v15  ;;  %1887 = vst [vmem:[#allocation2 + $0x100] sm:$0xff] %v10278_v15  ;;  %v263_v25 = vld [vmem:[%s10337_s6 + $0x130] sm:$0xff] }
  0x28   : > { %9006 = vmatprep.subr.mxu0 %v290_v16  ;;  %9128 = vmatprep.subr.mxu1 %v1992_v52  ;;  %1890 = vst [vmem:[#allocation2 + $0x118] sm:$0xff] %v10278_v15  ;;  %1891 = vst [vmem:[#allocation2 + $0x120] sm:$0xff] %v10278_v15  ;;  %v265_v30 = vld [vmem:[%s10337_s6 + $0x140] sm:$0xff]  ;;  %v272_v39 = vld [vmem:[%s10337_s6 + $0x178] sm:$0xff] }
  0x29   : > { %9007 = vmatpush3.msra.mxu0 %v290_v16  ;;  %9129 = vmatpush3.msra.mxu1 %v1992_v52  ;;  %1894 = vst [vmem:[#allocation2 + $0x138] sm:$0xff] %v10278_v15  ;;  %1895 = vst [vmem:[#allocation2 + $0x140] sm:$0xff] %v10278_v15  ;;  %v259_v16 = vld [vmem:[%s10337_s6 + $0x110] sm:$0xff]  ;;  %v269_v35 = vld [vmem:[%s10337_s6 + $0x160] sm:$0xff] }
  0x2a   : > { %9008 = vmatprep.subr.mxu0 %v289_v19  ;;  %9130 = vmatprep.subr.mxu1 %v1991_v55  ;;  %1898 = vst [vmem:[#allocation2 + $0x158] sm:$0xff] %v10278_v15  ;;  %1899 = vst [vmem:[#allocation2 + $0x160] sm:$0xff] %v10278_v15  ;;  %v275_v42 = vld [vmem:[%s10337_s6 + $0x190] sm:$0xff]  ;;  %v277_v45 = vld [vmem:[%s10337_s6 + $0x1a0] sm:$0xff] }
  0x2b   : > { %9009 = vmatpush3.msra.mxu0 %v289_v19  ;;  %9131 = vmatpush3.msra.mxu1 %v1991_v55  ;;  %1902 = vst [vmem:[#allocation2 + $0x178] sm:$0xff] %v10278_v15  ;;  %1903 = vst [vmem:[#allocation2 + $0x180] sm:$0xff] %v10278_v15  ;;  %v1989_v19 = vld [vmem:[%s12530_s3 + $0x8] sm:$0xff]  ;;  %v280_v49 = vld [vmem:[%s10337_s6 + $0x1b8] sm:$0xff] }
  0x2c   : > { %9011 = vmatmul.mubr.f32.vlgmr.msra.gmra.mxu0 %v226_v21  ;;  %9234 = vmatprep.subr.mxu0 %v8060_v22  ;;  %1906 = vst [vmem:[#allocation2 + $0x198] sm:$0xff] %v10278_v15  ;;  %1907 = vst [vmem:[#allocation2 + $0x1a0] sm:$0xff] %v10278_v15  ;;  %v1988_v21 = vld [vmem:[%s12530_s3] sm:$0xff]  ;;  %v283_v52 = vld [vmem:[%s10337_s6 + $0x1d0] sm:$0xff] }
  0x2d   : > { %9013 = vmatprep.mubr.f32.mxu0 %v227_v23  ;;  %9235 = vmatpush3.msra.mxu0 %v8060_v22  ;;  %1910 = vst [vmem:[#allocation2 + $0x1b8] sm:$0xff] %v10278_v15  ;;  %1911 = vst [vmem:[#allocation2 + $0x1c0] sm:$0xff] %v10278_v15  ;;  %v1924_v22 = vld [vmem:[#allocation2 + $0x7] sm:$0xff] }
  0x2e   : > { %9236 = vmatprep.subr.mxu0 %v8059_v24  ;;  %1914 = vst [vmem:[#allocation2 + $0x1d8] sm:$0xff] %v10278_v15  ;;  %1915 = vst [vmem:[#allocation2 + $0x1e0] sm:$0xff] %v10278_v15  ;;  %9132 = vmatprep.subr.mxu1 %v1990_v17  ;;  %v262_v23 = vld [vmem:[%s10337_s6 + $0x128] sm:$0xff]  ;;  %v285_v55 = vld [vmem:[%s10337_s6 + $0x1e0] sm:$0xff] }
  0x2f   : > { %9237 = vmatpush3.msra.mxu0 %v8059_v24  ;;  %1918 = vst [vmem:[#allocation2 + $0x1f8] sm:$0xff] %v10278_v15  ;;  %1919 = vst [vmem:[#allocation2 + $0x200] sm:$0xff] %v10278_v15  ;;  %9133 = vmatpush3.msra.mxu1 %v1990_v17  ;;  %v1925_v24 = vld [vmem:[#allocation2 + $0xf] sm:$0xff]  ;;  %v8080_v17 = vld [vmem:[%s12530_s3 + $0x198] sm:$0xff] }
  0x30   : > { %9014 = vmatmul.mubr.f32.gmra.mxu0 %v228_v26  ;;  %9238 = vmatprep.subr.mxu0 %v8058_v27  ;;  %1922 = vst [vmem:[#allocation2 + $0x218] sm:$0xff] %v10278_v15  ;;  %1923 = vst [vmem:[#allocation2 + $0x220] sm:$0xff] %v10278_v15  ;;  %v8076_v26 = vld [vmem:[%s12530_s3 + $0x178] sm:$0xff] }
  0x31   : > { %9016 = vmatprep.mubr.f32.mxu0 %v229_v28  ;;  %9239 = vmatpush3.msra.mxu0 %v8058_v27  ;;  %v1926_v27 = vld [vmem:[#allocation2 + $0x17] sm:$0xff] }
  0x32   : > { %9240 = vmatprep.subr.mxu0 %v8057_v29  ;;  %9134 = vmatprep.subr.mxu1 %v1989_v19  ;;  %v264_v28 = vld [vmem:[%s10337_s6 + $0x138] sm:$0xff] }
  0x33   : > { %9241 = vmatpush3.msra.mxu0 %v8057_v29  ;;  %9135 = vmatpush3.msra.mxu1 %v1989_v19  ;;  %v1927_v29 = vld [vmem:[#allocation2 + $0x1f] sm:$0xff]  ;;  %v8078_v19 = vld [vmem:[%s12530_s3 + $0x188] sm:$0xff] }
  0x34   : > { %9017 = vmatmul.mubr.f32.gmra.mxu0 %v230_v31  ;;  %9242 = vmatprep.subr.mxu0 %v8056_v32  ;;  %v266_v31 = vld [vmem:[%s10337_s6 + $0x148] sm:$0xff] }
  0x35   : > { %9019 = vmatprep.mubr.f32.mxu0 %v231_v33  ;;  %9243 = vmatpush3.msra.mxu0 %v8056_v32  ;;  %v267_v32 = vld [vmem:[%s10337_s6 + $0x150] sm:$0xff] }
  0x36   : > { %9244 = vmatprep.subr.mxu0 %v8055_v34  ;;  %9136 = vmatprep.subr.mxu1 %v1988_v21  ;;  %v8075_v33 = vld [vmem:[%s12530_s3 + $0x170] sm:$0xff] }
  0x37   : > { %9245 = vmatpush3.msra.mxu0 %v8055_v34  ;;  %9137 = vmatpush3.msra.mxu1 %v1988_v21  ;;  %v268_v34 = vld [vmem:[%s10337_s6 + $0x158] sm:$0xff]  ;;  %v10677_v21 = vld [vmem:[%s12529_s2] ss:$0 sm:$0xff] }
  0x38   : > { %9020 = vmatmul.mubr.f32.gmra.mxu0 %v232_v36  ;;  %9246 = vmatprep.subr.mxu0 %v8054_v37  ;;  %v270_v36 = vld [vmem:[%s10337_s6 + $0x168] sm:$0xff] }
  0x39   : > { %9022 = vmatprep.mubr.f32.mxu0 %v233_v38  ;;  %9247 = vmatpush3.msra.mxu0 %v8054_v37  ;;  %v271_v37 = vld [vmem:[%s10337_s6 + $0x170] sm:$0xff]  ;;  %v8074_v38 = vld [vmem:[%s12530_s3 + $0x168] sm:$0xff] }
  0x3a   : > { %9248 = vmatprep.subr.mxu0 %v8053_v40  ;;  %9138 = vmatprep.mubr.f32.mxu1 %v1924_v22  ;;  %v8061_v22 = vld [vmem:[%s12530_s3 + $0x100] sm:$0xff] }
  0x3b   : > { %9249 = vmatpush3.msra.mxu0 %v8053_v40  ;;  %9139 = vmatmul.mubr.f32.vlgmr.msra.gmra.mxu1 %v1925_v24  ;;  %v273_v40 = vld [vmem:[%s10337_s6 + $0x180] sm:$0xff] }
  0x3c   : > { %9023 = vmatmul.mubr.f32.gmra.mxu0 %v234_v41  ;;  %9250 = vmatprep.subr.mxu0 %v8052_v44  ;;  %v274_v41 = vld [vmem:[%s10337_s6 + $0x188] sm:$0xff] }
  0x3d   : > { %9025 = vmatprep.mubr.f32.mxu0 %v235_v43  ;;  %9251 = vmatpush3.msra.mxu0 %v8052_v44  ;;  %v8073_v43 = vld [vmem:[%s12530_s3 + $0x160] sm:$0xff]  ;;  %v276_v44 = vld [vmem:[%s10337_s6 + $0x198] sm:$0xff] }
  0x3e   : > { %9252 = vmatprep.subr.mxu0 %v8051_v47  ;;  %9362 = vmatprep.subr.mxu1 %v8076_v26 }
  0x3f   : > { %9253 = vmatpush3.msra.mxu0 %v8051_v47  ;;  %9363 = vmatpush3.msra.mxu1 %v8076_v26  ;;  %v279_v47 = vld [vmem:[%s10337_s6 + $0x1b0] sm:$0xff] }
  0x40   : > { %9026 = vmatmul.mubr.f32.gmra.mxu0 %v236_v46  ;;  %9254 = vmatprep.subr.mxu0 %v8050_v50  ;;  %v278_v46 = vld [vmem:[%s10337_s6 + $0x1a8] sm:$0xff] }
  0x41   : > { %9028 = vmatprep.mubr.f32.mxu0 %v237_v48  ;;  %9255 = vmatpush3.msra.mxu0 %v8050_v50  ;;  %v8072_v48 = vld [vmem:[%s12530_s3 + $0x158] sm:$0xff]  ;;  %v281_v50 = vld [vmem:[%s10337_s6 + $0x1c0] sm:$0xff] }
  0x42   : > { %9256 = vmatprep.subr.mxu0 %v8049_v54  ;;  %9141 = vmatprep.mubr.f32.mxu1 %v1926_v27 }
  0x43   : > { %9257 = vmatpush3.msra.mxu0 %v8049_v54  ;;  %9142 = vmatmul.mubr.f32.gmra.mxu1 %v1927_v29  ;;  %v284_v54 = vld [vmem:[%s10337_s6 + $0x1d8] sm:$0xff] }
  0x44   : > { %9029 = vmatmul.mubr.f32.gmra.mxu0 %v238_v51  ;;  %9258 = vmatprep.subr.mxu0 %v8048_v57  ;;  %v282_v51 = vld [vmem:[%s10337_s6 + $0x1c8] sm:$0xff] }
  0x45   : > { %9031 = vmatprep.mubr.f32.mxu0 %v239_v53  ;;  %9259 = vmatpush3.msra.mxu0 %v8048_v57  ;;  %v8071_v53 = vld [vmem:[%s12530_s3 + $0x150] sm:$0xff] }
  0x46   : > { %9260 = vmatprep.subr.mxu0 %v8047_v10  ;;  %9364 = vmatprep.subr.mxu1 %v8075_v33  ;;  %v287_v57 = vld [vmem:[%s10337_s6 + $0x1f0] sm:$0xff] }
  0x47   : > { %9261 = vmatpush3.msra.mxu0 %v8047_v10  ;;  %9365 = vmatpush3.msra.mxu1 %v8075_v33  ;;  %v8063_v10 = vld [vmem:[%s12530_s3 + $0x110] sm:$0xff] }
  0x48   : > { %9032 = vmatmul.mubr.f32.gmra.mxu0 %v240_v56  ;;  %9262 = vmatprep.subr.mxu0 %v8046_v12  ;;  %v286_v56 = vld [vmem:[%s10337_s6 + $0x1e8] sm:$0xff] }
  0x49   : > { %9034 = vmatprep.mubr.f32.mxu0 %v241_v58  ;;  %9263 = vmatpush3.msra.mxu0 %v8046_v12  ;;  %v8070_v58 = vld [vmem:[%s12530_s3 + $0x148] sm:$0xff]  ;;  %v8083_v12 = vld [vmem:[%s12530_s3 + $0x1b0] sm:$0xff] }
  0x4a   : > { %9264 = vmatprep.subr.mxu0 %v8045_v14  ;;  %9366 = vmatprep.subr.mxu1 %v8074_v38 }
  0x4b   : > { %9265 = vmatpush3.msra.mxu0 %v8045_v14  ;;  %9367 = vmatpush3.msra.mxu1 %v8074_v38  ;;  %v8081_v14 = vld [vmem:[%s12530_s3 + $0x1a0] sm:$0xff] }
  0x4c   : > { %9035 = vmatmul.mubr.f32.gmra.mxu0 %v242_v59  ;;  %9368 = vmatprep.subr.mxu1 %v8073_v43  ;;  %v288_v59 = vld [vmem:[%s10337_s6 + $0x1f8] sm:$0xff] }
  0x4d   : > { %9037 = vmatprep.mubr.f32.mxu0 %v243_v60  ;;  %9369 = vmatpush3.msra.mxu1 %v8073_v43  ;;  %v8069_v60 = vld [vmem:[%s12530_s3 + $0x140] sm:$0xff] }
  0x4e   : > { %9370 = vmatprep.subr.mxu1 %v8072_v48 }
  0x4f   : > { %9371 = vmatpush3.msra.mxu1 %v8072_v48 }
  0x50   : > { %9038 = vmatmul.mubr.f32.gmra.mxu0 %v244_v61  ;;  %9372 = vmatprep.subr.mxu1 %v8071_v53  ;;  %v8068_v61 = vld [vmem:[%s12530_s3 + $0x138] sm:$0xff] }
  0x51   : > { %9040 = vmatprep.mubr.f32.mxu0 %v245_v62  ;;  %9373 = vmatpush3.msra.mxu1 %v8071_v53  ;;  %v8067_v62 = vld [vmem:[%s12530_s3 + $0x130] sm:$0xff] }
  0x52   : > { %9374 = vmatprep.subr.mxu1 %v8070_v58 }
  0x53   : > { %9375 = vmatpush3.msra.mxu1 %v8070_v58 }
  0x54   : > { %9041 = vmatmul.mubr.f32.gmra.mxu0 %v246_v63  ;;  %9376 = vmatprep.subr.mxu1 %v8069_v60  ;;  %v8066_v63 = vld [vmem:[%s12530_s3 + $0x128] sm:$0xff] }
  0x55   : > { %9043 = vmatprep.mubr.f32.mxu0 %v247_v0  ;;  %9377 = vmatpush3.msra.mxu1 %v8069_v60  ;;  %v8065_v0 = vld [vmem:[%s12530_s3 + $0x120] sm:$0xff] }
  0x56   : > { %9378 = vmatprep.subr.mxu1 %v8068_v61 }
  0x57   : > { %9379 = vmatpush3.msra.mxu1 %v8068_v61 }
  0x58   : > { %9044 = vmatmul.mubr.f32.gmra.mxu0 %v248_v1  ;;  %9380 = vmatprep.subr.mxu1 %v8067_v62  ;;  %v8092_v1 = vld [vmem:[%s12530_s3 + $0x1f8] sm:$0xff] }
  0x59   : > { %9046 = vmatprep.mubr.f32.mxu0 %v249_v2  ;;  %9381 = vmatpush3.msra.mxu1 %v8067_v62  ;;  %v8091_v2 = vld [vmem:[%s12530_s3 + $0x1f0] sm:$0xff] }
  0x5a   : > { %9382 = vmatprep.subr.mxu1 %v8066_v63  ;;  %9490 = vmatprep.subr.mxu0 %v8092_v1 }
  0x5b   : > { %9383 = vmatpush3.msra.mxu1 %v8066_v63 }
  0x5c   : > { %9047 = vmatmul.mubr.f32.gmra.mxu0 %v250_v3  ;;  %9384 = vmatprep.subr.mxu1 %v8065_v0  ;;  %v8090_v3 = vld [vmem:[%s12530_s3 + $0x1e8] sm:$0xff] }
  0x5d   : > { %9049 = vmatprep.mubr.f32.mxu0 %v251_v4  ;;  %9385 = vmatpush3.msra.mxu1 %v8065_v0  ;;  %v8089_v4 = vld [vmem:[%s12530_s3 + $0x1e0] sm:$0xff] }
  0x60   : > { %9050 = vmatmul.mubr.f32.gmra.mxu0 %v252_v5  ;;  %v8064_v5 = vld [vmem:[%s12530_s3 + $0x118] sm:$0xff] }
  0x61   : > { %9052 = vmatprep.mubr.f32.mxu0 %v253_v6  ;;  %v8088_v6 = vld [vmem:[%s12530_s3 + $0x1d8] sm:$0xff]  ;;  %9386 = vmatprep.subr.mxu1 %v8064_v5 }
  0x62   : > { %9387 = vmatpush3.msra.mxu1 %v8064_v5  ;;  %v10736_v5 = vld [vmem:[#allocation2 + $0x7f] sm:$0xff] }
  0x63   : > { %9388 = vmatprep.subr.mxu1 %v8063_v10 }
  0x64   : > { %9053 = vmatmul.mubr.f32.gmra.mxu0 %v254_v7  ;;  %v8087_v7 = vld [vmem:[%s12530_s3 + $0x1d0] sm:$0xff]  ;;  %9389 = vmatpush3.msra.mxu1 %v8063_v10 }
  0x65   : > { %9055 = vmatprep.mubr.f32.mxu0 %v255_v8  ;;  %v8086_v8 = vld [vmem:[%s12530_s3 + $0x1c8] sm:$0xff] }
  0x68   : > { %9056 = vmatmul.mubr.f32.gmra.mxu0 %v256_v9  ;;  %v8085_v9 = vld [vmem:[%s12530_s3 + $0x1c0] sm:$0xff] }
  0x69   : > { %9058 = vmatprep.mubr.f32.mxu0 %v257_v11  ;;  %v8084_v11 = vld [vmem:[%s12530_s3 + $0x1b8] sm:$0xff] }
  0x6c   : > { %9059 = vmatmul.mubr.f32.gmra.mxu0 %v258_v13  ;;  %v8082_v13 = vld [vmem:[%s12530_s3 + $0x1a8] sm:$0xff] }
  0x6d   : > { %9061 = vmatprep.mubr.f32.mxu0 %v259_v16  ;;  %v8062_v16 = vld [vmem:[%s12530_s3 + $0x108] sm:$0xff] }
  0x6e   : > { %9390 = vmatprep.subr.mxu1 %v8062_v16 }
  0x6f   : > { %9391 = vmatpush3.msra.mxu1 %v8062_v16 }
  0x70   : > { %9062 = vmatmul.mubr.f32.gmra.mxu0 %v260_v18  ;;  %v8079_v18 = vld [vmem:[%s12530_s3 + $0x190] sm:$0xff]  ;;  %9392 = vmatprep.subr.mxu1 %v8061_v22 }
  0x71   : > { %9064 = vmatprep.mubr.f32.mxu0 %v261_v20  ;;  %v8077_v20 = vld [vmem:[%s12530_s3 + $0x180] sm:$0xff]  ;;  %9393 = vmatpush3.msra.mxu1 %v8061_v22 }
  0x74   : > { %9065 = vmatmul.mubr.f32.gmra.mxu0 %v262_v23 }
  0x75   : > { %9067 = vmatprep.mubr.f32.mxu0 %v263_v25 }
  0x78   : > { %9068 = vmatmul.mubr.f32.gmra.mxu0 %v264_v28 }
  0x79   : > { %9070 = vmatprep.mubr.f32.mxu0 %v265_v30  ;;  %v10687_v30 = vld [vmem:[%s12530_s3 + $0x278] sm:$0xff] }
  0x7a   : > { %9618 = vmatprep.subr.mxu1 %v10687_v30 }
  0x7c   : > { %9071 = vmatmul.mubr.f32.gmra.mxu0 %v266_v31 }
  0x7d   : > { %9073 = vmatprep.mubr.f32.mxu0 %v267_v32 }
  0x80   : > { %9074 = vmatmul.mubr.f32.gmra.mxu0 %v268_v34 }
  0x81   : > { %9076 = vmatprep.mubr.f32.mxu0 %v269_v35 }
  0x84   : > { %9077 = vmatmul.mubr.f32.gmra.mxu0 %v270_v36 }
  0x85   : > { %9079 = vmatprep.mubr.f32.mxu0 %v271_v37 }
  0x88   : > { %9080 = vmatmul.mubr.f32.gmra.mxu0 %v272_v39 }
  0x89   : > { %9082 = vmatprep.mubr.f32.mxu0 %v273_v40 }
  0x8c   : > { %9083 = vmatmul.mubr.f32.gmra.mxu0 %v274_v41 }
  0x8d   : > { %9085 = vmatprep.mubr.f32.mxu0 %v275_v42 }
  0x90   : > { %9086 = vmatmul.mubr.f32.gmra.mxu0 %v276_v44 }
  0x91   : > { %9088 = vmatprep.mubr.f32.mxu0 %v277_v45  ;;  %v10704_v45 = vld [vmem:[#allocation2 + $0x3f] sm:$0xff] }
  0x94   : > { %9089 = vmatmul.mubr.f32.gmra.mxu0 %v278_v46 }
  0x95   : > { %9091 = vmatprep.mubr.f32.mxu0 %v279_v47 }
  0x98   : > { %9092 = vmatmul.mubr.f32.gmra.mxu0 %v280_v49 }
  0x99   : > { %9094 = vmatprep.mubr.f32.mxu0 %v281_v50 }
  0x9c   : > { %9095 = vmatmul.mubr.f32.gmra.mxu0 %v282_v51 }
  0x9d   : > { %9097 = vmatprep.mubr.f32.mxu0 %v283_v52 }
  0xa0   : > { %9098 = vmatmul.mubr.f32.gmra.mxu0 %v284_v54 }
  0xa1   : > { %9100 = vmatprep.mubr.f32.mxu0 %v285_v55 }
  0xa4   : > { %9101 = vmatmul.mubr.f32.gmra.mxu0 %v286_v56 }
  0xa5   : > { %9103 = vmatprep.mubr.f32.mxu0 %v287_v57  ;;  %v10720_v57 = vld [vmem:[#allocation2 + $0x5f] sm:$0xff] }
  0xa8   : > { %9104 = vmatmul.mubr.f32.gmra.mxu0 %v288_v59 }
  0xa9   : > { %9266 = vmatprep.mubr.f32.mxu0 %v10278_v15 }
  0xac   : > { %9267 = vmatmul.mubr.f32.vlgmr.msra.gmra.mxu0 %v10278_v15 }
  0xad   : > { %9269 = vmatprep.mubr.f32.mxu0 %v10278_v15  ;;  %9491 = vmatpush3.msra.mxu0 %v8092_v1 }
  0xae   : > { %9492 = vmatprep.subr.mxu0 %v8091_v2 }
  0xaf   : > { %9493 = vmatpush3.msra.mxu0 %v8091_v2 }
  0xb0   : > { %9270 = vmatmul.mubr.f32.gmra.mxu0 %v10278_v15  ;;  %9494 = vmatprep.subr.mxu0 %v8090_v3 }
  0xb1   : > { %9495 = vmatpush3.msra.mxu0 %v8090_v3 }
  0xb2   : > { %9496 = vmatprep.subr.mxu0 %v8089_v4 }
  0xb3   : > { %9497 = vmatpush3.msra.mxu0 %v8089_v4 }
  0xb4   : > { %9498 = vmatprep.subr.mxu0 %v8088_v6 }
  0xb5   : > { %9499 = vmatpush3.msra.mxu0 %v8088_v6 }
  0xb6   : > { %9500 = vmatprep.subr.mxu0 %v8087_v7 }
  0xb7   : > { %9501 = vmatpush3.msra.mxu0 %v8087_v7 }
  0xb8   : > { %9502 = vmatprep.subr.mxu0 %v8086_v8 }
  0xb9   : > { %9503 = vmatpush3.msra.mxu0 %v8086_v8 }
  0xba   : > { %9504 = vmatprep.subr.mxu0 %v8085_v9 }
  0xbb   : > { %9505 = vmatpush3.msra.mxu0 %v8085_v9 }
  0xbc   : > { %9506 = vmatprep.subr.mxu0 %v8084_v11 }
  0xbd   : > { %9507 = vmatpush3.msra.mxu0 %v8084_v11 }
  0xbe   : > { %9508 = vmatprep.subr.mxu0 %v8083_v12 }
  0xbf   : > { %9509 = vmatpush3.msra.mxu0 %v8083_v12 }
  0xc0   : > { %9510 = vmatprep.subr.mxu0 %v8082_v13 }
  0xc1   : > { %9511 = vmatpush3.msra.mxu0 %v8082_v13 }
  0xc2   : > { %9512 = vmatprep.subr.mxu0 %v8081_v14 }
  0xc3   : > { %9513 = vmatpush3.msra.mxu0 %v8081_v14 }
  0xc4   : > { %9514 = vmatprep.subr.mxu0 %v8080_v17 }
  0xc5   : > { %9515 = vmatpush3.msra.mxu0 %v8080_v17 }
  0xc6   : > { %9516 = vmatprep.subr.mxu0 %v8079_v18 }
  0xc7   : > { %9517 = vmatpush3.msra.mxu0 %v8079_v18  ;;  %v10752_v18 = vld [vmem:[#allocation2 + $0x9f] sm:$0xff] }
  0xc8   : > { %9518 = vmatprep.subr.mxu0 %v8078_v19 }
  0xc9   : > { %9519 = vmatpush3.msra.mxu0 %v8078_v19 }
  0xca   : > { %9520 = vmatprep.subr.mxu0 %v8077_v20 }
  0xcb   : > { %9521 = vmatpush3.msra.mxu0 %v8077_v20 }
  0xec   : > { %v9012_v23 = vpop.f32.mrf.mxu0 }
  0xed   : > { %v384_v24 = vadd.f32 %v9012_v23, %v10677_v21 }
  0xee   : > { %v378_v25 = vpop.f32.mrf.mxu0 }
  0xef   : > { %v698_v26 = vmax.f32 %v384_v24, 0.0  ;;  %v379_v27 = vadd.f32 %v10677_v21, %v378_v25 }
  0xf0   : > { %v9015_v28 = vpop.f32.mrf.mxu0 }
  0xf1   : > { %1861 = vst [vmem:[#allocation2 + $0x30] sm:$0xff] %v698_v26  ;;  %v697_v29 = vmax.f32 %v379_v27, 0.0 }
  0xf2   : > { %v388_v31 = vpop.f32.mrf.mxu0 }
  0xf3   : > { %1860 = vst [vmem:[#allocation2 + $0x28] sm:$0xff] %v697_v29  ;;  %9272 = vmatprep.mubr.f32.mxu0 %v697_v29 }
  0xf4   : > { %v9018_v32 = vpop.f32.mrf.mxu0  ;;  %9273 = vmatmul.mubr.f32.gmra.mxu0 %v698_v26 }
  0xf5   : > { %v404_v33 = vadd.f32 %v9018_v32, %v10677_v21  ;;  %9275 = vmatprep.mubr.f32.mxu0 %v10278_v15  ;;  %v10768_v32 = vld [vmem:[#allocation2 + $0xbf] sm:$0xff] }
  0xf6   : > { %v398_v34 = vpop.f32.mrf.mxu0 }
  0xf7   : > { %v702_v35 = vmax.f32 %v404_v33, 0.0  ;;  %v399_v36 = vadd.f32 %v10677_v21, %v398_v34 }
  0xf8   : > { %v9021_v37 = vpop.f32.mrf.mxu0  ;;  %9276 = vmatmul.mubr.f32.gmra.mxu0 %v10278_v15  ;;  %v10700_v43 = vld [vmem:[#allocation2 + $0x37] sm:$0xff] }
  0xf9   : > { %1865 = vst [vmem:[#allocation2 + $0x50] sm:$0xff] %v702_v35  ;;  %v701_v38 = vmax.f32 %v399_v36, 0.0 }
  0xfa   : > { %v408_v39 = vpop.f32.mrf.mxu0  ;;  %v10694_v40 = vld [vmem:[#allocation2 + $0x27] sm:$0xff]  ;;  %v10696_v41 = vld [vmem:[#allocation2 + $0x2f] sm:$0xff] }
  0xfb   : > { %1864 = vst [vmem:[#allocation2 + $0x48] sm:$0xff] %v701_v38  ;;  %9144 = vmatprep.mubr.f32.mxu1 %v10694_v40  ;;  %9278 = vmatprep.mubr.f32.mxu0 %v701_v38 }
  0xfc   : > { %v9024_v42 = vpop.f32.mrf.mxu0  ;;  %9145 = vmatmul.mubr.f32.gmra.mxu1 %v10696_v41  ;;  %9279 = vmatmul.mubr.f32.gmra.mxu0 %v702_v35 }
  0xfd   : > { %v424_v44 = vadd.f32 %v9024_v42, %v10677_v21  ;;  %9147 = vmatprep.mubr.f32.mxu1 %v10700_v43  ;;  %9281 = vmatprep.mubr.f32.mxu0 %v10278_v15 }
  0xfe   : > { %v418_v46 = vpop.f32.mrf.mxu0 }
  0xff   : > { %v706_v47 = vmax.f32 %v424_v44, 0.0  ;;  %v419_v48 = vadd.f32 %v10677_v21, %v418_v46 }
 0x100   : > { %v9027_v49 = vpop.f32.mrf.mxu0  ;;  %9148 = vmatmul.mubr.f32.gmra.mxu1 %v10704_v45  ;;  %9282 = vmatmul.mubr.f32.gmra.mxu0 %v10278_v15  ;;  %v10716_v55 = vld [vmem:[#allocation2 + $0x57] sm:$0xff] }
 0x101   : > { %1869 = vst [vmem:[#allocation2 + $0x70] sm:$0xff] %v706_v47  ;;  %v705_v50 = vmax.f32 %v419_v48, 0.0  ;;  %v10784_v48 = vld [vmem:[#allocation2 + $0xdf] sm:$0xff] }
 0x102   : > { %v428_v51 = vpop.f32.mrf.mxu0  ;;  %v10710_v52 = vld [vmem:[#allocation2 + $0x47] sm:$0xff]  ;;  %v10712_v53 = vld [vmem:[#allocation2 + $0x4f] sm:$0xff] }
 0x103   : > { %1868 = vst [vmem:[#allocation2 + $0x68] sm:$0xff] %v705_v50  ;;  %9150 = vmatprep.mubr.f32.mxu1 %v10710_v52  ;;  %9284 = vmatprep.mubr.f32.mxu0 %v705_v50 }
 0x104   : > { %v9030_v54 = vpop.f32.mrf.mxu0  ;;  %9151 = vmatmul.mubr.f32.gmra.mxu1 %v10712_v53  ;;  %9285 = vmatmul.mubr.f32.gmra.mxu0 %v706_v47 }
 0x105   : > { %v444_v56 = vadd.f32 %v9030_v54, %v10677_v21  ;;  %9153 = vmatprep.mubr.f32.mxu1 %v10716_v55  ;;  %9287 = vmatprep.mubr.f32.mxu0 %v10278_v15 }
 0x106   : > { %v438_v58 = vpop.f32.mrf.mxu0 }
 0x107   : > { %v710_v59 = vmax.f32 %v444_v56, 0.0  ;;  %v439_v60 = vadd.f32 %v10677_v21, %v438_v58 }
 0x108   : > { %v9033_v61 = vpop.f32.mrf.mxu0  ;;  %9154 = vmatmul.mubr.f32.gmra.mxu1 %v10720_v57  ;;  %9288 = vmatmul.mubr.f32.gmra.mxu0 %v10278_v15  ;;  %v10732_v3 = vld [vmem:[#allocation2 + $0x77] sm:$0xff] }
 0x109   : > { %1873 = vst [vmem:[#allocation2 + $0x90] sm:$0xff] %v710_v59  ;;  %v709_v62 = vmax.f32 %v439_v60, 0.0 }
 0x10a   : > { %v448_v63 = vpop.f32.mrf.mxu0  ;;  %v10726_v0 = vld [vmem:[#allocation2 + $0x67] sm:$0xff]  ;;  %v10728_v1 = vld [vmem:[#allocation2 + $0x6f] sm:$0xff] }
 0x10b   : > { %1872 = vst [vmem:[#allocation2 + $0x88] sm:$0xff] %v709_v62  ;;  %9156 = vmatprep.mubr.f32.mxu1 %v10726_v0  ;;  %9290 = vmatprep.mubr.f32.mxu0 %v709_v62 }
 0x10c   : > { %v9036_v2 = vpop.f32.mrf.mxu0  ;;  %9157 = vmatmul.mubr.f32.gmra.mxu1 %v10728_v1  ;;  %9291 = vmatmul.mubr.f32.gmra.mxu0 %v710_v59 }
 0x10d   : > { %v464_v4 = vadd.f32 %v9036_v2, %v10677_v21  ;;  %9159 = vmatprep.mubr.f32.mxu1 %v10732_v3  ;;  %9293 = vmatprep.mubr.f32.mxu0 %v10278_v15  ;;  %v10800_v2 = vld [vmem:[#allocation2 + $0xff] sm:$0xff] }
 0x10e   : > { %v458_v6 = vpop.f32.mrf.mxu0 }
 0x10f   : > { %v714_v7 = vmax.f32 %v464_v4, 0.0  ;;  %v459_v8 = vadd.f32 %v10677_v21, %v458_v6 }
 0x110   : > { %v9039_v9 = vpop.f32.mrf.mxu0  ;;  %9160 = vmatmul.mubr.f32.gmra.mxu1 %v10736_v5  ;;  %9294 = vmatmul.mubr.f32.gmra.mxu0 %v10278_v15  ;;  %v10748_v16 = vld [vmem:[#allocation2 + $0x97] sm:$0xff] }
 0x111   : > { %1877 = vst [vmem:[#allocation2 + $0xb0] sm:$0xff] %v714_v7  ;;  %v713_v10 = vmax.f32 %v459_v8, 0.0 }
 0x112   : > { %v468_v11 = vpop.f32.mrf.mxu0  ;;  %v10742_v12 = vld [vmem:[#allocation2 + $0x87] sm:$0xff]  ;;  %v10744_v13 = vld [vmem:[#allocation2 + $0x8f] sm:$0xff] }
 0x113   : > { %1876 = vst [vmem:[#allocation2 + $0xa8] sm:$0xff] %v713_v10  ;;  %9162 = vmatprep.mubr.f32.mxu1 %v10742_v12  ;;  %9296 = vmatprep.mubr.f32.mxu0 %v713_v10 }
 0x114   : > { %v9042_v14 = vpop.f32.mrf.mxu0  ;;  %9163 = vmatmul.mubr.f32.gmra.mxu1 %v10744_v13  ;;  %9297 = vmatmul.mubr.f32.gmra.mxu0 %v714_v7 }
 0x115   : > { %v484_v17 = vadd.f32 %v9042_v14, %v10677_v21  ;;  %9165 = vmatprep.mubr.f32.mxu1 %v10748_v16  ;;  %9299 = vmatprep.mubr.f32.mxu0 %v10278_v15 }
 0x116   : > { %v478_v19 = vpop.f32.mrf.mxu0 }
 0x117   : > { %v718_v20 = vmax.f32 %v484_v17, 0.0  ;;  %v479_v22 = vadd.f32 %v10677_v21, %v478_v19 }
 0x118   : > { %v9045_v23 = vpop.f32.mrf.mxu0  ;;  %9166 = vmatmul.mubr.f32.gmra.mxu1 %v10752_v18  ;;  %9300 = vmatmul.mubr.f32.gmra.mxu0 %v10278_v15  ;;  %v10764_v29 = vld [vmem:[#allocation2 + $0xb7] sm:$0xff] }
 0x119   : > { %1881 = vst [vmem:[#allocation2 + $0xd0] sm:$0xff] %v718_v20  ;;  %v717_v24 = vmax.f32 %v479_v22, 0.0  ;;  %v10816_v22 = vld [vmem:[#allocation2 + $0x11f] sm:$0xff] }
 0x11a   : > { %v488_v25 = vpop.f32.mrf.mxu0  ;;  %v10758_v26 = vld [vmem:[#allocation2 + $0xa7] sm:$0xff]  ;;  %v10760_v27 = vld [vmem:[#allocation2 + $0xaf] sm:$0xff] }
 0x11b   : > { %1880 = vst [vmem:[#allocation2 + $0xc8] sm:$0xff] %v717_v24  ;;  %9168 = vmatprep.mubr.f32.mxu1 %v10758_v26  ;;  %9302 = vmatprep.mubr.f32.mxu0 %v717_v24 }
 0x11c   : > { %v9048_v28 = vpop.f32.mrf.mxu0  ;;  %9169 = vmatmul.mubr.f32.gmra.mxu1 %v10760_v27  ;;  %9303 = vmatmul.mubr.f32.gmra.mxu0 %v718_v20 }
 0x11d   : > { %v504_v31 = vadd.f32 %v9048_v28, %v10677_v21  ;;  %9171 = vmatprep.mubr.f32.mxu1 %v10764_v29  ;;  %9305 = vmatprep.mubr.f32.mxu0 %v10278_v15 }
 0x11e   : > { %v498_v33 = vpop.f32.mrf.mxu0 }
 0x11f   : > { %v722_v34 = vmax.f32 %v504_v31, 0.0  ;;  %v499_v35 = vadd.f32 %v10677_v21, %v498_v33 }
 0x120   : > { %v9051_v36 = vpop.f32.mrf.mxu0  ;;  %9172 = vmatmul.mubr.f32.gmra.mxu1 %v10768_v32  ;;  %9306 = vmatmul.mubr.f32.gmra.mxu0 %v10278_v15  ;;  %v10780_v46 = vld [vmem:[#allocation2 + $0xd7] sm:$0xff] }
 0x121   : > { %1885 = vst [vmem:[#allocation2 + $0xf0] sm:$0xff] %v722_v34  ;;  %v721_v37 = vmax.f32 %v499_v35, 0.0 }
 0x122   : > { %v508_v38 = vpop.f32.mrf.mxu0  ;;  %v10774_v39 = vld [vmem:[#allocation2 + $0xc7] sm:$0xff]  ;;  %v10776_v42 = vld [vmem:[#allocation2 + $0xcf] sm:$0xff] }
 0x123   : > { %1884 = vst [vmem:[#allocation2 + $0xe8] sm:$0xff] %v721_v37  ;;  %9174 = vmatprep.mubr.f32.mxu1 %v10774_v39  ;;  %9308 = vmatprep.mubr.f32.mxu0 %v721_v37 }
 0x124   : > { %v9054_v44 = vpop.f32.mrf.mxu0  ;;  %9175 = vmatmul.mubr.f32.gmra.mxu1 %v10776_v42  ;;  %9309 = vmatmul.mubr.f32.gmra.mxu0 %v722_v34 }
 0x125   : > { %v524_v47 = vadd.f32 %v9054_v44, %v10677_v21  ;;  %9177 = vmatprep.mubr.f32.mxu1 %v10780_v46  ;;  %9311 = vmatprep.mubr.f32.mxu0 %v10278_v15  ;;  %v10832_v44 = vld [vmem:[#allocation2 + $0x13f] sm:$0xff] }
 0x126   : > { %v518_v49 = vpop.f32.mrf.mxu0 }
 0x127   : > { %v726_v50 = vmax.f32 %v524_v47, 0.0  ;;  %v519_v51 = vadd.f32 %v10677_v21, %v518_v49 }
 0x128   : > { %v9057_v54 = vpop.f32.mrf.mxu0  ;;  %9178 = vmatmul.mubr.f32.gmra.mxu1 %v10784_v48  ;;  %9312 = vmatmul.mubr.f32.gmra.mxu0 %v10278_v15  ;;  %v10796_v62 = vld [vmem:[#allocation2 + $0xf7] sm:$0xff] }
 0x129   : > { %1889 = vst [vmem:[#allocation2 + $0x110] sm:$0xff] %v726_v50  ;;  %v725_v56 = vmax.f32 %v519_v51, 0.0 }
 0x12a   : > { %v528_v58 = vpop.f32.mrf.mxu0  ;;  %v10790_v59 = vld [vmem:[#allocation2 + $0xe7] sm:$0xff]  ;;  %v10792_v60 = vld [vmem:[#allocation2 + $0xef] sm:$0xff] }
 0x12b   : > { %1888 = vst [vmem:[#allocation2 + $0x108] sm:$0xff] %v725_v56  ;;  %9180 = vmatprep.mubr.f32.mxu1 %v10790_v59  ;;  %9314 = vmatprep.mubr.f32.mxu0 %v725_v56 }
 0x12c   : > { %v9060_v61 = vpop.f32.mrf.mxu0  ;;  %9181 = vmatmul.mubr.f32.gmra.mxu1 %v10792_v60  ;;  %9315 = vmatmul.mubr.f32.gmra.mxu0 %v726_v50 }
 0x12d   : > { %v544_v63 = vadd.f32 %v9060_v61, %v10677_v21  ;;  %9183 = vmatprep.mubr.f32.mxu1 %v10796_v62  ;;  %9317 = vmatprep.mubr.f32.mxu0 %v10278_v15 }
 0x12e   : > { %v538_v4 = vpop.f32.mrf.mxu0 }
 0x12f   : > { %v730_v6 = vmax.f32 %v544_v63, 0.0  ;;  %v539_v7 = vadd.f32 %v10677_v21, %v538_v4 }
 0x130   : > { %v9063_v8 = vpop.f32.mrf.mxu0  ;;  %9184 = vmatmul.mubr.f32.gmra.mxu1 %v10800_v2  ;;  %9318 = vmatmul.mubr.f32.gmra.mxu0 %v10278_v15  ;;  %v10812_v19 = vld [vmem:[#allocation2 + $0x117] sm:$0xff] }
 0x131   : > { %1893 = vst [vmem:[#allocation2 + $0x130] sm:$0xff] %v730_v6  ;;  %v729_v9 = vmax.f32 %v539_v7, 0.0  ;;  %v10848_v7 = vld [vmem:[#allocation2 + $0x15f] sm:$0xff] }
 0x132   : > { %v548_v10 = vpop.f32.mrf.mxu0  ;;  %v10806_v11 = vld [vmem:[#allocation2 + $0x107] sm:$0xff]  ;;  %v10808_v14 = vld [vmem:[#allocation2 + $0x10f] sm:$0xff] }
 0x133   : > { %1892 = vst [vmem:[#allocation2 + $0x128] sm:$0xff] %v729_v9  ;;  %9186 = vmatprep.mubr.f32.mxu1 %v10806_v11  ;;  %9320 = vmatprep.mubr.f32.mxu0 %v729_v9 }
 0x134   : > { %v9066_v17 = vpop.f32.mrf.mxu0  ;;  %9187 = vmatmul.mubr.f32.gmra.mxu1 %v10808_v14  ;;  %9321 = vmatmul.mubr.f32.gmra.mxu0 %v730_v6 }
 0x135   : > { %v564_v20 = vadd.f32 %v9066_v17, %v10677_v21  ;;  %9189 = vmatprep.mubr.f32.mxu1 %v10812_v19  ;;  %9323 = vmatprep.mubr.f32.mxu0 %v10278_v15 }
 0x136   : > { %v558_v23 = vpop.f32.mrf.mxu0 }
 0x137   : > { %v734_v24 = vmax.f32 %v564_v20, 0.0  ;;  %v559_v25 = vadd.f32 %v10677_v21, %v558_v23 }
 0x138   : > { %v9069_v28 = vpop.f32.mrf.mxu0  ;;  %9190 = vmatmul.mubr.f32.gmra.mxu1 %v10816_v22  ;;  %9324 = vmatmul.mubr.f32.gmra.mxu0 %v10278_v15  ;;  %v10828_v37 = vld [vmem:[#allocation2 + $0x137] sm:$0xff] }
 0x139   : > { %1897 = vst [vmem:[#allocation2 + $0x150] sm:$0xff] %v734_v24  ;;  %v733_v31 = vmax.f32 %v559_v25, 0.0 }
 0x13a   : > { %v568_v33 = vpop.f32.mrf.mxu0  ;;  %v10822_v34 = vld [vmem:[#allocation2 + $0x127] sm:$0xff]  ;;  %v10824_v35 = vld [vmem:[#allocation2 + $0x12f] sm:$0xff] }
 0x13b   : > { %1896 = vst [vmem:[#allocation2 + $0x148] sm:$0xff] %v733_v31  ;;  %9192 = vmatprep.mubr.f32.mxu1 %v10822_v34  ;;  %9326 = vmatprep.mubr.f32.mxu0 %v733_v31  ;;  %v10865_v33 = vld [vmem:[%s12530_s3 + $0x2f8] sm:$0xff] }
 0x13c   : > { %v9072_v36 = vpop.f32.mrf.mxu0  ;;  %9193 = vmatmul.mubr.f32.gmra.mxu1 %v10824_v35  ;;  %9327 = vmatmul.mubr.f32.gmra.mxu0 %v734_v24 }
 0x13d   : > { %v584_v38 = vadd.f32 %v9072_v36, %v10677_v21  ;;  %9195 = vmatprep.mubr.f32.mxu1 %v10828_v37  ;;  %9329 = vmatprep.mubr.f32.mxu0 %v10278_v15 }
 0x13e   : > { %v578_v47 = vpop.f32.mrf.mxu0  ;;  %9746 = vmatprep.subr.mxu0 %v10865_v33 }
 0x13f   : > { %v738_v49 = vmax.f32 %v584_v38, 0.0  ;;  %v579_v50 = vadd.f32 %v10677_v21, %v578_v47  ;;  %v10869_v38 = vld [vmem:[#allocation2 + $0x17f] sm:$0xff] }
 0x140   : > { %v9075_v51 = vpop.f32.mrf.mxu0  ;;  %9196 = vmatmul.mubr.f32.gmra.mxu1 %v10832_v44  ;;  %9330 = vmatmul.mubr.f32.gmra.mxu0 %v10278_v15  ;;  %v10844_v4 = vld [vmem:[#allocation2 + $0x157] sm:$0xff] }
 0x141   : > { %1901 = vst [vmem:[#allocation2 + $0x170] sm:$0xff] %v738_v49  ;;  %v737_v54 = vmax.f32 %v579_v50, 0.0 }
 0x142   : > { %v588_v56 = vpop.f32.mrf.mxu0  ;;  %v10838_v58 = vld [vmem:[#allocation2 + $0x147] sm:$0xff]  ;;  %v10840_v61 = vld [vmem:[#allocation2 + $0x14f] sm:$0xff] }
 0x143   : > { %1900 = vst [vmem:[#allocation2 + $0x168] sm:$0xff] %v737_v54  ;;  %9198 = vmatprep.mubr.f32.mxu1 %v10838_v58  ;;  %9332 = vmatprep.mubr.f32.mxu0 %v737_v54 }
 0x144   : > { %v9078_v63 = vpop.f32.mrf.mxu0  ;;  %9199 = vmatmul.mubr.f32.gmra.mxu1 %v10840_v61  ;;  %9333 = vmatmul.mubr.f32.gmra.mxu0 %v738_v49 }
 0x145   : > { %v604_v6 = vadd.f32 %v9078_v63, %v10677_v21  ;;  %9201 = vmatprep.mubr.f32.mxu1 %v10844_v4  ;;  %9335 = vmatprep.mubr.f32.mxu0 %v10278_v15 }
 0x146   : > { %v598_v8 = vpop.f32.mrf.mxu0 }
 0x147   : > { %v742_v9 = vmax.f32 %v604_v6, 0.0  ;;  %v599_v10 = vadd.f32 %v10677_v21, %v598_v8 }
 0x148   : > { %v9081_v17 = vpop.f32.mrf.mxu0  ;;  %9202 = vmatmul.mubr.f32.gmra.mxu1 %v10848_v7  ;;  %9336 = vmatmul.mubr.f32.gmra.mxu0 %v10278_v15  ;;  %v10860_v31 = vld [vmem:[#allocation2 + $0x177] sm:$0xff] }
 0x149   : > { %1905 = vst [vmem:[#allocation2 + $0x190] sm:$0xff] %v742_v9  ;;  %v741_v20 = vmax.f32 %v599_v10, 0.0  ;;  %v10886_v17 = vld [vmem:[#allocation2 + $0x19f] sm:$0xff] }
 0x14a   : > { %v608_v23 = vpop.f32.mrf.mxu0  ;;  %v10854_v24 = vld [vmem:[#allocation2 + $0x167] sm:$0xff]  ;;  %v10856_v25 = vld [vmem:[#allocation2 + $0x16f] sm:$0xff] }
 0x14b   : > { %1904 = vst [vmem:[#allocation2 + $0x188] sm:$0xff] %v741_v20  ;;  %9204 = vmatprep.mubr.f32.mxu1 %v10854_v24  ;;  %9338 = vmatprep.mubr.f32.mxu0 %v741_v20 }
 0x14c   : > { %v9084_v28 = vpop.f32.mrf.mxu0  ;;  %9205 = vmatmul.mubr.f32.gmra.mxu1 %v10856_v25  ;;  %9339 = vmatmul.mubr.f32.gmra.mxu0 %v742_v9 }
 0x14d   : > { %v624_v36 = vadd.f32 %v9084_v28, %v10677_v21  ;;  %9207 = vmatprep.mubr.f32.mxu1 %v10860_v31  ;;  %9341 = vmatprep.mubr.f32.mxu0 %v10278_v15 }
 0x14e   : > { %v618_v47 = vpop.f32.mrf.mxu0 }
 0x14f   : > { %v746_v49 = vmax.f32 %v624_v36, 0.0  ;;  %v619_v50 = vadd.f32 %v10677_v21, %v618_v47 }
 0x150   : > { %v9087_v51 = vpop.f32.mrf.mxu0  ;;  %9208 = vmatmul.mubr.f32.gmra.mxu1 %v10869_v38  ;;  %9342 = vmatmul.mubr.f32.gmra.mxu0 %v10278_v15  ;;  %v10882_v9 = vld [vmem:[#allocation2 + $0x197] sm:$0xff] }
 0x151   : > { %1909 = vst [vmem:[#allocation2 + $0x1b0] sm:$0xff] %v746_v49  ;;  %v745_v54 = vmax.f32 %v619_v50, 0.0 }
 0x152   : > { %v628_v56 = vpop.f32.mrf.mxu0  ;;  %v10876_v63 = vld [vmem:[#allocation2 + $0x187] sm:$0xff]  ;;  %v10878_v6 = vld [vmem:[#allocation2 + $0x18f] sm:$0xff] }
 0x153   : > { %1908 = vst [vmem:[#allocation2 + $0x1a8] sm:$0xff] %v745_v54  ;;  %9210 = vmatprep.mubr.f32.mxu1 %v10876_v63  ;;  %9344 = vmatprep.mubr.f32.mxu0 %v745_v54 }
 0x154   : > { %v9090_v8 = vpop.f32.mrf.mxu0  ;;  %9211 = vmatmul.mubr.f32.gmra.mxu1 %v10878_v6  ;;  %9345 = vmatmul.mubr.f32.gmra.mxu0 %v746_v49 }
 0x155   : > { %v644_v10 = vadd.f32 %v9090_v8, %v10677_v21  ;;  %9213 = vmatprep.mubr.f32.mxu1 %v10882_v9  ;;  %9347 = vmatprep.mubr.f32.mxu0 %v10278_v15 }
 0x156   : > { %v638_v20 = vpop.f32.mrf.mxu0 }
 0x157   : > { %v750_v23 = vmax.f32 %v644_v10, 0.0  ;;  %v639_v28 = vadd.f32 %v10677_v21, %v638_v20  ;;  %v10904_v10 = vld [vmem:[#allocation2] sm:$0xff] }
 0x158   : > { %v9093_v36 = vpop.f32.mrf.mxu0  ;;  %9214 = vmatmul.mubr.f32.gmra.mxu1 %v10886_v17  ;;  %9348 = vmatmul.mubr.f32.gmra.mxu0 %v10278_v15  ;;  %v10898_v56 = vld [vmem:[#allocation2 + $0x1b7] sm:$0xff]  ;;  %v10902_v15 = vld [vmem:[#allocation2 + $0x1bf] sm:$0xff] }
 0x159   : > { %1913 = vst [vmem:[#allocation2 + $0x1d0] sm:$0xff] %v750_v23  ;;  %v749_v47 = vmax.f32 %v639_v28, 0.0  ;;  %12542 = vst [vmem:[#allocation6_spill] sm:$0xff] %v10898_v56 }
 0x15a   : > { %v648_v49 = vpop.f32.mrf.mxu0  ;;  %v10892_v50 = vld [vmem:[#allocation2 + $0x1a7] sm:$0xff]  ;;  %v10894_v51 = vld [vmem:[#allocation2 + $0x1af] sm:$0xff]  ;;  %12543 = vst [vmem:[#allocation7_spill] sm:$0xff] %v10902_v15 }
 0x15b   : > { %12540 = vst [vmem:[#allocation4_spill] sm:$0xff] %v10892_v50  ;;  %12541 = vst [vmem:[#allocation5_spill] sm:$0xff] %v10894_v51  ;;  %9216 = vmatprep.mubr.f32.mxu1 %v10892_v50  ;;  %9350 = vmatprep.mubr.f32.mxu0 %v749_v47 }
 0x15c   : > { %1912 = vst [vmem:[#allocation2 + $0x1c8] sm:$0xff] %v749_v47  ;;  %v9096_v54 = vpop.f32.mrf.mxu0  ;;  %9217 = vmatmul.mubr.f32.gmra.mxu1 %v10894_v51  ;;  %9351 = vmatmul.mubr.f32.gmra.mxu0 %v750_v23 }
 0x15d   : > { %v664_v8 = vadd.f32 %v9096_v54, %v10677_v21  ;;  %9219 = vmatprep.mubr.f32.mxu1 %v10898_v56  ;;  %9353 = vmatprep.mubr.f32.mxu0 %v10904_v10 }
 0x15e   : > { %v658_v20 = vpop.f32.mrf.mxu0 }
 0x15f   : > { %v754_v28 = vmax.f32 %v664_v8, 0.0  ;;  %v659_v36 = vadd.f32 %v10677_v21, %v658_v20 }
 0x160   : > { %9220 = vmatmul.mubr.f32.gmra.mxu1 %v10902_v15  ;;  %9354 = vmatmul.mubr.f32.gmra.mxu0 %v10904_v10  ;;  %v9099_v47 = vpop.f32.mrf.mxu0  ;;  %v10916_v8 = vld [vmem:[#allocation2 + $0x1d7] sm:$0xff] }
 0x161   : > { %1917 = vst [vmem:[#allocation2 + $0x1f0] sm:$0xff] %v754_v28  ;;  %v753_v23 = vmax.f32 %v659_v36, 0.0  ;;  %12546 = vst [vmem:[#allocation10_spill] sm:$0xff] %v10916_v8  ;;  %v10919_v47 = vld [vmem:[#allocation2 + $0x1df] sm:$0xff] }
 0x162   : > { %v668_v56 = vpop.f32.mrf.mxu0 }
 0x163   : > { %v10910_v49 = vld [vmem:[#allocation2 + $0x1c7] sm:$0xff]  ;;  %v10912_v54 = vld [vmem:[#allocation2 + $0x1cf] sm:$0xff]  ;;  %1916 = vst [vmem:[#allocation2 + $0x1e8] sm:$0xff] %v753_v23  ;;  %9356 = vmatprep.mubr.f32.mxu0 %v753_v23 }
 0x164   : > { %12544 = vst [vmem:[#allocation8_spill] sm:$0xff] %v10910_v49  ;;  %12545 = vst [vmem:[#allocation9_spill] sm:$0xff] %v10912_v54  ;;  %9222 = vmatprep.mubr.f32.mxu1 %v10910_v49  ;;  %9357 = vmatmul.mubr.f32.gmra.mxu0 %v754_v28  ;;  %v9102_v20 = vpop.f32.mrf.mxu0 }
 0x165   : > { %9223 = vmatmul.mubr.f32.gmra.mxu1 %v10912_v54  ;;  %9359 = vmatprep.mubr.f32.mxu0 %v10904_v10  ;;  %v684_v36 = vadd.f32 %v9102_v20, %v10677_v21  ;;  %v9140_v54 = vpop.f32.mrf.mxu1 }
 0x166   : > { %9225 = vmatprep.mubr.f32.mxu1 %v10916_v8  ;;  %v678_v15 = vpop.f32.mrf.mxu0 }
 0x167   : > { %v758_v56 = vmax.f32 %v684_v36, 0.0  ;;  %v679_v51 = vadd.f32 %v10677_v21, %v678_v15  ;;  %v10936_v20 = vpop.f32.mrf.mxu1  ;;  %v3111_v36 = vld [vmem:[#allocation2 + $0x9] sm:$0xff] }
 0x168   : > { %9360 = vmatmul.mubr.f32.gmra.mxu0 %v10904_v10  ;;  %v9105_v23 = vpop.f32.mrf.mxu0  ;;  %v10933_v21 = vld [vmem:[#allocation2 + $0x1f7] sm:$0xff] }
 0x169   : > { %9226 = vmatmul.mubr.f32.gmra.mxu1 %v10919_v47  ;;  %9522 = vmatprep.mubr.f32.mxu0 %v10694_v40  ;;  %1921 = vst [vmem:[#allocation2 + $0x210] sm:$0xff] %v758_v56  ;;  %v757_v28 = vmax.f32 %v679_v51, 0.0  ;;  %v8123_v40 = vld [vmem:[%s12530_s3 + $0x2f0] sm:$0xff]  ;;  %v10942_v51 = vld [vmem:[#allocation2 + $0x1ff] sm:$0xff] }
 0x16a   : > { %v10927_v8 = vld [vmem:[#allocation2 + $0x1e7] sm:$0xff]  ;;  %v10929_v49 = vld [vmem:[#allocation2 + $0x1ef] sm:$0xff]  ;;  %v688_v50 = vpop.f32.mrf.mxu0 }
 0x16b   : > { %9228 = vmatprep.mubr.f32.mxu1 %v10927_v8  ;;  %1920 = vst [vmem:[#allocation2 + $0x208] sm:$0xff] %v757_v28  ;;  %v8122_v28 = vld [vmem:[%s12530_s3 + $0x2e8] sm:$0xff] }
 0x16c   : > { %9523 = vmatmul.mubr.f32.vlgmr.msra.gmra.mxu0 %v10696_v41  ;;  %v9268_v15 = vpop.f32.mrf.mxu0  ;;  %v9143_v41 = vpop.f32.mrf.mxu1 }
 0x16d   : > { %9229 = vmatmul.mubr.f32.gmra.mxu1 %v10929_v49  ;;  %9525 = vmatprep.mubr.f32.mxu0 %v10700_v43  ;;  %v10945_v50 = vadd.f32 %v9268_v15, %v9140_v54  ;;  %v3112_v43 = vld [vmem:[#allocation2 + $0x11] sm:$0xff]  ;;  %v3113_v15 = vld [vmem:[#allocation2 + $0x19] sm:$0xff] }
 0x16e   : > { %9231 = vmatprep.mubr.f32.mxu1 %v10933_v21  ;;  %v10947_v56 = vpop.f32.mrf.mxu0  ;;  %9747 = vmatpush3.msra.mxu0 %v10865_v33  ;;  %v8107_v33 = vld [vmem:[%s12530_s3 + $0x270] sm:$0xff] }
 0x16f   : > { %12547 = vst [vmem:[#allocation11_spill] sm:$0xff] %v10945_v50  ;;  %12548 = vst [vmem:[#allocation12_spill] sm:$0xff] %v10947_v56  ;;  %9748 = vmatprep.subr.mxu0 %v8123_v40 }
 0x170   : > { %9526 = vmatmul.mubr.f32.gmra.mxu0 %v10704_v45  ;;  %v9271_v23 = vpop.f32.mrf.mxu0  ;;  %v3114_v45 = vld [vmem:[#allocation2 + $0x21] sm:$0xff] }
 0x171   : > { %9232 = vmatmul.mubr.f32.gmra.mxu1 %v10942_v51  ;;  %9528 = vmatprep.mubr.f32.mxu0 %v10710_v52  ;;  %v10956_v54 = vadd.f32 %v9271_v23, %v9143_v41  ;;  %v8106_v52 = vld [vmem:[%s12530_s3 + $0x268] sm:$0xff]  ;;  %v8104_v41 = vld [vmem:[%s12530_s3 + $0x258] sm:$0xff]  ;;  %v8119_v23 = vld [vmem:[%s12530_s3 + $0x2d0] sm:$0xff] }
 0x172   : > { %9394 = vmatprep.mubr.f32.mxu1 %v3111_v36  ;;  %9749 = vmatpush3.msra.mxu0 %v8123_v40  ;;  %v8121_v40 = vld [vmem:[%s12530_s3 + $0x2e0] sm:$0xff]  ;;  %v10970_v36 = vld [vmem:[#allocation2 + $0x29] sm:$0xff] }
 0x173   : > { %12549 = vst [vmem:[#allocation13_spill] sm:$0xff] %v10956_v54  ;;  %9750 = vmatprep.subr.mxu0 %v8122_v28 }
 0x174   : > { %9529 = vmatmul.mubr.f32.gmra.mxu0 %v10712_v53  ;;  %v10977_v53 = vld [vmem:[#allocation2 + $0x31] sm:$0xff] }
 0x175   : > { %9395 = vmatmul.mubr.f32.vlgmr.msra.gmra.mxu1 %v3112_v43  ;;  %9531 = vmatprep.mubr.f32.mxu0 %v10716_v55  ;;  %v8105_v55 = vld [vmem:[%s12530_s3 + $0x260] sm:$0xff]  ;;  %v8103_v43 = vld [vmem:[%s12530_s3 + $0x250] sm:$0xff] }
 0x176   : > { %9619 = vmatpush3.msra.mxu1 %v10687_v30  ;;  %9397 = vmatprep.mubr.f32.mxu1 %v3113_v15  ;;  %v10975_v30 = vld [vmem:[#allocation2 + $0x39] sm:$0xff]  ;;  %v8102_v15 = vld [vmem:[%s12530_s3 + $0x248] sm:$0xff] }
 0x177   : > { %9620 = vmatprep.subr.mxu1 %v8107_v33  ;;  %9751 = vmatpush3.msra.mxu0 %v8122_v28  ;;  %v11005_v28 = vld [vmem:[#allocation2 + $0x51] sm:$0xff] }
 0x178   : > { %9621 = vmatpush3.msra.mxu1 %v8107_v33  ;;  %9532 = vmatmul.mubr.f32.gmra.mxu0 %v10720_v57  ;;  %v8120_v57 = vld [vmem:[%s12530_s3 + $0x2d8] sm:$0xff]  ;;  %v8117_v33 = vld [vmem:[%s12530_s3 + $0x2c0] sm:$0xff] }
 0x179   : > { %9398 = vmatmul.mubr.f32.gmra.mxu1 %v3114_v45  ;;  %9534 = vmatprep.mubr.f32.mxu0 %v10726_v0  ;;  %v10989_v0 = vld [vmem:[#allocation2 + $0x41] sm:$0xff]  ;;  %v11033_v45 = vld [vmem:[#allocation2 + $0x71] sm:$0xff] }
 0x17a   : > { %9400 = vmatprep.mubr.f32.mxu1 %v10970_v36  ;;  %9622 = vmatprep.subr.mxu1 %v8106_v52 }
 0x17b   : > { %9752 = vmatprep.subr.mxu0 %v8121_v40  ;;  %9623 = vmatpush3.msra.mxu1 %v8106_v52  ;;  %v8101_v52 = vld [vmem:[%s12530_s3 + $0x240] sm:$0xff] }
 0x17c   : > { %9753 = vmatpush3.msra.mxu0 %v8121_v40  ;;  %9624 = vmatprep.subr.mxu1 %v8105_v55  ;;  %v8100_v40 = vld [vmem:[%s12530_s3 + $0x238] sm:$0xff] }
 0x17d   : > { %9401 = vmatmul.mubr.f32.gmra.mxu1 %v10977_v53  ;;  %9535 = vmatmul.mubr.f32.gmra.mxu0 %v10728_v1  ;;  %v10998_v1 = vld [vmem:[#allocation2 + $0x49] sm:$0xff] }
 0x17e   : > { %9403 = vmatprep.mubr.f32.mxu1 %v10975_v30  ;;  %9537 = vmatprep.mubr.f32.mxu0 %v10732_v3  ;;  %v11003_v3 = vld [vmem:[#allocation2 + $0x59] sm:$0xff] }
 0x17f   : > { %9754 = vmatprep.subr.mxu0 %v8120_v57  ;;  %9625 = vmatpush3.msra.mxu1 %v8105_v55  ;;  %v8115_v55 = vld [vmem:[%s12530_s3 + $0x2b0] sm:$0xff] }
 0x180   : > { %9755 = vmatpush3.msra.mxu0 %v8120_v57  ;;  %9626 = vmatprep.subr.mxu1 %v8104_v41  ;;  %v11061_v57 = vld [vmem:[#allocation2 + $0x91] sm:$0xff] }
 0x181   : > { %9404 = vmatmul.mubr.f32.gmra.mxu1 %v10989_v0  ;;  %9538 = vmatmul.mubr.f32.gmra.mxu0 %v10736_v5  ;;  %v8118_v5 = vld [vmem:[%s12530_s3 + $0x2c8] sm:$0xff] }
 0x182   : > { %9406 = vmatprep.mubr.f32.mxu1 %v10998_v1  ;;  %9540 = vmatprep.mubr.f32.mxu0 %v10742_v12  ;;  %v11017_v12 = vld [vmem:[#allocation2 + $0x61] sm:$0xff] }
 0x183   : > { %9756 = vmatprep.subr.mxu0 %v8119_v23  ;;  %9627 = vmatpush3.msra.mxu1 %v8104_v41  ;;  %v8099_v41 = vld [vmem:[%s12530_s3 + $0x230] sm:$0xff] }
 0x184   : > { %9757 = vmatpush3.msra.mxu0 %v8119_v23  ;;  %9628 = vmatprep.subr.mxu1 %v8103_v43  ;;  %v8098_v23 = vld [vmem:[%s12530_s3 + $0x228] sm:$0xff] }
 0x185   : > { %9407 = vmatmul.mubr.f32.gmra.mxu1 %v11005_v28  ;;  %9541 = vmatmul.mubr.f32.gmra.mxu0 %v10744_v13  ;;  %v11026_v13 = vld [vmem:[#allocation2 + $0x69] sm:$0xff] }
 0x186   : > { %9409 = vmatprep.mubr.f32.mxu1 %v11003_v3  ;;  %9543 = vmatprep.mubr.f32.mxu0 %v10748_v16  ;;  %v11031_v16 = vld [vmem:[#allocation2 + $0x79] sm:$0xff] }
 0x187   : > { %9758 = vmatprep.subr.mxu0 %v8118_v5  ;;  %9629 = vmatpush3.msra.mxu1 %v8103_v43  ;;  %v8113_v43 = vld [vmem:[%s12530_s3 + $0x2a0] sm:$0xff] }
 0x188   : > { %9759 = vmatpush3.msra.mxu0 %v8118_v5  ;;  %9630 = vmatprep.subr.mxu1 %v8102_v15  ;;  %v11089_v5 = vld [vmem:[#allocation2 + $0xb1] sm:$0xff] }
 0x189   : > { %9410 = vmatmul.mubr.f32.gmra.mxu1 %v11017_v12  ;;  %9544 = vmatmul.mubr.f32.gmra.mxu0 %v10752_v18  ;;  %v8116_v18 = vld [vmem:[%s12530_s3 + $0x2b8] sm:$0xff] }
 0x18a   : > { %9412 = vmatprep.mubr.f32.mxu1 %v11026_v13  ;;  %9546 = vmatprep.mubr.f32.mxu0 %v10758_v26  ;;  %v11045_v26 = vld [vmem:[#allocation2 + $0x81] sm:$0xff] }
 0x18b   : > { %9760 = vmatprep.subr.mxu0 %v8117_v33  ;;  %9631 = vmatpush3.msra.mxu1 %v8102_v15  ;;  %v8097_v15 = vld [vmem:[%s12530_s3 + $0x220] sm:$0xff] }
 0x18c   : > { %9761 = vmatpush3.msra.mxu0 %v8117_v33  ;;  %9632 = vmatprep.subr.mxu1 %v8101_v52  ;;  %v8096_v33 = vld [vmem:[%s12530_s3 + $0x218] sm:$0xff] }
 0x18d   : > { %9413 = vmatmul.mubr.f32.gmra.mxu1 %v11033_v45  ;;  %9547 = vmatmul.mubr.f32.gmra.mxu0 %v10760_v27  ;;  %v11054_v27 = vld [vmem:[#allocation2 + $0x89] sm:$0xff] }
 0x18e   : > { %9415 = vmatprep.mubr.f32.mxu1 %v11031_v16  ;;  %9549 = vmatprep.mubr.f32.mxu0 %v10764_v29  ;;  %v11059_v29 = vld [vmem:[#allocation2 + $0x99] sm:$0xff] }
 0x18f   : > { %9762 = vmatprep.subr.mxu0 %v8116_v18  ;;  %9633 = vmatpush3.msra.mxu1 %v8101_v52  ;;  %v8111_v52 = vld [vmem:[%s12530_s3 + $0x290] sm:$0xff] }
 0x190   : > { %9763 = vmatpush3.msra.mxu0 %v8116_v18  ;;  %9634 = vmatprep.subr.mxu1 %v8100_v40  ;;  %v11117_v18 = vld [vmem:[#allocation2 + $0xd1] sm:$0xff] }
 0x191   : > { %9416 = vmatmul.mubr.f32.gmra.mxu1 %v11045_v26  ;;  %9550 = vmatmul.mubr.f32.gmra.mxu0 %v10768_v32  ;;  %v8114_v32 = vld [vmem:[%s12530_s3 + $0x2a8] sm:$0xff] }
 0x192   : > { %9418 = vmatprep.mubr.f32.mxu1 %v11054_v27  ;;  %9552 = vmatprep.mubr.f32.mxu0 %v10774_v39  ;;  %v11073_v39 = vld [vmem:[#allocation2 + $0xa1] sm:$0xff] }
 0x193   : > { %9764 = vmatprep.subr.mxu0 %v8115_v55  ;;  %9635 = vmatpush3.msra.mxu1 %v8100_v40  ;;  %v8095_v40 = vld [vmem:[%s12530_s3 + $0x210] sm:$0xff] }
 0x194   : > { %9765 = vmatpush3.msra.mxu0 %v8115_v55  ;;  %9636 = vmatprep.subr.mxu1 %v8099_v41  ;;  %v8094_v55 = vld [vmem:[%s12530_s3 + $0x208] sm:$0xff] }
 0x195   : > { %9419 = vmatmul.mubr.f32.gmra.mxu1 %v11061_v57  ;;  %9553 = vmatmul.mubr.f32.gmra.mxu0 %v10776_v42  ;;  %v11082_v42 = vld [vmem:[#allocation2 + $0xa9] sm:$0xff] }
 0x196   : > { %9421 = vmatprep.mubr.f32.mxu1 %v11059_v29  ;;  %9555 = vmatprep.mubr.f32.mxu0 %v10780_v46  ;;  %v11087_v46 = vld [vmem:[#allocation2 + $0xb9] sm:$0xff] }
 0x197   : > { %9766 = vmatprep.subr.mxu0 %v8114_v32  ;;  %9637 = vmatpush3.msra.mxu1 %v8099_v41  ;;  %v8109_v41 = vld [vmem:[%s12530_s3 + $0x280] sm:$0xff] }
 0x198   : > { %9767 = vmatpush3.msra.mxu0 %v8114_v32  ;;  %9638 = vmatprep.subr.mxu1 %v8098_v23  ;;  %v11145_v32 = vld [vmem:[#allocation2 + $0xf1] sm:$0xff] }
 0x199   : > { %9422 = vmatmul.mubr.f32.gmra.mxu1 %v11073_v39  ;;  %9556 = vmatmul.mubr.f32.gmra.mxu0 %v10784_v48  ;;  %v8112_v48 = vld [vmem:[%s12530_s3 + $0x298] sm:$0xff] }
 0x19a   : > { %9424 = vmatprep.mubr.f32.mxu1 %v11082_v42  ;;  %9558 = vmatprep.mubr.f32.mxu0 %v10790_v59  ;;  %v11101_v59 = vld [vmem:[#allocation2 + $0xc1] sm:$0xff] }
 0x19b   : > { %9768 = vmatprep.subr.mxu0 %v8113_v43  ;;  %9639 = vmatpush3.msra.mxu1 %v8098_v23  ;;  %v8093_v23 = vld [vmem:[%s12530_s3 + $0x200] sm:$0xff] }
 0x19c   : > { %9769 = vmatpush3.msra.mxu0 %v8113_v43  ;;  %9640 = vmatprep.subr.mxu1 %v8097_v15  ;;  %v11162_v43 = vld [vmem:[#allocation2 + $0x109] sm:$0xff] }
 0x19d   : > { %9425 = vmatmul.mubr.f32.gmra.mxu1 %v11089_v5  ;;  %9559 = vmatmul.mubr.f32.gmra.mxu0 %v10792_v60  ;;  %v11110_v60 = vld [vmem:[#allocation2 + $0xc9] sm:$0xff] }
 0x19e   : > { %9427 = vmatprep.mubr.f32.mxu1 %v11087_v46  ;;  %9561 = vmatprep.mubr.f32.mxu0 %v10796_v62  ;;  %v11115_v62 = vld [vmem:[#allocation2 + $0xd9] sm:$0xff] }
 0x19f   : > { %9770 = vmatprep.subr.mxu0 %v8112_v48  ;;  %9641 = vmatpush3.msra.mxu1 %v8097_v15  ;;  %v11164_v15 = vpop.f32.mrf.mxu0 }
 0x1a0   : > { %9771 = vmatpush3.msra.mxu0 %v8112_v48  ;;  %9642 = vmatprep.subr.mxu1 %v8096_v33  ;;  %12550 = vst [vmem:[#allocation14_spill] sm:$0xff] %v11164_v15 }
 0x1a1   : > { %9428 = vmatmul.mubr.f32.gmra.mxu1 %v11101_v59  ;;  %9562 = vmatmul.mubr.f32.gmra.mxu0 %v10800_v2  ;;  %v8110_v2 = vld [vmem:[%s12530_s3 + $0x288] sm:$0xff] }
 0x1a2   : > { %9430 = vmatprep.mubr.f32.mxu1 %v11110_v60  ;;  %9564 = vmatprep.mubr.f32.mxu0 %v10806_v11  ;;  %v11129_v11 = vld [vmem:[#allocation2 + $0xe1] sm:$0xff] }
 0x1a3   : > { %9772 = vmatprep.subr.mxu0 %v8111_v52  ;;  %9643 = vmatpush3.msra.mxu1 %v8096_v33  ;;  %v11178_v33 = vld [vmem:[#allocation2 + $0x121] sm:$0xff] }
 0x1a4   : > { %9773 = vmatpush3.msra.mxu0 %v8111_v52  ;;  %9644 = vmatprep.subr.mxu1 %v8095_v40 }
 0x1a5   : > { %9431 = vmatmul.mubr.f32.gmra.mxu1 %v11117_v18  ;;  %9565 = vmatmul.mubr.f32.gmra.mxu0 %v10808_v14  ;;  %v11138_v14 = vld [vmem:[#allocation2 + $0xe9] sm:$0xff] }
 0x1a6   : > { %9433 = vmatprep.mubr.f32.mxu1 %v11115_v62  ;;  %9567 = vmatprep.mubr.f32.mxu0 %v10812_v19  ;;  %v11143_v19 = vld [vmem:[#allocation2 + $0xf9] sm:$0xff] }
 0x1a7   : > { %9774 = vmatprep.subr.mxu0 %v8110_v2  ;;  %9645 = vmatpush3.msra.mxu1 %v8095_v40  ;;  %v11186_v40 = vpop.f32.mrf.mxu1 }
 0x1a8   : > { %9775 = vmatpush3.msra.mxu0 %v8110_v2  ;;  %9646 = vmatprep.subr.mxu1 %v8094_v55  ;;  %12551 = vst [vmem:[#allocation15_spill] sm:$0xff] %v11186_v40  ;;  %v3151_v40 = vld [vmem:[#allocation2 + $0x149] sm:$0xff] }
 0x1a9   : > { %9434 = vmatmul.mubr.f32.gmra.mxu1 %v11129_v11  ;;  %9568 = vmatmul.mubr.f32.gmra.mxu0 %v10816_v22  ;;  %v11154_v22 = vld [vmem:[#allocation2 + $0x101] sm:$0xff] }
 0x1aa   : > { %9436 = vmatprep.mubr.f32.mxu1 %v11138_v14  ;;  %9570 = vmatprep.mubr.f32.mxu0 %v10822_v34  ;;  %v11159_v34 = vld [vmem:[%s12530_s3 + $0x378] sm:$0xff] }
 0x1ab   : > { %9776 = vmatprep.subr.mxu0 %v8109_v41  ;;  %9647 = vmatpush3.msra.mxu1 %v8094_v55  ;;  %v3148_v55 = vld [vmem:[#allocation2 + $0x131] sm:$0xff] }
 0x1ac   : > { %9777 = vmatpush3.msra.mxu0 %v8109_v41  ;;  %9648 = vmatprep.subr.mxu1 %v8093_v23 }
 0x1ad   : > { %9437 = vmatmul.mubr.f32.gmra.mxu1 %v11145_v32  ;;  %9571 = vmatmul.mubr.f32.gmra.mxu0 %v10824_v35  ;;  %v11169_v35 = vld [vmem:[#allocation2 + $0x119] sm:$0xff] }
 0x1ae   : > { %9439 = vmatprep.mubr.f32.mxu1 %v11143_v19  ;;  %9573 = vmatprep.mubr.f32.mxu0 %v10828_v37  ;;  %v11172_v37 = vld [vmem:[#allocation2 + $0x111] sm:$0xff] }
 0x1af   : > { %9649 = vmatpush3.msra.mxu1 %v8093_v23 }
 0x1b0   : > { %9874 = vmatprep.subr.mxu1 %v11159_v34 }
 0x1b1   : > { %9440 = vmatmul.mubr.f32.gmra.mxu1 %v11154_v22  ;;  %9574 = vmatmul.mubr.f32.gmra.mxu0 %v10832_v44 }
 0x1b2   : > { %9442 = vmatprep.mubr.f32.mxu1 %v11162_v43  ;;  %9576 = vmatprep.mubr.f32.mxu0 %v10838_v58  ;;  %v11181_v58 = vld [vmem:[#allocation2 + $0x129] sm:$0xff] }
 0x1b4   : > { %v9274_v48 = vpop.f32.mrf.mxu0 }
 0x1b5   : > { %9443 = vmatmul.mubr.f32.gmra.mxu1 %v11172_v37  ;;  %9577 = vmatmul.mubr.f32.gmra.mxu0 %v10840_v61  ;;  %v3149_v61 = vld [vmem:[#allocation2 + $0x139] sm:$0xff] }
 0x1b6   : > { %9445 = vmatprep.mubr.f32.mxu1 %v11169_v35  ;;  %9579 = vmatprep.mubr.f32.mxu0 %v10844_v4  ;;  %v2620_v44 = vpop.f32.mrf.mxu0 }
 0x1b8   : > { %v9277_v52 = vpop.f32.mrf.mxu0 }
 0x1b9   : > { %9446 = vmatmul.mubr.f32.gmra.mxu1 %v11178_v33  ;;  %9580 = vmatmul.mubr.f32.gmra.mxu0 %v10848_v7 }
 0x1ba   : > { %9448 = vmatprep.mubr.f32.mxu1 %v11181_v58  ;;  %9582 = vmatprep.mubr.f32.mxu0 %v10854_v24  ;;  %v2630_v2 = vpop.f32.mrf.mxu0  ;;  %v3150_v24 = vld [vmem:[#allocation2 + $0x141] sm:$0xff] }
 0x1bc   : > { %v9146_v4 = vpop.f32.mrf.mxu1  ;;  %v9280_v41 = vpop.f32.mrf.mxu0 }
 0x1bd   : > { %9449 = vmatmul.mubr.f32.gmra.mxu1 %v3148_v55  ;;  %9583 = vmatmul.mubr.f32.gmra.mxu0 %v10856_v25  ;;  %v11189_v23 = vadd.f32 %v9274_v48, %v9146_v4  ;;  %v3153_v48 = vld [vmem:[#allocation2 + $0x159] sm:$0xff]  ;;  %v3152_v4 = vld [vmem:[#allocation2 + $0x151] sm:$0xff] }
 0x1be   : > { %9451 = vmatprep.mubr.f32.mxu1 %v3149_v61  ;;  %9585 = vmatprep.mubr.f32.mxu0 %v10860_v31  ;;  %v2090_v7 = vpop.f32.mrf.mxu1  ;;  %v2640_v54 = vpop.f32.mrf.mxu0 }
 0x1bf   : > { %v11192_v15 = vadd.f32 %v2620_v44, %v2090_v7 }
 0x1c0   : > { %v9149_v50 = vpop.f32.mrf.mxu1  ;;  %v9283_v56 = vpop.f32.mrf.mxu0 }
 0x1c1   : > { %9452 = vmatmul.mubr.f32.gmra.mxu1 %v3150_v24  ;;  %9586 = vmatmul.mubr.f32.gmra.mxu0 %v10869_v38  ;;  %v11195_v55 = vadd.f32 %v9277_v52, %v9149_v50 }
 0x1c2   : > { %9454 = vmatprep.mubr.f32.mxu1 %v3151_v40  ;;  %9588 = vmatprep.mubr.f32.mxu0 %v10876_v63  ;;  %v2100_v25 = vpop.f32.mrf.mxu1  ;;  %v2650_v61 = vpop.f32.mrf.mxu0  ;;  %v3154_v63 = vld [vmem:[#allocation2 + $0x161] sm:$0xff] }
 0x1c3   : > { %v11198_v31 = vadd.f32 %v2630_v2, %v2100_v25  ;;  %v3155_v2 = vld [vmem:[#allocation2 + $0x169] sm:$0xff] }
 0x1c4   : > { %v9152_v44 = vpop.f32.mrf.mxu1  ;;  %v9286_v7 = vpop.f32.mrf.mxu0 }
 0x1c5   : > { %12552 = vst [vmem:[#allocation16_spill] sm:$0xff] %v11198_v31  ;;  %9455 = vmatmul.mubr.f32.gmra.mxu1 %v3152_v4  ;;  %9589 = vmatmul.mubr.f32.gmra.mxu0 %v10878_v6  ;;  %v11201_v24 = vadd.f32 %v9280_v41, %v9152_v44  ;;  %v12556_v6 = vld [vmem:[#allocation4_spill] sm:$0xff]  ;;  %v12565_v31 = vld [vmem:[#allocation9_spill] sm:$0xff] }
 0x1c6   : > { %9457 = vmatprep.mubr.f32.mxu1 %v3153_v48  ;;  %9591 = vmatprep.mubr.f32.mxu0 %v10882_v9  ;;  %v2110_v38 = vpop.f32.mrf.mxu1  ;;  %v2660_v50 = vpop.f32.mrf.mxu0  ;;  %v3157_v48 = vld [vmem:[#allocation2 + $0x179] sm:$0xff] }
 0x1c7   : > { %12553 = vst [vmem:[#allocation17_spill] sm:$0xff] %v11201_v24  ;;  %v11204_v52 = vadd.f32 %v2640_v54, %v2110_v38  ;;  %v3156_v24 = vld [vmem:[#allocation2 + $0x171] sm:$0xff] }
 0x1c8   : > { %v9155_v40 = vpop.f32.mrf.mxu1  ;;  %v9289_v25 = vpop.f32.mrf.mxu0 }
 0x1c9   : > { %12554 = vst [vmem:[#allocation18_spill] sm:$0xff] %v11204_v52  ;;  %9458 = vmatmul.mubr.f32.gmra.mxu1 %v3154_v63  ;;  %9592 = vmatmul.mubr.f32.gmra.mxu0 %v10886_v17  ;;  %v11207_v4 = vadd.f32 %v9283_v56, %v9155_v40  ;;  %v12558_v52 = vld [vmem:[#allocation5_spill] sm:$0xff]  ;;  %v12560_v17 = vld [vmem:[#allocation6_spill] sm:$0xff] }
 0x1ca   : > { %9460 = vmatprep.mubr.f32.mxu1 %v3155_v2  ;;  %9594 = vmatprep.mubr.f32.mxu0 %v12556_v6  ;;  %v2120_v41 = vpop.f32.mrf.mxu1  ;;  %v2670_v44 = vpop.f32.mrf.mxu0  ;;  %v11219_v2 = vld [vmem:[%s12530_s3 + $0x3f8] sm:$0xff]  ;;  %v3158_v6 = vld [vmem:[#allocation2 + $0x181] sm:$0xff] }
 0x1cb   : > { %12555 = vst [vmem:[#allocation19_spill] sm:$0xff] %v11207_v4  ;;  %v11210_v9 = vadd.f32 %v2650_v61, %v2120_v41  ;;  %10002 = vmatprep.subr.mxu0 %v11219_v2  ;;  %v12562_v41 = vld [vmem:[#allocation7_spill] sm:$0xff] }
 0x1cc   : > { %v9158_v54 = vpop.f32.mrf.mxu1  ;;  %v9292_v38 = vpop.f32.mrf.mxu0 }
 0x1cd   : > { %12557 = vst [vmem:[#allocation4_spill] sm:$0xff] %v11210_v9  ;;  %9461 = vmatmul.mubr.f32.gmra.mxu1 %v3156_v24  ;;  %9595 = vmatmul.mubr.f32.gmra.mxu0 %v12558_v52  ;;  %v11213_v63 = vadd.f32 %v9286_v7, %v9158_v54  ;;  %v3159_v52 = vld [vmem:[#allocation2 + $0x189] sm:$0xff] }
 0x1ce   : > { %9463 = vmatprep.mubr.f32.mxu1 %v3157_v48  ;;  %9597 = vmatprep.mubr.f32.mxu0 %v12560_v17  ;;  %v2130_v56 = vpop.f32.mrf.mxu1  ;;  %v2680_v40 = vpop.f32.mrf.mxu0  ;;  %v12564_v54 = vld [vmem:[#allocation8_spill] sm:$0xff] }
 0x1cf   : > { %12559 = vst [vmem:[#allocation5_spill] sm:$0xff] %v11213_v63  ;;  %v11221_v61 = vadd.f32 %v2660_v50, %v2130_v56  ;;  %v3161_v63 = vld [vmem:[#allocation2 + $0x199] sm:$0xff]  ;;  %v3160_v50 = vld [vmem:[#allocation2 + $0x191] sm:$0xff] }
 0x1d0   : > { %v9161_v24 = vpop.f32.mrf.mxu1  ;;  %v9295_v7 = vpop.f32.mrf.mxu0 }
 0x1d1   : > { %12561 = vst [vmem:[#allocation6_spill] sm:$0xff] %v11221_v61  ;;  %9464 = vmatmul.mubr.f32.gmra.mxu1 %v3158_v6  ;;  %9598 = vmatmul.mubr.f32.gmra.mxu0 %v12562_v41  ;;  %v11225_v48 = vadd.f32 %v9289_v25, %v9161_v24  ;;  %v12566_v41 = vld [vmem:[#allocation10_spill] sm:$0xff] }
 0x1d2   : > { %9466 = vmatprep.mubr.f32.mxu1 %v3159_v52  ;;  %9600 = vmatprep.mubr.f32.mxu0 %v12564_v54  ;;  %v2140_v17 = vpop.f32.mrf.mxu1  ;;  %v2690_v9 = vpop.f32.mrf.mxu0  ;;  %v3162_v54 = vld [vmem:[#allocation2 + $0x1a1] sm:$0xff] }
 0x1d3   : > { %12563 = vst [vmem:[#allocation7_spill] sm:$0xff] %v11225_v48  ;;  %v11228_v4 = vadd.f32 %v2670_v44, %v2140_v17  ;;  %v3163_v44 = vld [vmem:[#allocation2 + $0x1a9] sm:$0xff] }
 0x1d4   : > { %v9164_v56 = vpop.f32.mrf.mxu1  ;;  %v9298_v61 = vpop.f32.mrf.mxu0 }
 0x1d5   : > { %9467 = vmatmul.mubr.f32.gmra.mxu1 %v3160_v50  ;;  %9601 = vmatmul.mubr.f32.gmra.mxu0 %v12565_v31  ;;  %v11231_v6 = vadd.f32 %v9292_v38, %v9164_v56  ;;  %v3165_v38 = vld [vmem:[#allocation2 + $0x1b9] sm:$0xff] }
 0x1d6   : > { %9469 = vmatprep.mubr.f32.mxu1 %v3161_v63  ;;  %9603 = vmatprep.mubr.f32.mxu0 %v12566_v41  ;;  %v2150_v25 = vpop.f32.mrf.mxu1  ;;  %v2700_v24 = vpop.f32.mrf.mxu0  ;;  %v3164_v41 = vld [vmem:[#allocation2 + $0x1b1] sm:$0xff] }
 0x1d7   : > { %v11234_v52 = vadd.f32 %v2680_v40, %v2150_v25 }
 0x1d8   : > { %v9167_v48 = vpop.f32.mrf.mxu1  ;;  %v9301_v17 = vpop.f32.mrf.mxu0 }
 0x1d9   : > { %9470 = vmatmul.mubr.f32.gmra.mxu1 %v3162_v54  ;;  %9604 = vmatmul.mubr.f32.gmra.mxu0 %v10919_v47  ;;  %v11237_v50 = vadd.f32 %v9295_v7, %v9167_v48  ;;  %v3829_v48 = vld [vmem:[#allocation2 + $0x207] sm:$0xff] }
 0x1da   : > { %9472 = vmatprep.mubr.f32.mxu1 %v3163_v44  ;;  %9606 = vmatprep.mubr.f32.mxu0 %v10927_v8  ;;  %v2160_v31 = vpop.f32.mrf.mxu1  ;;  %v2710_v63 = vpop.f32.mrf.mxu0  ;;  %v3166_v44 = vld [vmem:[#allocation2 + $0x1c1] sm:$0xff] }
 0x1db   : > { %12567 = vst [vmem:[#allocation8_spill] sm:$0xff] %v11237_v50  ;;  %v11240_v56 = vadd.f32 %v2690_v9, %v2160_v31  ;;  %v3167_v9 = vld [vmem:[#allocation2 + $0x1c9] sm:$0xff] }
 0x1dc   : > { %v9170_v40 = vpop.f32.mrf.mxu1  ;;  %v9304_v25 = vpop.f32.mrf.mxu0 }
 0x1dd   : > { %12568 = vst [vmem:[#allocation9_spill] sm:$0xff] %v11240_v56  ;;  %9473 = vmatmul.mubr.f32.gmra.mxu1 %v3164_v41  ;;  %9607 = vmatmul.mubr.f32.gmra.mxu0 %v10929_v49  ;;  %v11243_v54 = vadd.f32 %v9298_v61, %v9170_v40  ;;  %v3830_v49 = vld [vmem:[#allocation2 + $0x20f] sm:$0xff]  ;;  %v3831_v40 = vld [vmem:[#allocation2 + $0x217] sm:$0xff] }
 0x1de   : > { %9475 = vmatprep.mubr.f32.mxu1 %v3165_v38  ;;  %9609 = vmatprep.mubr.f32.mxu0 %v10933_v21  ;;  %v2170_v47 = vpop.f32.mrf.mxu1  ;;  %v2720_v7 = vpop.f32.mrf.mxu0  ;;  %v3169_v38 = vld [vmem:[#allocation2 + $0x1d9] sm:$0xff]  ;;  %v3171_v56 = vld [vmem:[#allocation2 + $0x1e9] sm:$0xff] }
 0x1df   : > { %12569 = vst [vmem:[#allocation10_spill] sm:$0xff] %v11243_v54  ;;  %v11246_v8 = vadd.f32 %v2700_v24, %v2170_v47  ;;  %v3168_v24 = vld [vmem:[#allocation2 + $0x1d1] sm:$0xff] }
 0x1e0   : > { %v9173_v50 = vpop.f32.mrf.mxu1  ;;  %v9307_v31 = vpop.f32.mrf.mxu0 }
 0x1e1   : > { %12570 = vst [vmem:[#allocation20_spill] sm:$0xff] %v11246_v8  ;;  %9476 = vmatmul.mubr.f32.gmra.mxu1 %v3166_v44  ;;  %9610 = vmatmul.mubr.f32.gmra.mxu0 %v10942_v51  ;;  %v11249_v41 = vadd.f32 %v9301_v17, %v9173_v50  ;;  %v3832_v51 = vld [vmem:[#allocation2 + $0x21f] sm:$0xff] }
 0x1e2   : > { %9478 = vmatprep.mubr.f32.mxu1 %v3167_v9  ;;  %9612 = vmatprep.mubr.f32.mxu0 %v3829_v48  ;;  %v2180_v61 = vpop.f32.mrf.mxu1  ;;  %v2730_v21 = vpop.f32.mrf.mxu0  ;;  %v3170_v9 = vld [vmem:[#allocation2 + $0x1e1] sm:$0xff] }
 0x1e3   : > { %12571 = vst [vmem:[#allocation21_spill] sm:$0xff] %v11249_v41  ;;  %v11251_v54 = vadd.f32 %v2710_v63, %v2180_v61 }
 0x1e4   : > { %v9176_v47 = vpop.f32.mrf.mxu1  ;;  %v9310_v8 = vpop.f32.mrf.mxu0 }
 0x1e5   : > { %9479 = vmatmul.mubr.f32.gmra.mxu1 %v3168_v24  ;;  %9613 = vmatmul.mubr.f32.gmra.mxu0 %v3830_v49  ;;  %v11253_v44 = vadd.f32 %v9304_v25, %v9176_v47  ;;  %v3173_v49 = vld [vmem:[#allocation2 + $0x1f9] sm:$0xff]  ;;  %v3172_v24 = vld [vmem:[#allocation2 + $0x1f1] sm:$0xff] }
 0x1e6   : > { %9481 = vmatprep.mubr.f32.mxu1 %v3169_v38  ;;  %9615 = vmatprep.mubr.f32.mxu0 %v3831_v40  ;;  %v2190_v17 = vpop.f32.mrf.mxu1  ;;  %v2740_v50 = vpop.f32.mrf.mxu0 }
 0x1e7   : > { %v11255_v48 = vadd.f32 %v2720_v7, %v2190_v17 }
 0x1e8   : > { %v9179_v41 = vpop.f32.mrf.mxu1  ;;  %v9313_v63 = vpop.f32.mrf.mxu0 }
 0x1e9   : > { %9482 = vmatmul.mubr.f32.gmra.mxu1 %v3170_v9  ;;  %9616 = vmatmul.mubr.f32.gmra.mxu0 %v3832_v51  ;;  %v11257_v61 = vadd.f32 %v9307_v31, %v9179_v41  ;;  %v8155_v51 = vld [vmem:[%s12530_s3 + $0x3f0] sm:$0xff] }
 0x1ea   : > { %9484 = vmatprep.mubr.f32.mxu1 %v3171_v56  ;;  %9778 = vmatprep.mubr.f32.mxu0 %v10970_v36  ;;  %v2200_v25 = vpop.f32.mrf.mxu1  ;;  %v2750_v38 = vpop.f32.mrf.mxu0 }
 0x1eb   : > { %v11260_v40 = vadd.f32 %v2730_v21, %v2200_v25  ;;  %v3174_v21 = vld [vmem:[#allocation2 + $0x201] sm:$0xff] }
 0x1ec   : > { %v9182_v47 = vpop.f32.mrf.mxu1  ;;  %v9316_v7 = vpop.f32.mrf.mxu0 }
 0x1ed   : > { %9485 = vmatmul.mubr.f32.gmra.mxu1 %v3172_v24  ;;  %9779 = vmatmul.mubr.f32.vlgmr.msra.gmra.mxu0 %v10977_v53  ;;  %v11266_v31 = vadd.f32 %v9310_v8, %v9182_v47  ;;  %v4427_v53 = vld [vmem:[#allocation2 + $0x28] sm:$0xff]  ;;  %v8139_v24 = vld [vmem:[%s12530_s3 + $0x370] sm:$0xff] }
 0x1ee   : > { %9487 = vmatprep.mubr.f32.mxu1 %v3173_v49  ;;  %9781 = vmatprep.mubr.f32.mxu0 %v10975_v30  ;;  %v2210_v36 = vpop.f32.mrf.mxu1  ;;  %v2760_v56 = vpop.f32.mrf.mxu0  ;;  %v8154_v8 = vld [vmem:[%s12530_s3 + $0x3e8] sm:$0xff]  ;;  %v4428_v49 = vld [vmem:[#allocation2 + $0x30] sm:$0xff] }
 0x1ef   : > { %10003 = vmatpush3.msra.mxu0 %v11219_v2  ;;  %v11270_v41 = vadd.f32 %v2740_v50, %v2210_v36  ;;  %v8138_v36 = vld [vmem:[%s12530_s3 + $0x368] sm:$0xff] }
 0x1f0   : > { %10004 = vmatprep.subr.mxu0 %v8155_v51  ;;  %v9185_v17 = vpop.f32.mrf.mxu1  ;;  %v9319_v9 = vpop.f32.mrf.mxu0 }
 0x1f1   : > { %9488 = vmatmul.mubr.f32.gmra.mxu1 %v3174_v21  ;;  %9782 = vmatmul.mubr.f32.gmra.mxu0 %v10989_v0  ;;  %v11276_v25 = vadd.f32 %v9313_v63, %v9185_v17 }
 0x1f2   : > { %9650 = vmatprep.mubr.f32.mxu1 %v4427_v53  ;;  %9784 = vmatprep.mubr.f32.mxu0 %v10998_v1  ;;  %v2220_v30 = vpop.f32.mrf.mxu1  ;;  %v2770_v2 = vpop.f32.mrf.mxu0 }
 0x1f3   : > { %10005 = vmatpush3.msra.mxu0 %v8155_v51  ;;  %v11279_v50 = vadd.f32 %v2750_v38, %v2220_v30  ;;  %v8137_v30 = vld [vmem:[%s12530_s3 + $0x360] sm:$0xff] }
 0x1f4   : > { %10006 = vmatprep.subr.mxu0 %v8154_v8  ;;  %v9188_v0 = vpop.f32.mrf.mxu1  ;;  %v9322_v47 = vpop.f32.mrf.mxu0 }
 0x1f5   : > { %9651 = vmatmul.mubr.f32.vlgmr.msra.gmra.mxu1 %v4428_v49  ;;  %9785 = vmatmul.mubr.f32.gmra.mxu0 %v11005_v28  ;;  %v11285_v63 = vadd.f32 %v9316_v7, %v9188_v0  ;;  %v8153_v28 = vld [vmem:[%s12530_s3 + $0x3e0] sm:$0xff]  ;;  %v4431_v7 = vld [vmem:[#allocation2 + $0x48] sm:$0xff] }
 0x1f6   : > { %9875 = vmatpush3.msra.mxu1 %v11159_v34  ;;  %9653 = vmatprep.mubr.f32.mxu1 %v10904_v10  ;;  %v2230_v1 = vpop.f32.mrf.mxu1  ;;  %v2780_v38 = vpop.f32.mrf.mxu0 }
 0x1f7   : > { %9876 = vmatprep.subr.mxu1 %v8139_v24  ;;  %9787 = vmatprep.mubr.f32.mxu0 %v11003_v3  ;;  %v11290_v51 = vadd.f32 %v2760_v56, %v2230_v1  ;;  %v8136_v1 = vld [vmem:[%s12530_s3 + $0x358] sm:$0xff] }
 0x1f8   : > { %9877 = vmatpush3.msra.mxu1 %v8139_v24  ;;  %10007 = vmatpush3.msra.mxu0 %v8154_v8  ;;  %v9191_v34 = vpop.f32.mrf.mxu1  ;;  %v9325_v21 = vpop.f32.mrf.mxu0  ;;  %v4432_v8 = vld [vmem:[#allocation2 + $0x50] sm:$0xff] }
 0x1f9   : > { %9654 = vmatmul.mubr.f32.gmra.mxu1 %v10904_v10  ;;  %9788 = vmatmul.mubr.f32.gmra.mxu0 %v11017_v12  ;;  %v11300_v3 = vadd.f32 %v9319_v9, %v9191_v34  ;;  %v8152_v12 = vld [vmem:[%s12530_s3 + $0x3d8] sm:$0xff] }
 0x1fa   : > { %9656 = vmatprep.mubr.f32.mxu1 %v4431_v7  ;;  %9790 = vmatprep.mubr.f32.mxu0 %v11026_v13  ;;  %v2240_v56 = vpop.f32.mrf.mxu1  ;;  %v2790_v17 = vpop.f32.mrf.mxu0 }
 0x1fb   : > { %9878 = vmatprep.subr.mxu1 %v8138_v36  ;;  %10008 = vmatprep.subr.mxu0 %v8153_v28  ;;  %v11303_v53 = vadd.f32 %v2770_v2, %v2240_v56  ;;  %v4436_v56 = vld [vmem:[#allocation2 + $0x70] sm:$0xff] }
 0x1fc   : > { %9879 = vmatpush3.msra.mxu1 %v8138_v36  ;;  %10009 = vmatpush3.msra.mxu0 %v8153_v28  ;;  %v9194_v9 = vpop.f32.mrf.mxu1  ;;  %v9328_v13 = vpop.f32.mrf.mxu0 }
 0x1fd   : > { %9657 = vmatmul.mubr.f32.gmra.mxu1 %v4432_v8  ;;  %9791 = vmatmul.mubr.f32.gmra.mxu0 %v11033_v45  ;;  %v11312_v49 = vadd.f32 %v9322_v47, %v9194_v9  ;;  %v8151_v45 = vld [vmem:[%s12530_s3 + $0x3d0] sm:$0xff] }
 0x1fe   : > { %9659 = vmatprep.mubr.f32.mxu1 %v10904_v10  ;;  %9793 = vmatprep.mubr.f32.mxu0 %v11031_v16  ;;  %v2250_v2 = vpop.f32.mrf.mxu1  ;;  %v2800_v24 = vpop.f32.mrf.mxu0  ;;  %v4435_v16 = vld [vmem:[#allocation2 + $0x68] sm:$0xff] }
 0x1ff   : > { %9880 = vmatprep.subr.mxu1 %v8137_v30  ;;  %10010 = vmatprep.subr.mxu0 %v8152_v12  ;;  %v11316_v0 = vadd.f32 %v2780_v38, %v2250_v2  ;;  %v8134_v2 = vld [vmem:[%s12530_s3 + $0x348] sm:$0xff] }
 0x200   : > { %9881 = vmatpush3.msra.mxu1 %v8137_v30  ;;  %10011 = vmatpush3.msra.mxu0 %v8152_v12  ;;  %v9197_v47 = vpop.f32.mrf.mxu1  ;;  %v9331_v36 = vpop.f32.mrf.mxu0 }
 0x201   : > { %9660 = vmatmul.mubr.f32.gmra.mxu1 %v10904_v10  ;;  %9794 = vmatmul.mubr.f32.gmra.mxu0 %v11045_v26  ;;  %v11326_v28 = vadd.f32 %v9325_v21, %v9197_v47  ;;  %v8135_v10 = vld [vmem:[%s12530_s3 + $0x350] sm:$0xff]  ;;  %v8150_v26 = vld [vmem:[%s12530_s3 + $0x3c8] sm:$0xff] }
 0x202   : > { %9662 = vmatprep.mubr.f32.mxu1 %v4435_v16  ;;  %9796 = vmatprep.mubr.f32.mxu0 %v11054_v27  ;;  %v2260_v38 = vpop.f32.mrf.mxu1  ;;  %v2810_v34 = vpop.f32.mrf.mxu0 }
 0x203   : > { %9882 = vmatprep.subr.mxu1 %v8136_v1  ;;  %10012 = vmatprep.subr.mxu0 %v8151_v45  ;;  %v11329_v7 = vadd.f32 %v2790_v17, %v2260_v38  ;;  %v11340_v17 = vld [vmem:[#allocation2] sm:$0xff]  ;;  %v4440_v38 = vld [vmem:[#allocation2 + $0x90] sm:$0xff] }
 0x204   : > { %9883 = vmatpush3.msra.mxu1 %v8136_v1  ;;  %10013 = vmatpush3.msra.mxu0 %v8151_v45  ;;  %v9200_v21 = vpop.f32.mrf.mxu1  ;;  %v9334_v27 = vpop.f32.mrf.mxu0 }
 0x205   : > { %9663 = vmatmul.mubr.f32.gmra.mxu1 %v4436_v56  ;;  %9797 = vmatmul.mubr.f32.gmra.mxu0 %v11061_v57  ;;  %v11338_v8 = vadd.f32 %v9328_v13, %v9200_v21  ;;  %v8149_v57 = vld [vmem:[%s12530_s3 + $0x3c0] sm:$0xff] }
 0x206   : > { %9665 = vmatprep.mubr.f32.mxu1 %v11340_v17  ;;  %9799 = vmatprep.mubr.f32.mxu0 %v11059_v29  ;;  %v2270_v30 = vpop.f32.mrf.mxu1  ;;  %v2820_v12 = vpop.f32.mrf.mxu0  ;;  %v4439_v29 = vld [vmem:[#allocation2 + $0x88] sm:$0xff]  ;;  %v8133_v56 = vld [vmem:[%s12530_s3 + $0x340] sm:$0xff] }
 0x207   : > { %9884 = vmatprep.subr.mxu1 %v8135_v10  ;;  %10014 = vmatprep.subr.mxu0 %v8150_v26  ;;  %v11344_v9 = vadd.f32 %v2800_v24, %v2270_v30  ;;  %v8132_v30 = vld [vmem:[%s12530_s3 + $0x338] sm:$0xff] }
 0x208   : > { %9885 = vmatpush3.msra.mxu1 %v8135_v10  ;;  %10015 = vmatpush3.msra.mxu0 %v8150_v26  ;;  %v9203_v13 = vpop.f32.mrf.mxu1  ;;  %v9337_v1 = vpop.f32.mrf.mxu0 }
 0x209   : > { %9666 = vmatmul.mubr.f32.gmra.mxu1 %v11340_v17  ;;  %9800 = vmatmul.mubr.f32.gmra.mxu0 %v11073_v39  ;;  %v11354_v45 = vadd.f32 %v9331_v36, %v9203_v13  ;;  %v8148_v39 = vld [vmem:[%s12530_s3 + $0x3b8] sm:$0xff] }
 0x20a   : > { %9668 = vmatprep.mubr.f32.mxu1 %v4439_v29  ;;  %9802 = vmatprep.mubr.f32.mxu0 %v11082_v42  ;;  %v2280_v24 = vpop.f32.mrf.mxu1  ;;  %v2830_v47 = vpop.f32.mrf.mxu0 }
 0x20b   : > { %9886 = vmatprep.subr.mxu1 %v8134_v2  ;;  %10016 = vmatprep.subr.mxu0 %v8149_v57  ;;  %v11357_v16 = vadd.f32 %v2810_v34, %v2280_v24  ;;  %v4444_v24 = vld [vmem:[#allocation2 + $0xb0] sm:$0xff] }
 0x20c   : > { %9887 = vmatpush3.msra.mxu1 %v8134_v2  ;;  %10017 = vmatpush3.msra.mxu0 %v8149_v57  ;;  %v9206_v36 = vpop.f32.mrf.mxu1  ;;  %v9340_v42 = vpop.f32.mrf.mxu0 }
 0x20d   : > { %9669 = vmatmul.mubr.f32.gmra.mxu1 %v4440_v38  ;;  %9803 = vmatmul.mubr.f32.gmra.mxu0 %v11089_v5  ;;  %v11366_v10 = vadd.f32 %v9334_v27, %v9206_v36  ;;  %v8147_v5 = vld [vmem:[%s12530_s3 + $0x3b0] sm:$0xff] }
 0x20e   : > { %9671 = vmatprep.mubr.f32.mxu1 %v11340_v17  ;;  %9805 = vmatprep.mubr.f32.mxu0 %v11087_v46  ;;  %v2290_v34 = vpop.f32.mrf.mxu1  ;;  %v2840_v26 = vpop.f32.mrf.mxu0  ;;  %v4443_v46 = vld [vmem:[#allocation2 + $0xa8] sm:$0xff]  ;;  %v8131_v38 = vld [vmem:[%s12530_s3 + $0x330] sm:$0xff] }
 0x20f   : > { %9888 = vmatprep.subr.mxu1 %v8133_v56  ;;  %10018 = vmatprep.subr.mxu0 %v8148_v39  ;;  %v11370_v21 = vadd.f32 %v2820_v12, %v2290_v34  ;;  %v8130_v34 = vld [vmem:[%s12530_s3 + $0x328] sm:$0xff] }
 0x210   : > { %9889 = vmatpush3.msra.mxu1 %v8133_v56  ;;  %10019 = vmatpush3.msra.mxu0 %v8148_v39  ;;  %v9209_v27 = vpop.f32.mrf.mxu1  ;;  %v9343_v2 = vpop.f32.mrf.mxu0 }
 0x211   : > { %9672 = vmatmul.mubr.f32.gmra.mxu1 %v11340_v17  ;;  %9806 = vmatmul.mubr.f32.gmra.mxu0 %v11101_v59  ;;  %v11380_v57 = vadd.f32 %v9337_v1, %v9209_v27  ;;  %v8146_v59 = vld [vmem:[%s12530_s3 + $0x3a8] sm:$0xff] }
 0x212   : > { %9674 = vmatprep.mubr.f32.mxu1 %v4443_v46  ;;  %9808 = vmatprep.mubr.f32.mxu0 %v11110_v60  ;;  %v2300_v12 = vpop.f32.mrf.mxu1  ;;  %v2850_v13 = vpop.f32.mrf.mxu0 }
 0x213   : > { %9890 = vmatprep.subr.mxu1 %v8132_v30  ;;  %10020 = vmatprep.subr.mxu0 %v8147_v5  ;;  %v11383_v29 = vadd.f32 %v2830_v47, %v2300_v12  ;;  %v4448_v12 = vld [vmem:[#allocation2 + $0xd0] sm:$0xff] }
 0x214   : > { %9891 = vmatpush3.msra.mxu1 %v8132_v30  ;;  %10021 = vmatpush3.msra.mxu0 %v8147_v5  ;;  %v9212_v1 = vpop.f32.mrf.mxu1  ;;  %v9346_v60 = vpop.f32.mrf.mxu0 }
 0x215   : > { %9675 = vmatmul.mubr.f32.gmra.mxu1 %v4444_v24  ;;  %9809 = vmatmul.mubr.f32.gmra.mxu0 %v11117_v18  ;;  %v11392_v56 = vadd.f32 %v9340_v42, %v9212_v1  ;;  %v8145_v18 = vld [vmem:[%s12530_s3 + $0x3a0] sm:$0xff] }
 0x216   : > { %9677 = vmatprep.mubr.f32.mxu1 %v11340_v17  ;;  %9811 = vmatprep.mubr.f32.mxu0 %v11115_v62  ;;  %v2310_v47 = vpop.f32.mrf.mxu1  ;;  %v2860_v39 = vpop.f32.mrf.mxu0  ;;  %v4447_v62 = vld [vmem:[#allocation2 + $0xc8] sm:$0xff]  ;;  %v8129_v24 = vld [vmem:[%s12530_s3 + $0x320] sm:$0xff] }
 0x217   : > { %9892 = vmatprep.subr.mxu1 %v8131_v38  ;;  %10022 = vmatprep.subr.mxu0 %v8146_v59  ;;  %v11396_v36 = vadd.f32 %v2840_v26, %v2310_v47  ;;  %v8128_v47 = vld [vmem:[%s12530_s3 + $0x318] sm:$0xff] }
 0x218   : > { %9893 = vmatpush3.msra.mxu1 %v8131_v38  ;;  %10023 = vmatpush3.msra.mxu0 %v8146_v59  ;;  %v9215_v42 = vpop.f32.mrf.mxu1  ;;  %v9349_v30 = vpop.f32.mrf.mxu0 }
 0x219   : > { %9678 = vmatmul.mubr.f32.gmra.mxu1 %v11340_v17  ;;  %9812 = vmatmul.mubr.f32.gmra.mxu0 %v11129_v11  ;;  %v11406_v5 = vadd.f32 %v9343_v2, %v9215_v42  ;;  %v8144_v11 = vld [vmem:[%s12530_s3 + $0x398] sm:$0xff] }
 0x21a   : > { %9680 = vmatprep.mubr.f32.mxu1 %v4447_v62  ;;  %9814 = vmatprep.mubr.f32.mxu0 %v11138_v14  ;;  %v2320_v26 = vpop.f32.mrf.mxu1  ;;  %v2870_v27 = vpop.f32.mrf.mxu0 }
 0x21b   : > { %9894 = vmatprep.subr.mxu1 %v8130_v34  ;;  %10024 = vmatprep.subr.mxu0 %v8145_v18  ;;  %v11409_v46 = vadd.f32 %v2850_v13, %v2320_v26  ;;  %v4452_v26 = vld [vmem:[#allocation2 + $0xf0] sm:$0xff] }
 0x21c   : > { %9895 = vmatpush3.msra.mxu1 %v8130_v34  ;;  %10025 = vmatpush3.msra.mxu0 %v8145_v18  ;;  %v9218_v2 = vpop.f32.mrf.mxu1  ;;  %v9352_v14 = vpop.f32.mrf.mxu0 }
 0x21d   : > { %9681 = vmatmul.mubr.f32.gmra.mxu1 %v4448_v12  ;;  %9815 = vmatmul.mubr.f32.gmra.mxu0 %v11145_v32  ;;  %v11418_v38 = vadd.f32 %v9346_v60, %v9218_v2  ;;  %v8143_v32 = vld [vmem:[%s12530_s3 + $0x390] sm:$0xff] }
 0x21e   : > { %9683 = vmatprep.mubr.f32.mxu1 %v11340_v17  ;;  %9817 = vmatprep.mubr.f32.mxu0 %v11143_v19  ;;  %v2330_v13 = vpop.f32.mrf.mxu1  ;;  %v2880_v59 = vpop.f32.mrf.mxu0  ;;  %v4451_v19 = vld [vmem:[#allocation2 + $0xe8] sm:$0xff]  ;;  %v8127_v12 = vld [vmem:[%s12530_s3 + $0x310] sm:$0xff] }
 0x21f   : > { %9896 = vmatprep.subr.mxu1 %v8129_v24  ;;  %10026 = vmatprep.subr.mxu0 %v8144_v11  ;;  %v11422_v1 = vadd.f32 %v2860_v39, %v2330_v13  ;;  %v8126_v13 = vld [vmem:[%s12530_s3 + $0x308] sm:$0xff] }
 0x220   : > { %9897 = vmatpush3.msra.mxu1 %v8129_v24  ;;  %10027 = vmatpush3.msra.mxu0 %v8144_v11  ;;  %v9221_v60 = vpop.f32.mrf.mxu1  ;;  %v9355_v34 = vpop.f32.mrf.mxu0 }
 0x221   : > { %12572 = vst [vmem:[#allocation22_spill] sm:$0xff] %v11422_v1  ;;  %9684 = vmatmul.mubr.f32.gmra.mxu1 %v11340_v17  ;;  %9818 = vmatmul.mubr.f32.gmra.mxu0 %v11154_v22  ;;  %v11432_v18 = vadd.f32 %v9349_v30, %v9221_v60  ;;  %v8142_v22 = vld [vmem:[%s12530_s3 + $0x388] sm:$0xff] }
 0x222   : > { %9686 = vmatprep.mubr.f32.mxu1 %v4451_v19  ;;  %9820 = vmatprep.mubr.f32.mxu0 %v11162_v43  ;;  %v2340_v39 = vpop.f32.mrf.mxu1  ;;  %v2890_v42 = vpop.f32.mrf.mxu0  ;;  %v5119_v19 = vld [vmem:[#allocation2 + $0x139] sm:$0xff] }
 0x223   : > { %12573 = vst [vmem:[#allocation23_spill] sm:$0xff] %v11432_v18  ;;  %9898 = vmatprep.subr.mxu1 %v8128_v47  ;;  %10028 = vmatprep.subr.mxu0 %v8143_v32  ;;  %v11435_v62 = vadd.f32 %v2870_v27, %v2340_v39 }
 0x224   : > { %9899 = vmatpush3.msra.mxu1 %v8128_v47  ;;  %10029 = vmatpush3.msra.mxu0 %v8143_v32  ;;  %v9358_v43 = vpop.f32.mrf.mxu0 }
 0x225   : > { %12574 = vst [vmem:[#allocation24_spill] sm:$0xff] %v11435_v62  ;;  %v9224_v30 = vpop.f32.mrf.mxu1  ;;  %9687 = vmatmul.mubr.f32.gmra.mxu1 %v4452_v26  ;;  %9821 = vmatmul.mubr.f32.gmra.mxu0 %v11172_v37  ;;  %v8141_v37 = vld [vmem:[%s12530_s3 + $0x380] sm:$0xff]  ;;  %v4456_v26 = vld [vmem:[#allocation2 + $0x110] sm:$0xff] }
 0x226   : > { %v11444_v24 = vadd.f32 %v9352_v14, %v9224_v30  ;;  %9689 = vmatprep.mubr.f32.mxu1 %v11340_v17  ;;  %9823 = vmatprep.mubr.f32.mxu0 %v11169_v35  ;;  %v2900_v11 = vpop.f32.mrf.mxu0  ;;  %v4455_v35 = vld [vmem:[#allocation2 + $0x108] sm:$0xff]  ;;  %v5126_v62 = vld [vmem:[#allocation2 + $0x171] sm:$0xff] }
 0x227   : > { %v2350_v27 = vpop.f32.mrf.mxu1  ;;  %9900 = vmatprep.subr.mxu1 %v8127_v12  ;;  %10030 = vmatprep.subr.mxu0 %v8142_v22 }
 0x228   : > { %12575 = vst [vmem:[#allocation25_spill] sm:$0xff] %v11444_v24  ;;  %v11448_v2 = vadd.f32 %v2880_v59, %v2350_v27  ;;  %9901 = vmatpush3.msra.mxu1 %v8127_v12  ;;  %10031 = vmatpush3.msra.mxu0 %v8142_v22  ;;  %v9361_v47 = vpop.f32.mrf.mxu0  ;;  %v5118_v12 = vld [vmem:[#allocation2 + $0x131] sm:$0xff]  ;;  %v8125_v22 = vld [vmem:[%s12530_s3 + $0x300] sm:$0xff] }
 0x229   : > { %v9227_v14 = vpop.f32.mrf.mxu1  ;;  %9690 = vmatmul.mubr.f32.gmra.mxu1 %v11340_v17  ;;  %9824 = vmatmul.mubr.f32.gmra.mxu0 %v11178_v33  ;;  %v4464_v24 = vld [vmem:[#allocation2 + $0x150] sm:$0xff] }
 0x22a   : > { %12576 = vst [vmem:[#allocation26_spill] sm:$0xff] %v11448_v2  ;;  %v11458_v32 = vadd.f32 %v9355_v34, %v9227_v14  ;;  %9692 = vmatprep.mubr.f32.mxu1 %v4455_v35  ;;  %9826 = vmatprep.mubr.f32.mxu0 %v11181_v58  ;;  %v2910_v60 = vpop.f32.mrf.mxu0  ;;  %v12586_v2 = vld [vmem:[#allocation15_spill] sm:$0xff] }
 0x22b   : > { %v2360_v59 = vpop.f32.mrf.mxu1  ;;  %9902 = vmatprep.subr.mxu1 %v8126_v13  ;;  %10032 = vmatprep.subr.mxu0 %v8141_v37 }
 0x22c   : > { %12577 = vst [vmem:[#allocation27_spill] sm:$0xff] %v11458_v32  ;;  %v11461_v39 = vadd.f32 %v2890_v42, %v2360_v59  ;;  %9903 = vmatpush3.msra.mxu1 %v8126_v13  ;;  %10033 = vmatpush3.msra.mxu0 %v8141_v37  ;;  %v9524_v34 = vpop.f32.mrf.mxu0  ;;  %v5120_v13 = vld [vmem:[#allocation2 + $0x141] sm:$0xff]  ;;  %v11474_v37 = vld [vmem:[%s12530_s3 + $0x478] sm:$0xff]  ;;  %v5121_v59 = vld [vmem:[#allocation2 + $0x149] sm:$0xff] }
 0x22d   : > { %v9230_v33 = vpop.f32.mrf.mxu1  ;;  %9693 = vmatmul.mubr.f32.gmra.mxu1 %v4456_v26  ;;  %9827 = vmatmul.mubr.f32.gmra.mxu0 %v5118_v12  ;;  %v5123_v12 = vld [vmem:[#allocation2 + $0x159] sm:$0xff] }
 0x22e   : > { %12578 = vst [vmem:[#allocation28_spill] sm:$0xff] %v11461_v39  ;;  %v11466_v58 = vadd.f32 %v9358_v43, %v9230_v33  ;;  %9695 = vmatprep.mubr.f32.mxu1 %v11340_v17  ;;  %9829 = vmatprep.mubr.f32.mxu0 %v5119_v19  ;;  %v3916_v42 = vpop.f32.mrf.mxu0  ;;  %v4459_v43 = vld [vmem:[#allocation2 + $0x128] sm:$0xff]  ;;  %v4460_v33 = vld [vmem:[#allocation2 + $0x130] sm:$0xff] }
 0x22f   : > { %v2370_v30 = vpop.f32.mrf.mxu1  ;;  %9904 = vmatprep.subr.mxu1 %v8125_v22 }
 0x230   : > { %12579 = vst [vmem:[#allocation29_spill] sm:$0xff] %v11466_v58  ;;  %v11469_v27 = vadd.f32 %v2900_v11, %v2370_v30  ;;  %9905 = vmatpush3.msra.mxu1 %v8125_v22  ;;  %v9527_v35 = vpop.f32.mrf.mxu0  ;;  %v5122_v30 = vld [vmem:[#allocation2 + $0x151] sm:$0xff] }
 0x231   : > { %v9233_v14 = vpop.f32.mrf.mxu1  ;;  %9696 = vmatmul.mubr.f32.gmra.mxu1 %v11340_v17  ;;  %9830 = vmatmul.mubr.f32.gmra.mxu0 %v5120_v13  ;;  %v12583_v13 = vld [vmem:[#allocation12_spill] sm:$0xff] }
 0x232   : > { %12580 = vst [vmem:[#allocation30_spill] sm:$0xff] %v11469_v27  ;;  %v11477_v19 = vadd.f32 %v9361_v47, %v9233_v14  ;;  %9698 = vmatprep.mubr.f32.mxu1 %v4459_v43  ;;  %9832 = vmatprep.mubr.f32.mxu0 %v5121_v59  ;;  %v3926_v26 = vpop.f32.mrf.mxu0  ;;  %v2983_v39 = vadd.f32 %v12583_v13, %v10936_v20  ;;  %v12584_v47 = vld [vmem:[#allocation11_spill] sm:$0xff]  ;;  %v12587_v20 = vld [vmem:[#allocation14_spill] sm:$0xff] }
 0x233   : > { %v2380_v11 = vpop.f32.mrf.mxu1  ;;  %10130 = vmatprep.subr.mxu1 %v11474_v37  ;;  %v2985_v13 = vadd.f32 %v12587_v20, %v12586_v2 }
 0x234   : > { %12581 = vst [vmem:[#allocation31_spill] sm:$0xff] %v11477_v19  ;;  %v11480_v22 = vadd.f32 %v2910_v60, %v2380_v11  ;;  %v9530_v58 = vpop.f32.mrf.mxu0  ;;  %v5124_v11 = vld [vmem:[#allocation2 + $0x161] sm:$0xff] }
 0x235   : > { %v9396_v27 = vpop.f32.mrf.mxu1  ;;  %9699 = vmatmul.mubr.f32.gmra.mxu1 %v4460_v33  ;;  %9833 = vmatmul.mubr.f32.gmra.mxu0 %v5122_v30  ;;  %v4463_v33 = vld [vmem:[#allocation2 + $0x148] sm:$0xff] }
 0x236   : > { %12582 = vst [vmem:[#allocation32_spill] sm:$0xff] %v11480_v22  ;;  %v3642_v14 = vadd.f32 %v9396_v27, %v12584_v47  ;;  %9701 = vmatprep.mubr.f32.mxu1 %v11340_v17  ;;  %9835 = vmatprep.mubr.f32.mxu0 %v5123_v12  ;;  %v3936_v59 = vpop.f32.mrf.mxu0  ;;  %v5125_v30 = vld [vmem:[#allocation2 + $0x169] sm:$0xff]  ;;  %v12588_v47 = vld [vmem:[#allocation13_spill] sm:$0xff] }
 0x237   : > { %v3258_v43 = vpop.f32.mrf.mxu1 }
 0x238   : > { %v11486_v19 = vadd.f32 %v9524_v34, %v3642_v14  ;;  %v3641_v60 = vadd.f32 %v3258_v43, %v2983_v39  ;;  %v9533_v32 = vpop.f32.mrf.mxu0  ;;  %v5127_v39 = vld [vmem:[#allocation2 + $0x179] sm:$0xff] }
 0x239   : > { %v9399_v22 = vpop.f32.mrf.mxu1  ;;  %9702 = vmatmul.mubr.f32.gmra.mxu1 %v11340_v17  ;;  %9836 = vmatmul.mubr.f32.gmra.mxu0 %v5124_v11 }
 0x23a   : > { %12585 = vst [vmem:[#allocation12_spill] sm:$0xff] %v11486_v19  ;;  %v11491_v27 = vadd.f32 %v3916_v42, %v3641_v60  ;;  %v3644_v12 = vadd.f32 %v9399_v22, %v12588_v47  ;;  %9704 = vmatprep.mubr.f32.mxu1 %v4463_v33  ;;  %9838 = vmatprep.mubr.f32.mxu0 %v5125_v30  ;;  %v3946_v14 = vpop.f32.mrf.mxu0  ;;  %v5128_v33 = vld [vmem:[#allocation2 + $0x181] sm:$0xff] }
 0x23b   : > { %v3268_v34 = vpop.f32.mrf.mxu1 }
 0x23c   : > { %v11494_v43 = vadd.f32 %v9527_v35, %v3644_v12  ;;  %v3643_v19 = vadd.f32 %v3268_v34, %v2985_v13  ;;  %v4468_v12 = vld [vmem:[#allocation2 + $0x170] sm:$0xff] }
 0x23d   : > { %v9402_v18 = vpop.f32.mrf.mxu1  ;;  %9705 = vmatmul.mubr.f32.gmra.mxu1 %v4464_v24  ;;  %v9536_v11 = vpop.f32.mrf.mxu0  ;;  %9839 = vmatmul.mubr.f32.gmra.mxu0 %v5126_v62  ;;  %v4467_v24 = vld [vmem:[#allocation2 + $0x168] sm:$0xff]  ;;  %v5130_v34 = vld [vmem:[#allocation2 + $0x191] sm:$0xff] }
 0x23e   : > { %v11496_v1 = vadd.f32 %v3926_v26, %v3643_v19  ;;  %v3646_v2 = vadd.f32 %v9402_v18, %v11189_v23  ;;  %9707 = vmatprep.mubr.f32.mxu1 %v11340_v17  ;;  %9841 = vmatprep.mubr.f32.mxu0 %v5127_v39  ;;  %v5129_v62 = vld [vmem:[#allocation2 + $0x189] sm:$0xff] }
 0x23f   : > { %v3278_v42 = vpop.f32.mrf.mxu1  ;;  %v3956_v22 = vpop.f32.mrf.mxu0 }
 0x240   : > { %v11500_v60 = vadd.f32 %v9530_v58, %v3646_v2  ;;  %v3645_v35 = vadd.f32 %v3278_v42, %v11192_v15  ;;  %v5131_v58 = vld [vmem:[#allocation2 + $0x199] sm:$0xff]  ;;  %v12590_v15 = vld [vmem:[#allocation16_spill] sm:$0xff] }
 0x241   : > { %v9405_v30 = vpop.f32.mrf.mxu1  ;;  %9708 = vmatmul.mubr.f32.gmra.mxu1 %v11340_v17  ;;  %v9539_v20 = vpop.f32.mrf.mxu0  ;;  %9842 = vmatmul.mubr.f32.gmra.mxu0 %v5128_v33 }
 0x242   : > { %v11504_v19 = vadd.f32 %v3936_v59, %v3645_v35  ;;  %v3648_v23 = vadd.f32 %v9405_v30, %v11195_v55  ;;  %9710 = vmatprep.mubr.f32.mxu1 %v4467_v24  ;;  %9844 = vmatprep.mubr.f32.mxu0 %v5129_v62  ;;  %v12592_v59 = vld [vmem:[#allocation17_spill] sm:$0xff]  ;;  %v5132_v62 = vld [vmem:[#allocation2 + $0x1a1] sm:$0xff] }
 0x243   : > { %v3288_v18 = vpop.f32.mrf.mxu1  ;;  %v3966_v26 = vpop.f32.mrf.mxu0 }
 0x244   : > { %v11507_v13 = vadd.f32 %v9533_v32, %v3648_v23  ;;  %v3647_v47 = vadd.f32 %v3288_v18, %v12590_v15  ;;  %v12594_v32 = vld [vmem:[#allocation18_spill] sm:$0xff]  ;;  %v4471_v18 = vld [vmem:[#allocation2 + $0x188] sm:$0xff] }
 0x245   : > { %v9408_v39 = vpop.f32.mrf.mxu1  ;;  %9711 = vmatmul.mubr.f32.gmra.mxu1 %v4468_v12  ;;  %v9542_v2 = vpop.f32.mrf.mxu0  ;;  %9845 = vmatmul.mubr.f32.gmra.mxu0 %v5130_v34  ;;  %v12595_v12 = vld [vmem:[#allocation19_spill] sm:$0xff] }
 0x246   : > { %12589 = vst [vmem:[#allocation11_spill] sm:$0xff] %v11507_v13  ;;  %v11510_v42 = vadd.f32 %v3946_v14, %v3647_v47  ;;  %v3650_v35 = vadd.f32 %v9408_v39, %v12592_v59  ;;  %9713 = vmatprep.mubr.f32.mxu1 %v11340_v17  ;;  %9847 = vmatprep.mubr.f32.mxu0 %v5131_v58  ;;  %v5133_v14 = vld [vmem:[#allocation2 + $0x1a9] sm:$0xff] }
 0x247   : > { %v3298_v55 = vpop.f32.mrf.mxu1  ;;  %v3976_v33 = vpop.f32.mrf.mxu0 }
 0x248   : > { %12591 = vst [vmem:[#allocation15_spill] sm:$0xff] %v11510_v42  ;;  %v11514_v30 = vadd.f32 %v9536_v11, %v3650_v35  ;;  %v3649_v24 = vadd.f32 %v3298_v55, %v12594_v32  ;;  %v5135_v11 = vld [vmem:[#allocation2 + $0x1b9] sm:$0xff]  ;;  %v12597_v35 = vld [vmem:[#allocation4_spill] sm:$0xff] }
 0x249   : > { %v9411_v23 = vpop.f32.mrf.mxu1  ;;  %9714 = vmatmul.mubr.f32.gmra.mxu1 %v11340_v17  ;;  %v9545_v15 = vpop.f32.mrf.mxu0  ;;  %9848 = vmatmul.mubr.f32.gmra.mxu0 %v5132_v62  ;;  %v4472_v32 = vld [vmem:[#allocation2 + $0x190] sm:$0xff] }
 0x24a   : > { %12593 = vst [vmem:[#allocation14_spill] sm:$0xff] %v11514_v30  ;;  %v11518_v47 = vadd.f32 %v3956_v22, %v3649_v24  ;;  %v3652_v34 = vadd.f32 %v9411_v23, %v12595_v12  ;;  %9716 = vmatprep.mubr.f32.mxu1 %v4471_v18  ;;  %9850 = vmatprep.mubr.f32.mxu0 %v5133_v14  ;;  %v5134_v30 = vld [vmem:[#allocation2 + $0x1b1] sm:$0xff] }
 0x24b   : > { %v3308_v58 = vpop.f32.mrf.mxu1  ;;  %v3986_v39 = vpop.f32.mrf.mxu0  ;;  %v12599_v22 = vld [vmem:[#allocation5_spill] sm:$0xff] }
 0x24c   : > { %v11521_v59 = vadd.f32 %v9539_v20, %v3652_v34  ;;  %v3651_v55 = vadd.f32 %v3308_v58, %v12597_v35  ;;  %v12601_v20 = vld [vmem:[#allocation6_spill] sm:$0xff]  ;;  %v4475_v35 = vld [vmem:[#allocation2 + $0x1a8] sm:$0xff] }
 0x24d   : > { %v9414_v42 = vpop.f32.mrf.mxu1  ;;  %9717 = vmatmul.mubr.f32.gmra.mxu1 %v4472_v32  ;;  %v9548_v13 = vpop.f32.mrf.mxu0  ;;  %9851 = vmatmul.mubr.f32.gmra.mxu0 %v5134_v30  ;;  %v5136_v34 = vld [vmem:[#allocation2 + $0x1c1] sm:$0xff] }
 0x24e   : > { %12596 = vst [vmem:[#allocation13_spill] sm:$0xff] %v11521_v59  ;;  %v11524_v62 = vadd.f32 %v3966_v26, %v3651_v55  ;;  %v3654_v24 = vadd.f32 %v9414_v42, %v12599_v22  ;;  %9719 = vmatprep.mubr.f32.mxu1 %v11340_v17  ;;  %9853 = vmatprep.mubr.f32.mxu0 %v5135_v11  ;;  %v5137_v26 = vld [vmem:[#allocation2 + $0x1c9] sm:$0xff] }
 0x24f   : > { %v3318_v23 = vpop.f32.mrf.mxu1  ;;  %v3996_v18 = vpop.f32.mrf.mxu0  ;;  %v12602_v42 = vld [vmem:[#allocation7_spill] sm:$0xff] }
 0x250   : > { %12598 = vst [vmem:[#allocation16_spill] sm:$0xff] %v11524_v62  ;;  %v11528_v14 = vadd.f32 %v9542_v2, %v3654_v24  ;;  %v3653_v12 = vadd.f32 %v3318_v23, %v12601_v20  ;;  %v5139_v2 = vld [vmem:[#allocation2 + $0x1d9] sm:$0xff]  ;;  %v4476_v20 = vld [vmem:[#allocation2 + $0x1b0] sm:$0xff] }
 0x251   : > { %v9417_v58 = vpop.f32.mrf.mxu1  ;;  %9720 = vmatmul.mubr.f32.gmra.mxu1 %v11340_v17  ;;  %v9551_v32 = vpop.f32.mrf.mxu0  ;;  %9854 = vmatmul.mubr.f32.gmra.mxu0 %v5136_v34 }
 0x252   : > { %12600 = vst [vmem:[#allocation17_spill] sm:$0xff] %v11528_v14  ;;  %v11532_v30 = vadd.f32 %v3976_v33, %v3653_v12  ;;  %v3656_v55 = vadd.f32 %v9417_v58, %v12602_v42  ;;  %9722 = vmatprep.mubr.f32.mxu1 %v4475_v35  ;;  %9856 = vmatprep.mubr.f32.mxu0 %v5137_v26  ;;  %v5138_v14 = vld [vmem:[#allocation2 + $0x1d1] sm:$0xff]  ;;  %v4479_v42 = vld [vmem:[#allocation2 + $0x1c8] sm:$0xff] }
 0x253   : > { %v3328_v11 = vpop.f32.mrf.mxu1  ;;  %v4006_v22 = vpop.f32.mrf.mxu0 }
 0x254   : > { %v11535_v24 = vadd.f32 %v9545_v15, %v3656_v55  ;;  %v3655_v23 = vadd.f32 %v3328_v11, %v11228_v4  ;;  %v5140_v4 = vld [vmem:[#allocation2 + $0x1e1] sm:$0xff] }
 0x255   : > { %v9420_v62 = vpop.f32.mrf.mxu1  ;;  %9723 = vmatmul.mubr.f32.gmra.mxu1 %v4476_v20  ;;  %v9554_v59 = vpop.f32.mrf.mxu0  ;;  %9857 = vmatmul.mubr.f32.gmra.mxu0 %v5138_v14 }
 0x256   : > { %v11538_v34 = vadd.f32 %v3986_v39, %v3655_v23  ;;  %v3658_v33 = vadd.f32 %v9420_v62, %v11231_v6  ;;  %9725 = vmatprep.mubr.f32.mxu1 %v11340_v17  ;;  %9859 = vmatprep.mubr.f32.mxu0 %v5139_v2  ;;  %v5141_v39 = vld [vmem:[#allocation2 + $0x1e9] sm:$0xff] }
 0x257   : > { %v3338_v12 = vpop.f32.mrf.mxu1  ;;  %v4016_v58 = vpop.f32.mrf.mxu0  ;;  %v12605_v6 = vld [vmem:[#allocation8_spill] sm:$0xff] }
 0x258   : > { %12603 = vst [vmem:[#allocation18_spill] sm:$0xff] %v11538_v34  ;;  %v11542_v35 = vadd.f32 %v9548_v13, %v3658_v33  ;;  %v3657_v15 = vadd.f32 %v3338_v12, %v11234_v52  ;;  %v5143_v13 = vld [vmem:[#allocation2 + $0x1f9] sm:$0xff]  ;;  %v4480_v33 = vld [vmem:[#allocation2 + $0x1d0] sm:$0xff] }
 0x259   : > { %v9423_v26 = vpop.f32.mrf.mxu1  ;;  %9726 = vmatmul.mubr.f32.gmra.mxu1 %v11340_v17  ;;  %v9557_v55 = vpop.f32.mrf.mxu0  ;;  %9860 = vmatmul.mubr.f32.gmra.mxu0 %v5140_v4  ;;  %v12607_v52 = vld [vmem:[#allocation9_spill] sm:$0xff] }
 0x25a   : > { %12604 = vst [vmem:[#allocation19_spill] sm:$0xff] %v11542_v35  ;;  %v11546_v14 = vadd.f32 %v3996_v18, %v3657_v15  ;;  %v3660_v62 = vadd.f32 %v9423_v26, %v12605_v6  ;;  %9728 = vmatprep.mubr.f32.mxu1 %v4479_v42  ;;  %9862 = vmatprep.mubr.f32.mxu0 %v5141_v39  ;;  %v5142_v12 = vld [vmem:[#allocation2 + $0x1f1] sm:$0xff]  ;;  %v12609_v18 = vld [vmem:[#allocation10_spill] sm:$0xff] }
 0x25b   : > { %v3348_v11 = vpop.f32.mrf.mxu1  ;;  %v4026_v2 = vpop.f32.mrf.mxu0 }
 0x25c   : > { %v11549_v23 = vadd.f32 %v9551_v32, %v3660_v62  ;;  %v3659_v20 = vadd.f32 %v3348_v11, %v12607_v52  ;;  %v12611_v32 = vld [vmem:[#allocation20_spill] sm:$0xff]  ;;  %v5144_v62 = vld [vmem:[#allocation2 + $0x201] sm:$0xff] }
 0x25d   : > { %v9426_v35 = vpop.f32.mrf.mxu1  ;;  %9729 = vmatmul.mubr.f32.gmra.mxu1 %v4480_v33  ;;  %v9560_v34 = vpop.f32.mrf.mxu0  ;;  %9863 = vmatmul.mubr.f32.gmra.mxu0 %v5142_v12  ;;  %v4483_v52 = vld [vmem:[#allocation2 + $0x1e8] sm:$0xff] }
 0x25e   : > { %12606 = vst [vmem:[#allocation4_spill] sm:$0xff] %v11549_v23  ;;  %v11552_v4 = vadd.f32 %v4006_v22, %v3659_v20  ;;  %v3662_v15 = vadd.f32 %v9426_v35, %v12609_v18  ;;  %9731 = vmatprep.mubr.f32.mxu1 %v11340_v17  ;;  %9865 = vmatprep.mubr.f32.mxu0 %v5143_v13  ;;  %v5145_v22 = vld [vmem:[#allocation2 + $0x209] sm:$0xff]  ;;  %v12612_v35 = vld [vmem:[#allocation21_spill] sm:$0xff] }
 0x25f   : > { %v3358_v26 = vpop.f32.mrf.mxu1  ;;  %v4036_v42 = vpop.f32.mrf.mxu0 }
 0x260   : > { %12608 = vst [vmem:[#allocation5_spill] sm:$0xff] %v11552_v4  ;;  %v11556_v39 = vadd.f32 %v9554_v59, %v3662_v15  ;;  %v3661_v6 = vadd.f32 %v3358_v26, %v12611_v32  ;;  %v5147_v59 = vld [vmem:[#allocation2 + $0x219] sm:$0xff]  ;;  %v4484_v32 = vld [vmem:[#allocation2 + $0x1f0] sm:$0xff] }
 0x261   : > { %v9429_v11 = vpop.f32.mrf.mxu1  ;;  %9732 = vmatmul.mubr.f32.gmra.mxu1 %v11340_v17  ;;  %v9563_v33 = vpop.f32.mrf.mxu0  ;;  %9866 = vmatmul.mubr.f32.gmra.mxu0 %v5144_v62 }
 0x262   : > { %12610 = vst [vmem:[#allocation6_spill] sm:$0xff] %v11556_v39  ;;  %v11560_v20 = vadd.f32 %v4016_v58, %v3661_v6  ;;  %v3664_v12 = vadd.f32 %v9429_v11, %v12612_v35  ;;  %9734 = vmatprep.mubr.f32.mxu1 %v4483_v52  ;;  %9868 = vmatprep.mubr.f32.mxu0 %v5145_v22  ;;  %v5146_v39 = vld [vmem:[#allocation2 + $0x211] sm:$0xff]  ;;  %v5148_v6 = vld [vmem:[#allocation2 + $0x221] sm:$0xff] }
 0x263   : > { %v3368_v13 = vpop.f32.mrf.mxu1  ;;  %v4046_v18 = vpop.f32.mrf.mxu0  ;;  %v4487_v35 = vld [vmem:[#allocation2 + $0x208] sm:$0xff] }
 0x264   : > { %v11563_v15 = vadd.f32 %v9557_v55, %v3664_v12  ;;  %v3663_v26 = vadd.f32 %v3368_v13, %v11251_v54 }
 0x265   : > { %v9432_v4 = vpop.f32.mrf.mxu1  ;;  %9735 = vmatmul.mubr.f32.gmra.mxu1 %v4484_v32  ;;  %v9566_v23 = vpop.f32.mrf.mxu0  ;;  %9869 = vmatmul.mubr.f32.gmra.mxu0 %v5146_v39 }
 0x266   : > { %v11566_v62 = vadd.f32 %v4026_v2, %v3663_v26  ;;  %v3666_v58 = vadd.f32 %v9432_v4, %v11253_v44  ;;  %9737 = vmatprep.mubr.f32.mxu1 %v11340_v17  ;;  %9871 = vmatprep.mubr.f32.mxu0 %v5147_v59  ;;  %v6401_v2 = vld [vmem:[#allocation2 + $0x48] sm:$0xff]  ;;  %v6402_v26 = vld [vmem:[#allocation2 + $0x50] sm:$0xff] }
 0x267   : > { %v3378_v11 = vpop.f32.mrf.mxu1  ;;  %v4056_v52 = vpop.f32.mrf.mxu0 }
 0x268   : > { %v11570_v55 = vadd.f32 %v9560_v34, %v3666_v58  ;;  %v3665_v54 = vadd.f32 %v3378_v11, %v11255_v48  ;;  %v4488_v48 = vld [vmem:[#allocation2 + $0x210] sm:$0xff] }
 0x269   : > { %v9435_v22 = vpop.f32.mrf.mxu1  ;;  %9738 = vmatmul.mubr.f32.gmra.mxu1 %v11340_v17  ;;  %v9569_v12 = vpop.f32.mrf.mxu0  ;;  %9872 = vmatmul.mubr.f32.gmra.mxu0 %v5148_v6 }
 0x26a   : > { %v11574_v39 = vadd.f32 %v4036_v42, %v3665_v54  ;;  %v3668_v44 = vadd.f32 %v9435_v22, %v11257_v61  ;;  %9740 = vmatprep.mubr.f32.mxu1 %v4487_v35  ;;  %10034 = vmatprep.mubr.f32.mxu0 %v6401_v2  ;;  %v5743_v22 = vld [vmem:[#allocation2 + $0x47] sm:$0xff] }
 0x26b   : > { %v3388_v4 = vpop.f32.mrf.mxu1  ;;  %v4066_v13 = vpop.f32.mrf.mxu0 }
 0x26c   : > { %v11577_v59 = vadd.f32 %v9563_v33, %v3668_v44  ;;  %v3667_v34 = vadd.f32 %v3388_v4, %v11260_v40 }
 0x26d   : > { %v9438_v32 = vpop.f32.mrf.mxu1  ;;  %9741 = vmatmul.mubr.f32.gmra.mxu1 %v4488_v48  ;;  %v9572_v58 = vpop.f32.mrf.mxu0  ;;  %10035 = vmatmul.mubr.f32.vlgmr.msra.gmra.mxu0 %v6402_v26  ;;  %v8171_v48 = vld [vmem:[%s12530_s3 + $0x470] sm:$0xff] }
 0x26e   : > { %v11580_v6 = vadd.f32 %v4046_v18, %v3667_v34  ;;  %v3670_v42 = vadd.f32 %v9438_v32, %v11266_v31  ;;  %9743 = vmatprep.mubr.f32.mxu1 %v11340_v17  ;;  %10037 = vmatprep.mubr.f32.mxu0 %v11340_v17  ;;  %v6405_v18 = vld [vmem:[#allocation2 + $0x68] sm:$0xff]  ;;  %v6406_v26 = vld [vmem:[#allocation2 + $0x70] sm:$0xff] }
 0x26f   : > { %v3398_v61 = vpop.f32.mrf.mxu1  ;;  %v4076_v11 = vpop.f32.mrf.mxu0  ;;  %v5744_v34 = vld [vmem:[#allocation2 + $0x4f] sm:$0xff] }
 0x270   : > { %v11585_v33 = vadd.f32 %v9566_v23, %v3670_v42  ;;  %v3669_v40 = vadd.f32 %v3398_v61, %v11270_v41 }
 0x271   : > { %v9441_v54 = vpop.f32.mrf.mxu1  ;;  %9744 = vmatmul.mubr.f32.gmra.mxu1 %v11340_v17  ;;  %v9575_v35 = vpop.f32.mrf.mxu0  ;;  %10038 = vmatmul.mubr.f32.gmra.mxu0 %v11340_v17 }
 0x272   : > { %v11590_v2 = vadd.f32 %v4056_v52, %v3669_v40  ;;  %v3672_v31 = vadd.f32 %v9441_v54, %v11276_v25  ;;  %9906 = vmatprep.mubr.f32.mxu1 %v5743_v22  ;;  %10040 = vmatprep.mubr.f32.mxu0 %v6405_v18  ;;  %v5745_v52 = vld [vmem:[#allocation2 + $0x57] sm:$0xff] }
 0x273   : > { %v3408_v44 = vpop.f32.mrf.mxu1  ;;  %v4086_v4 = vpop.f32.mrf.mxu0 }
 0x274   : > { %v11593_v23 = vadd.f32 %v9569_v12, %v3672_v31  ;;  %v3671_v41 = vadd.f32 %v3408_v44, %v11279_v50  ;;  %v5746_v12 = vld [vmem:[#allocation2 + $0x5f] sm:$0xff]  ;;  %v6409_v31 = vld [vmem:[#allocation2 + $0x88] sm:$0xff] }
 0x275   : > { %v9444_v32 = vpop.f32.mrf.mxu1  ;;  %9907 = vmatmul.mubr.f32.vlgmr.msra.gmra.mxu1 %v5744_v34  ;;  %v9578_v42 = vpop.f32.mrf.mxu0  ;;  %10041 = vmatmul.mubr.f32.gmra.mxu0 %v6406_v26  ;;  %v5748_v26 = vld [vmem:[#allocation2 + $0x6f] sm:$0xff] }
 0x276   : > { %v11599_v25 = vadd.f32 %v4066_v13, %v3671_v41  ;;  %v3674_v61 = vadd.f32 %v9444_v32, %v11285_v63  ;;  %10131 = vmatpush3.msra.mxu1 %v11474_v37  ;;  %9909 = vmatprep.mubr.f32.mxu1 %v5745_v52  ;;  %v8170_v13 = vld [vmem:[%s12530_s3 + $0x468] sm:$0xff]  ;;  %v6410_v32 = vld [vmem:[#allocation2 + $0x90] sm:$0xff]  ;;  %v8169_v52 = vld [vmem:[%s12530_s3 + $0x460] sm:$0xff] }
 0x277   : > { %v3418_v50 = vpop.f32.mrf.mxu1  ;;  %10132 = vmatprep.subr.mxu1 %v8171_v48  ;;  %v4096_v40 = vpop.f32.mrf.mxu0  ;;  %10043 = vmatprep.mubr.f32.mxu0 %v11340_v17  ;;  %v5747_v63 = vld [vmem:[#allocation2 + $0x67] sm:$0xff] }
 0x278   : > { %v11604_v54 = vadd.f32 %v9572_v58, %v3674_v61  ;;  %v3673_v22 = vadd.f32 %v3418_v50, %v11290_v51  ;;  %10133 = vmatpush3.msra.mxu1 %v8171_v48  ;;  %v5749_v61 = vld [vmem:[#allocation2 + $0x77] sm:$0xff] }
 0x279   : > { %v9447_v18 = vpop.f32.mrf.mxu1  ;;  %9910 = vmatmul.mubr.f32.gmra.mxu1 %v5746_v12  ;;  %v9581_v37 = vpop.f32.mrf.mxu0  ;;  %10044 = vmatmul.mubr.f32.gmra.mxu0 %v11340_v17 }
 0x27a   : > { %v11611_v44 = vadd.f32 %v4076_v11, %v3673_v22  ;;  %v3676_v41 = vadd.f32 %v9447_v18, %v11300_v3  ;;  %9912 = vmatprep.mubr.f32.mxu1 %v5747_v63  ;;  %10046 = vmatprep.mubr.f32.mxu0 %v6409_v31  ;;  %v8168_v63 = vld [vmem:[%s12530_s3 + $0x458] sm:$0xff]  ;;  %v5751_v31 = vld [vmem:[#allocation2 + $0x87] sm:$0xff] }
 0x27b   : > { %v3428_v58 = vpop.f32.mrf.mxu1  ;;  %v4106_v51 = vpop.f32.mrf.mxu0  ;;  %10134 = vmatprep.subr.mxu1 %v8170_v13 }
 0x27c   : > { %v11614_v34 = vadd.f32 %v9575_v35, %v3676_v41  ;;  %v3675_v48 = vadd.f32 %v3428_v58, %v11303_v53  ;;  %10135 = vmatpush3.msra.mxu1 %v8170_v13  ;;  %v5750_v35 = vld [vmem:[#allocation2 + $0x7f] sm:$0xff]  ;;  %v6413_v41 = vld [vmem:[#allocation2 + $0xa8] sm:$0xff] }
 0x27d   : > { %v9450_v11 = vpop.f32.mrf.mxu1  ;;  %9913 = vmatmul.mubr.f32.gmra.mxu1 %v5748_v26  ;;  %v9584_v3 = vpop.f32.mrf.mxu0  ;;  %10047 = vmatmul.mubr.f32.gmra.mxu0 %v6410_v32 }
 0x27e   : > { %v11620_v12 = vadd.f32 %v4086_v4, %v3675_v48  ;;  %v3678_v50 = vadd.f32 %v9450_v11, %v11312_v49  ;;  %9915 = vmatprep.mubr.f32.mxu1 %v5749_v61  ;;  %10049 = vmatprep.mubr.f32.mxu0 %v11340_v17  ;;  %v6414_v11 = vld [vmem:[#allocation2 + $0xb0] sm:$0xff] }
 0x27f   : > { %v3438_v53 = vpop.f32.mrf.mxu1  ;;  %v4116_v22 = vpop.f32.mrf.mxu0  ;;  %10136 = vmatprep.subr.mxu1 %v8169_v52  ;;  %v5753_v61 = vld [vmem:[#allocation2 + $0x97] sm:$0xff] }
 0x280   : > { %v11624_v13 = vadd.f32 %v9578_v42, %v3678_v50  ;;  %v3677_v18 = vadd.f32 %v3438_v53, %v11316_v0  ;;  %10137 = vmatpush3.msra.mxu1 %v8169_v52  ;;  %v5752_v52 = vld [vmem:[#allocation2 + $0x8f] sm:$0xff]  ;;  %v11643_v53 = vld [vmem:[#allocation2] sm:$0xff] }
 0x281   : > { %v9453_v4 = vpop.f32.mrf.mxu1  ;;  %9916 = vmatmul.mubr.f32.gmra.mxu1 %v5750_v35  ;;  %v9587_v49 = vpop.f32.mrf.mxu0  ;;  %10050 = vmatmul.mubr.f32.gmra.mxu0 %v11340_v17  ;;  %v8167_v17 = vld [vmem:[%s12530_s3 + $0x450] sm:$0xff] }
 0x282   : > { %v11631_v58 = vadd.f32 %v4096_v40, %v3677_v18  ;;  %v3680_v48 = vadd.f32 %v9453_v4, %v11326_v28  ;;  %9918 = vmatprep.mubr.f32.mxu1 %v5751_v31  ;;  %10052 = vmatprep.mubr.f32.mxu0 %v6413_v41 }
 0x283   : > { %v3448_v42 = vpop.f32.mrf.mxu1  ;;  %v4126_v0 = vpop.f32.mrf.mxu0  ;;  %10138 = vmatprep.subr.mxu1 %v8168_v63 }
 0x284   : > { %v11634_v26 = vadd.f32 %v9581_v37, %v3680_v48  ;;  %v3679_v32 = vadd.f32 %v3448_v42, %v11329_v7  ;;  %10139 = vmatpush3.msra.mxu1 %v8168_v63  ;;  %v5754_v37 = vld [vmem:[#allocation2 + $0x9f] sm:$0xff]  ;;  %v6417_v48 = vld [vmem:[#allocation2 + $0xc8] sm:$0xff] }
 0x285   : > { %v9456_v40 = vpop.f32.mrf.mxu1  ;;  %9919 = vmatmul.mubr.f32.gmra.mxu1 %v5752_v52  ;;  %v9590_v28 = vpop.f32.mrf.mxu0  ;;  %10053 = vmatmul.mubr.f32.gmra.mxu0 %v6414_v11 }
 0x286   : > { %v11640_v50 = vadd.f32 %v4106_v51, %v3679_v32  ;;  %v3682_v35 = vadd.f32 %v9456_v40, %v11338_v8  ;;  %9921 = vmatprep.mubr.f32.mxu1 %v5753_v61  ;;  %10055 = vmatprep.mubr.f32.mxu0 %v11643_v53  ;;  %v8166_v51 = vld [vmem:[%s12530_s3 + $0x448] sm:$0xff]  ;;  %v6418_v40 = vld [vmem:[#allocation2 + $0xd0] sm:$0xff]  ;;  %v8165_v61 = vld [vmem:[%s12530_s3 + $0x440] sm:$0xff] }
 0x287   : > { %v3458_v7 = vpop.f32.mrf.mxu1  ;;  %v4136_v18 = vpop.f32.mrf.mxu0  ;;  %10140 = vmatprep.subr.mxu1 %v8167_v17  ;;  %v5755_v8 = vld [vmem:[#allocation2 + $0xa7] sm:$0xff] }
 0x288   : > { %v11646_v63 = vadd.f32 %v9584_v3, %v3682_v35  ;;  %v3681_v4 = vadd.f32 %v3458_v7, %v11344_v9  ;;  %10141 = vmatpush3.msra.mxu1 %v8167_v17  ;;  %v5756_v17 = vld [vmem:[#allocation2 + $0xaf] sm:$0xff]  ;;  %v5757_v35 = vld [vmem:[#allocation2 + $0xb7] sm:$0xff] }
 0x289   : > { %v9459_v31 = vpop.f32.mrf.mxu1  ;;  %9922 = vmatmul.mubr.f32.gmra.mxu1 %v5754_v37  ;;  %v9593_v41 = vpop.f32.mrf.mxu0  ;;  %10056 = vmatmul.mubr.f32.gmra.mxu0 %v11643_v53 }
 0x28a   : > { %v11653_v42 = vadd.f32 %v4116_v22, %v3681_v4  ;;  %v3684_v32 = vadd.f32 %v9459_v31, %v11354_v45  ;;  %9924 = vmatprep.mubr.f32.mxu1 %v5755_v8  ;;  %10058 = vmatprep.mubr.f32.mxu0 %v6417_v48  ;;  %v8164_v8 = vld [vmem:[%s12530_s3 + $0x438] sm:$0xff]  ;;  %v5759_v48 = vld [vmem:[#allocation2 + $0xc7] sm:$0xff] }
 0x28b   : > { %v3468_v3 = vpop.f32.mrf.mxu1  ;;  %v4146_v9 = vpop.f32.mrf.mxu0  ;;  %10142 = vmatprep.subr.mxu1 %v8166_v51 }
 0x28c   : > { %v11656_v52 = vadd.f32 %v9587_v49, %v3684_v32  ;;  %v3683_v11 = vadd.f32 %v3468_v3, %v11357_v16  ;;  %10143 = vmatpush3.msra.mxu1 %v8166_v51  ;;  %v5758_v49 = vld [vmem:[#allocation2 + $0xbf] sm:$0xff]  ;;  %v6421_v32 = vld [vmem:[#allocation2 + $0xe8] sm:$0xff] }
 0x28d   : > { %v9462_v22 = vpop.f32.mrf.mxu1  ;;  %9925 = vmatmul.mubr.f32.gmra.mxu1 %v5756_v17  ;;  %v9596_v45 = vpop.f32.mrf.mxu0  ;;  %10059 = vmatmul.mubr.f32.gmra.mxu0 %v6418_v40 }
 0x28e   : > { %v11662_v37 = vadd.f32 %v4126_v0, %v3683_v11  ;;  %v3686_v7 = vadd.f32 %v9462_v22, %v11366_v10  ;;  %9927 = vmatprep.mubr.f32.mxu1 %v5757_v35  ;;  %10061 = vmatprep.mubr.f32.mxu0 %v11643_v53  ;;  %v6422_v22 = vld [vmem:[#allocation2 + $0xf0] sm:$0xff] }
 0x28f   : > { %v3478_v16 = vpop.f32.mrf.mxu1  ;;  %v4156_v4 = vpop.f32.mrf.mxu0  ;;  %10144 = vmatprep.subr.mxu1 %v8165_v61  ;;  %v8163_v35 = vld [vmem:[%s12530_s3 + $0x430] sm:$0xff] }
 0x290   : > { %v11666_v51 = vadd.f32 %v9590_v28, %v3686_v7  ;;  %v3685_v31 = vadd.f32 %v3478_v16, %v11370_v21  ;;  %10145 = vmatpush3.msra.mxu1 %v8165_v61  ;;  %v5760_v61 = vld [vmem:[#allocation2 + $0xcf] sm:$0xff]  ;;  %v5761_v7 = vld [vmem:[#allocation2 + $0xd7] sm:$0xff] }
 0x291   : > { %v9465_v0 = vpop.f32.mrf.mxu1  ;;  %9928 = vmatmul.mubr.f32.gmra.mxu1 %v5758_v49  ;;  %v9599_v10 = vpop.f32.mrf.mxu0  ;;  %10062 = vmatmul.mubr.f32.gmra.mxu0 %v11643_v53 }
 0x292   : > { %v11673_v3 = vadd.f32 %v4136_v18, %v3685_v31  ;;  %v3688_v11 = vadd.f32 %v9465_v0, %v11380_v57  ;;  %9930 = vmatprep.mubr.f32.mxu1 %v5759_v48  ;;  %10064 = vmatprep.mubr.f32.mxu0 %v6421_v32  ;;  %v8162_v48 = vld [vmem:[%s12530_s3 + $0x428] sm:$0xff] }
 0x293   : > { %v3488_v28 = vpop.f32.mrf.mxu1  ;;  %v4166_v21 = vpop.f32.mrf.mxu0  ;;  %10146 = vmatprep.subr.mxu1 %v8164_v8  ;;  %v5763_v32 = vld [vmem:[#allocation2 + $0xe7] sm:$0xff] }
 0x294   : > { %v11676_v17 = vadd.f32 %v9593_v41, %v3688_v11  ;;  %v3687_v40 = vadd.f32 %v3488_v28, %v11383_v29  ;;  %10147 = vmatpush3.msra.mxu1 %v8164_v8  ;;  %v5762_v41 = vld [vmem:[#allocation2 + $0xdf] sm:$0xff]  ;;  %v6425_v11 = vld [vmem:[#allocation2 + $0x108] sm:$0xff] }
 0x295   : > { %v9468_v18 = vpop.f32.mrf.mxu1  ;;  %9931 = vmatmul.mubr.f32.gmra.mxu1 %v5760_v61  ;;  %v9602_v57 = vpop.f32.mrf.mxu0  ;;  %10065 = vmatmul.mubr.f32.gmra.mxu0 %v6422_v22 }
 0x296   : > { %v11682_v49 = vadd.f32 %v4146_v9, %v3687_v40  ;;  %v3690_v16 = vadd.f32 %v9468_v18, %v11392_v56  ;;  %9933 = vmatprep.mubr.f32.mxu1 %v5761_v7  ;;  %10067 = vmatprep.mubr.f32.mxu0 %v11643_v53  ;;  %v6426_v18 = vld [vmem:[#allocation2 + $0x110] sm:$0xff]  ;;  %v8161_v7 = vld [vmem:[%s12530_s3 + $0x420] sm:$0xff] }
 0x297   : > { %v3498_v29 = vpop.f32.mrf.mxu1  ;;  %v4176_v31 = vpop.f32.mrf.mxu0  ;;  %10148 = vmatprep.subr.mxu1 %v8163_v35 }
 0x298   : > { %v11686_v8 = vadd.f32 %v9596_v45, %v3690_v16  ;;  %v3689_v0 = vadd.f32 %v3498_v29, %v11396_v36  ;;  %10149 = vmatpush3.msra.mxu1 %v8163_v35  ;;  %v5764_v35 = vld [vmem:[#allocation2 + $0xef] sm:$0xff]  ;;  %v5765_v16 = vld [vmem:[#allocation2 + $0xf7] sm:$0xff] }
 0x299   : > { %v9471_v9 = vpop.f32.mrf.mxu1  ;;  %9934 = vmatmul.mubr.f32.gmra.mxu1 %v5762_v41  ;;  %v9605_v56 = vpop.f32.mrf.mxu0  ;;  %10068 = vmatmul.mubr.f32.gmra.mxu0 %v11643_v53 }
 0x29a   : > { %v11693_v28 = vadd.f32 %v4156_v4, %v3689_v0  ;;  %v3692_v40 = vadd.f32 %v9471_v9, %v11406_v5  ;;  %9936 = vmatprep.mubr.f32.mxu1 %v5763_v32  ;;  %10070 = vmatprep.mubr.f32.mxu0 %v6425_v11  ;;  %v12615_v9 = vld [vmem:[#allocation22_spill] sm:$0xff]  ;;  %v8160_v11 = vld [vmem:[%s12530_s3 + $0x418] sm:$0xff] }
 0x29b   : > { %v3508_v45 = vpop.f32.mrf.mxu1  ;;  %v4186_v36 = vpop.f32.mrf.mxu0  ;;  %10150 = vmatprep.subr.mxu1 %v8162_v48 }
 0x29c   : > { %v11696_v61 = vadd.f32 %v9599_v10, %v3692_v40  ;;  %v3691_v22 = vadd.f32 %v3508_v45, %v11409_v46  ;;  %10151 = vmatpush3.msra.mxu1 %v8162_v48  ;;  %v5766_v10 = vld [vmem:[#allocation2 + $0xff] sm:$0xff]  ;;  %v5767_v40 = vld [vmem:[#allocation2 + $0x107] sm:$0xff] }
 0x29d   : > { %v9474_v4 = vpop.f32.mrf.mxu1  ;;  %9937 = vmatmul.mubr.f32.gmra.mxu1 %v5764_v35  ;;  %v9608_v5 = vpop.f32.mrf.mxu0  ;;  %10071 = vmatmul.mubr.f32.gmra.mxu0 %v6426_v18  ;;  %v6429_v45 = vld [vmem:[#allocation2 + $0x128] sm:$0xff] }
 0x29e   : > { %v11702_v41 = vadd.f32 %v4166_v21, %v3691_v22  ;;  %v3694_v29 = vadd.f32 %v9474_v4, %v11418_v38  ;;  %9939 = vmatprep.mubr.f32.mxu1 %v5765_v16  ;;  %10073 = vmatprep.mubr.f32.mxu0 %v11643_v53  ;;  %v12617_v35 = vld [vmem:[#allocation23_spill] sm:$0xff]  ;;  %v12619_v16 = vld [vmem:[#allocation24_spill] sm:$0xff] }
 0x29f   : > { %v3518_v46 = vpop.f32.mrf.mxu1  ;;  %v4196_v0 = vpop.f32.mrf.mxu0  ;;  %10152 = vmatprep.subr.mxu1 %v8161_v7 }
 0x2a0   : > { %12613 = vst [vmem:[#allocation7_spill] sm:$0xff] %v11702_v41  ;;  %v11706_v48 = vadd.f32 %v9602_v57, %v3694_v29  ;;  %v3693_v32 = vadd.f32 %v3518_v46, %v12615_v9  ;;  %10153 = vmatpush3.msra.mxu1 %v8161_v7  ;;  %v5768_v46 = vld [vmem:[#allocation2 + $0x10f] sm:$0xff] }
 0x2a1   : > { %v9477_v21 = vpop.f32.mrf.mxu1  ;;  %9940 = vmatmul.mubr.f32.gmra.mxu1 %v5766_v10  ;;  %v9611_v38 = vpop.f32.mrf.mxu0  ;;  %10074 = vmatmul.mubr.f32.gmra.mxu0 %v11643_v53  ;;  %v6430_v10 = vld [vmem:[#allocation2 + $0x130] sm:$0xff] }
 0x2a2   : > { %12614 = vst [vmem:[#allocation8_spill] sm:$0xff] %v11706_v48  ;;  %v11713_v22 = vadd.f32 %v4176_v31, %v3693_v32  ;;  %v3696_v18 = vadd.f32 %v9477_v21, %v12617_v35  ;;  %9942 = vmatprep.mubr.f32.mxu1 %v5767_v40  ;;  %10076 = vmatprep.mubr.f32.mxu0 %v6429_v45  ;;  %v8159_v9 = vld [vmem:[%s12530_s3 + $0x410] sm:$0xff]  ;;  %v12621_v45 = vld [vmem:[#allocation25_spill] sm:$0xff] }
 0x2a3   : > { %v3528_v57 = vpop.f32.mrf.mxu1  ;;  %v4206_v4 = vpop.f32.mrf.mxu0  ;;  %10154 = vmatprep.subr.mxu1 %v8160_v11  ;;  %v5769_v32 = vld [vmem:[#allocation2 + $0x117] sm:$0xff] }
 0x2a4   : > { %12616 = vst [vmem:[#allocation9_spill] sm:$0xff] %v11713_v22  ;;  %v11716_v7 = vadd.f32 %v9605_v56, %v3696_v18  ;;  %v3695_v29 = vadd.f32 %v3528_v57, %v12619_v16  ;;  %10155 = vmatpush3.msra.mxu1 %v8160_v11  ;;  %v5770_v56 = vld [vmem:[#allocation2 + $0x11f] sm:$0xff] }
 0x2a5   : > { %v9480_v31 = vpop.f32.mrf.mxu1  ;;  %9943 = vmatmul.mubr.f32.gmra.mxu1 %v5768_v46  ;;  %v9614_v21 = vpop.f32.mrf.mxu0  ;;  %10077 = vmatmul.mubr.f32.gmra.mxu0 %v6430_v10  ;;  %v12623_v16 = vld [vmem:[#allocation26_spill] sm:$0xff]  ;;  %v8158_v46 = vld [vmem:[%s12530_s3 + $0x408] sm:$0xff] }
 0x2a6   : > { %12618 = vst [vmem:[#allocation10_spill] sm:$0xff] %v11716_v7  ;;  %v11722_v40 = vadd.f32 %v4186_v36, %v3695_v29  ;;  %v3698_v35 = vadd.f32 %v9480_v31, %v12621_v45  ;;  %9945 = vmatprep.mubr.f32.mxu1 %v5769_v32  ;;  %10079 = vmatprep.mubr.f32.mxu0 %v11643_v53  ;;  %v5771_v29 = vld [vmem:[#allocation2 + $0x127] sm:$0xff] }
 0x2a7   : > { %v3538_v18 = vpop.f32.mrf.mxu1  ;;  %v4216_v57 = vpop.f32.mrf.mxu0  ;;  %10156 = vmatprep.subr.mxu1 %v8159_v9  ;;  %v6433_v31 = vld [vmem:[#allocation2 + $0x148] sm:$0xff]  ;;  %v8157_v22 = vld [vmem:[%s12530_s3 + $0x400] sm:$0xff] }
 0x2a8   : > { %12620 = vst [vmem:[#allocation20_spill] sm:$0xff] %v11722_v40  ;;  %v11726_v11 = vadd.f32 %v9608_v5, %v3698_v35  ;;  %v3697_v7 = vadd.f32 %v3538_v18, %v12623_v16  ;;  %10157 = vmatpush3.msra.mxu1 %v8159_v9  ;;  %v12625_v45 = vld [vmem:[#allocation27_spill] sm:$0xff]  ;;  %v12627_v18 = vld [vmem:[#allocation28_spill] sm:$0xff] }
 0x2a9   : > { %v9483_v36 = vpop.f32.mrf.mxu1  ;;  %9946 = vmatmul.mubr.f32.gmra.mxu1 %v5770_v56  ;;  %v9617_v10 = vpop.f32.mrf.mxu0  ;;  %10080 = vmatmul.mubr.f32.gmra.mxu0 %v11643_v53  ;;  %v6434_v56 = vld [vmem:[#allocation2 + $0x150] sm:$0xff] }
 0x2aa   : > { %12622 = vst [vmem:[#allocation21_spill] sm:$0xff] %v11726_v11  ;;  %v11733_v32 = vadd.f32 %v4196_v0, %v3697_v7  ;;  %v3700_v40 = vadd.f32 %v9483_v36, %v12625_v45  ;;  %9948 = vmatprep.mubr.f32.mxu1 %v5771_v29  ;;  %10082 = vmatprep.mubr.f32.mxu0 %v6433_v31  ;;  %v5772_v11 = vld [vmem:[#allocation2 + $0x12f] sm:$0xff]  ;;  %v5773_v7 = vld [vmem:[#allocation2 + $0x137] sm:$0xff] }
 0x2ab   : > { %v3548_v5 = vpop.f32.mrf.mxu1  ;;  %v4226_v35 = vpop.f32.mrf.mxu0  ;;  %10158 = vmatprep.subr.mxu1 %v8158_v46  ;;  %v12629_v31 = vld [vmem:[#allocation29_spill] sm:$0xff] }
 0x2ac   : > { %12624 = vst [vmem:[#allocation22_spill] sm:$0xff] %v11733_v32  ;;  %v11736_v9 = vadd.f32 %v9611_v38, %v3700_v40  ;;  %v3699_v16 = vadd.f32 %v3548_v5, %v12627_v18  ;;  %10159 = vmatpush3.msra.mxu1 %v8158_v46  ;;  %v5774_v38 = vld [vmem:[#allocation2 + $0x13f] sm:$0xff]  ;;  %v5775_v32 = vld [vmem:[#allocation2 + $0x147] sm:$0xff] }
 0x2ad   : > { %v9486_v0 = vpop.f32.mrf.mxu1  ;;  %9949 = vmatmul.mubr.f32.gmra.mxu1 %v5772_v11  ;;  %v9780_v36 = vpop.f32.mrf.mxu0  ;;  %10083 = vmatmul.mubr.f32.gmra.mxu0 %v6434_v56  ;;  %v12631_v18 = vld [vmem:[#allocation30_spill] sm:$0xff] }
 0x2ae   : > { %12626 = vst [vmem:[#allocation23_spill] sm:$0xff] %v11736_v9  ;;  %v11742_v29 = vadd.f32 %v4206_v4, %v3699_v16  ;;  %v3702_v45 = vadd.f32 %v9486_v0, %v12629_v31  ;;  %9951 = vmatprep.mubr.f32.mxu1 %v5773_v7  ;;  %10085 = vmatprep.mubr.f32.mxu0 %v11643_v53  ;;  %v6437_v4 = vld [vmem:[#allocation2 + $0x168] sm:$0xff] }
 0x2af   : > { %v3558_v40 = vpop.f32.mrf.mxu1  ;;  %v5232_v5 = vpop.f32.mrf.mxu0  ;;  %10160 = vmatprep.subr.mxu1 %v8157_v22  ;;  %v12632_v0 = vld [vmem:[#allocation31_spill] sm:$0xff] }
 0x2b0   : > { %12628 = vst [vmem:[#allocation24_spill] sm:$0xff] %v11742_v29  ;;  %v11746_v46 = vadd.f32 %v9614_v21, %v3702_v45  ;;  %v3701_v9 = vadd.f32 %v3558_v40, %v12631_v18  ;;  %10161 = vmatpush3.msra.mxu1 %v8157_v22  ;;  %v12633_v45 = vld [vmem:[#allocation32_spill] sm:$0xff] }
 0x2b1   : > { %v9489_v11 = vpop.f32.mrf.mxu1  ;;  %9952 = vmatmul.mubr.f32.gmra.mxu1 %v5774_v38  ;;  %v9783_v56 = vpop.f32.mrf.mxu0  ;;  %10086 = vmatmul.mubr.f32.gmra.mxu0 %v11643_v53  ;;  %v5776_v22 = vld [vmem:[#allocation2 + $0x14f] sm:$0xff] }
 0x2b2   : > { %12630 = vst [vmem:[#allocation25_spill] sm:$0xff] %v11746_v46  ;;  %v11750_v16 = vadd.f32 %v4216_v57, %v3701_v9  ;;  %v3704_v7 = vadd.f32 %v9489_v11, %v12632_v0  ;;  %9954 = vmatprep.mubr.f32.mxu1 %v5775_v32  ;;  %10088 = vmatprep.mubr.f32.mxu0 %v6437_v4  ;;  %v6438_v18 = vld [vmem:[#allocation2 + $0x170] sm:$0xff]  ;;  %v5778_v32 = vld [vmem:[#allocation2 + $0x15f] sm:$0xff] }
 0x2b3   : > { %v3568_v31 = vpop.f32.mrf.mxu1  ;;  %v5242_v29 = vpop.f32.mrf.mxu0  ;;  %v5777_v46 = vld [vmem:[#allocation2 + $0x157] sm:$0xff] }
 0x2b4   : > { %v11753_v21 = vadd.f32 %v9617_v10, %v3704_v7  ;;  %v3703_v40 = vadd.f32 %v3568_v31, %v12633_v45  ;;  %v12634_v57 = vld [vmem:[#allocation12_spill] sm:$0xff]  ;;  %v5779_v31 = vld [vmem:[#allocation2 + $0x167] sm:$0xff] }
 0x2b5   : > { %v9652_v38 = vpop.f32.mrf.mxu1  ;;  %9955 = vmatmul.mubr.f32.gmra.mxu1 %v5776_v22  ;;  %v9786_v48 = vpop.f32.mrf.mxu0  ;;  %10089 = vmatmul.mubr.f32.gmra.mxu0 %v6438_v18 }
 0x2b6   : > { %v11756_v41 = vadd.f32 %v4226_v35, %v3703_v40  ;;  %v4958_v9 = vadd.f32 %v9652_v38, %v12634_v57  ;;  %9957 = vmatprep.mubr.f32.mxu1 %v5777_v46  ;;  %10091 = vmatprep.mubr.f32.mxu0 %v11643_v53  ;;  %v6441_v35 = vld [vmem:[#allocation2 + $0x188] sm:$0xff]  ;;  %v6442_v57 = vld [vmem:[#allocation2 + $0x190] sm:$0xff] }
 0x2b7   : > { %v4574_v11 = vpop.f32.mrf.mxu1  ;;  %v5252_v10 = vpop.f32.mrf.mxu0 }
 0x2b8   : > { %v11760_v4 = vadd.f32 %v9780_v36, %v4958_v9  ;;  %v4957_v0 = vadd.f32 %v4574_v11, %v11491_v27  ;;  %v5780_v27 = vld [vmem:[#allocation2 + $0x16f] sm:$0xff] }
 0x2b9   : > { %v9655_v7 = vpop.f32.mrf.mxu1  ;;  %9958 = vmatmul.mubr.f32.gmra.mxu1 %v5778_v32  ;;  %v9789_v45 = vpop.f32.mrf.mxu0  ;;  %10092 = vmatmul.mubr.f32.gmra.mxu0 %v11643_v53  ;;  %v5781_v32 = vld [vmem:[#allocation2 + $0x177] sm:$0xff] }
 0x2ba   : > { %12635 = vst [vmem:[#allocation26_spill] sm:$0xff] %v11760_v4  ;;  %v11764_v40 = vadd.f32 %v5232_v5, %v4957_v0  ;;  %v4960_v46 = vadd.f32 %v9655_v7, %v11494_v43  ;;  %9960 = vmatprep.mubr.f32.mxu1 %v5779_v31  ;;  %10094 = vmatprep.mubr.f32.mxu0 %v6441_v35  ;;  %v5782_v43 = vld [vmem:[#allocation2 + $0x17f] sm:$0xff]  ;;  %v5783_v35 = vld [vmem:[#allocation2 + $0x187] sm:$0xff] }
 0x2bb   : > { %v4584_v22 = vpop.f32.mrf.mxu1  ;;  %v5262_v18 = vpop.f32.mrf.mxu0 }
 0x2bc   : > { %v11767_v38 = vadd.f32 %v9783_v56, %v4960_v46  ;;  %v4959_v36 = vadd.f32 %v4584_v22, %v11496_v1 }
 0x2bd   : > { %v9658_v9 = vpop.f32.mrf.mxu1  ;;  %9961 = vmatmul.mubr.f32.gmra.mxu1 %v5780_v27  ;;  %v9792_v11 = vpop.f32.mrf.mxu0  ;;  %10095 = vmatmul.mubr.f32.gmra.mxu0 %v6442_v57 }
 0x2be   : > { %v11770_v4 = vadd.f32 %v5242_v29, %v4959_v36  ;;  %v4962_v5 = vadd.f32 %v9658_v9, %v11500_v60  ;;  %9963 = vmatprep.mubr.f32.mxu1 %v5781_v32  ;;  %10097 = vmatprep.mubr.f32.mxu0 %v11643_v53  ;;  %v6445_v29 = vld [vmem:[#allocation2 + $0x1a8] sm:$0xff] }
 0x2bf   : > { %v4594_v0 = vpop.f32.mrf.mxu1  ;;  %v5272_v56 = vpop.f32.mrf.mxu0  ;;  %v12638_v60 = vld [vmem:[#allocation11_spill] sm:$0xff] }
 0x2c0   : > { %12636 = vst [vmem:[#allocation27_spill] sm:$0xff] %v11770_v4  ;;  %v11774_v7 = vadd.f32 %v9786_v48, %v4962_v5  ;;  %v4961_v1 = vadd.f32 %v4594_v0, %v11504_v19  ;;  %v12640_v48 = vld [vmem:[#allocation15_spill] sm:$0xff]  ;;  %v6446_v5 = vld [vmem:[#allocation2 + $0x1b0] sm:$0xff] }
 0x2c1   : > { %v9661_v31 = vpop.f32.mrf.mxu1  ;;  %9964 = vmatmul.mubr.f32.gmra.mxu1 %v5782_v43  ;;  %v9795_v46 = vpop.f32.mrf.mxu0  ;;  %10098 = vmatmul.mubr.f32.gmra.mxu0 %v11643_v53  ;;  %v5784_v19 = vld [vmem:[#allocation2 + $0x18f] sm:$0xff]  ;;  %v5785_v0 = vld [vmem:[#allocation2 + $0x197] sm:$0xff] }
 0x2c2   : > { %12637 = vst [vmem:[#allocation28_spill] sm:$0xff] %v11774_v7  ;;  %v11778_v22 = vadd.f32 %v5252_v10, %v4961_v1  ;;  %v4964_v36 = vadd.f32 %v9661_v31, %v12638_v60  ;;  %9966 = vmatprep.mubr.f32.mxu1 %v5783_v35  ;;  %10100 = vmatprep.mubr.f32.mxu0 %v6445_v29  ;;  %v12642_v10 = vld [vmem:[#allocation14_spill] sm:$0xff] }
 0x2c3   : > { %v4604_v27 = vpop.f32.mrf.mxu1  ;;  %v5282_v57 = vpop.f32.mrf.mxu0  ;;  %v5786_v31 = vld [vmem:[#allocation2 + $0x19f] sm:$0xff] }
 0x2c4   : > { %v11781_v9 = vadd.f32 %v9789_v45, %v4964_v36  ;;  %v4963_v32 = vadd.f32 %v4604_v27, %v12640_v48  ;;  %v5787_v27 = vld [vmem:[#allocation2 + $0x1a7] sm:$0xff] }
 0x2c5   : > { %v9664_v43 = vpop.f32.mrf.mxu1  ;;  %9967 = vmatmul.mubr.f32.gmra.mxu1 %v5784_v19  ;;  %v9798_v7 = vpop.f32.mrf.mxu0  ;;  %10101 = vmatmul.mubr.f32.gmra.mxu0 %v6446_v5  ;;  %v12644_v19 = vld [vmem:[#allocation13_spill] sm:$0xff] }
 0x2c6   : > { %12639 = vst [vmem:[#allocation29_spill] sm:$0xff] %v11781_v9  ;;  %v11784_v4 = vadd.f32 %v5262_v18, %v4963_v32  ;;  %v4966_v1 = vadd.f32 %v9664_v43, %v12642_v10  ;;  %9969 = vmatprep.mubr.f32.mxu1 %v5785_v0  ;;  %10103 = vmatprep.mubr.f32.mxu0 %v11643_v53  ;;  %v6449_v18 = vld [vmem:[#allocation2 + $0x1c8] sm:$0xff] }
 0x2c7   : > { %v4614_v35 = vpop.f32.mrf.mxu1  ;;  %v5292_v45 = vpop.f32.mrf.mxu0 }
 0x2c8   : > { %12641 = vst [vmem:[#allocation30_spill] sm:$0xff] %v11784_v4  ;;  %v11788_v29 = vadd.f32 %v9792_v11, %v4966_v1  ;;  %v4965_v60 = vadd.f32 %v4614_v35, %v11518_v47  ;;  %v12645_v11 = vld [vmem:[#allocation16_spill] sm:$0xff] }
 0x2c9   : > { %v9667_v36 = vpop.f32.mrf.mxu1  ;;  %9970 = vmatmul.mubr.f32.gmra.mxu1 %v5786_v31  ;;  %v9801_v48 = vpop.f32.mrf.mxu0  ;;  %10104 = vmatmul.mubr.f32.gmra.mxu0 %v11643_v53  ;;  %v5788_v47 = vld [vmem:[#allocation2 + $0x1af] sm:$0xff] }
 0x2ca   : > { %12643 = vst [vmem:[#allocation31_spill] sm:$0xff] %v11788_v29  ;;  %v11792_v32 = vadd.f32 %v5272_v56, %v4965_v60  ;;  %v4968_v5 = vadd.f32 %v9667_v36, %v12644_v19  ;;  %9972 = vmatprep.mubr.f32.mxu1 %v5787_v27  ;;  %10106 = vmatprep.mubr.f32.mxu0 %v6449_v18  ;;  %v6450_v35 = vld [vmem:[#allocation2 + $0x1d0] sm:$0xff]  ;;  %v12647_v56 = vld [vmem:[#allocation17_spill] sm:$0xff] }
 0x2cb   : > { %v4624_v43 = vpop.f32.mrf.mxu1  ;;  %v5302_v0 = vpop.f32.mrf.mxu0  ;;  %v5789_v29 = vld [vmem:[#allocation2 + $0x1b7] sm:$0xff]  ;;  %v5790_v36 = vld [vmem:[#allocation2 + $0x1bf] sm:$0xff] }
 0x2cc   : > { %v11795_v10 = vadd.f32 %v9795_v46, %v4968_v5  ;;  %v4967_v1 = vadd.f32 %v4624_v43, %v12645_v11  ;;  %v5791_v43 = vld [vmem:[#allocation2 + $0x1c7] sm:$0xff] }
 0x2cd   : > { %v9670_v31 = vpop.f32.mrf.mxu1  ;;  %9973 = vmatmul.mubr.f32.gmra.mxu1 %v5788_v47  ;;  %v9804_v4 = vpop.f32.mrf.mxu0  ;;  %10107 = vmatmul.mubr.f32.gmra.mxu0 %v6450_v35 }
 0x2ce   : > { %v11798_v9 = vadd.f32 %v5282_v57, %v4967_v1  ;;  %v4970_v60 = vadd.f32 %v9670_v31, %v12647_v56  ;;  %9975 = vmatprep.mubr.f32.mxu1 %v5789_v29  ;;  %10109 = vmatprep.mubr.f32.mxu0 %v11643_v53  ;;  %v6453_v57 = vld [vmem:[#allocation2 + $0x1e8] sm:$0xff] }
 0x2cf   : > { %v4634_v27 = vpop.f32.mrf.mxu1  ;;  %v5312_v46 = vpop.f32.mrf.mxu0 }
 0x2d0   : > { %12646 = vst [vmem:[#allocation32_spill] sm:$0xff] %v11798_v9  ;;  %v11802_v18 = vadd.f32 %v9798_v7, %v4970_v60  ;;  %v4969_v19 = vadd.f32 %v4634_v27, %v11532_v30  ;;  %v12650_v7 = vld [vmem:[#allocation18_spill] sm:$0xff]  ;;  %v5792_v30 = vld [vmem:[#allocation2 + $0x1cf] sm:$0xff]  ;;  %v5793_v27 = vld [vmem:[#allocation2 + $0x1d7] sm:$0xff] }
 0x2d1   : > { %v9673_v5 = vpop.f32.mrf.mxu1  ;;  %9976 = vmatmul.mubr.f32.gmra.mxu1 %v5790_v36  ;;  %v9807_v11 = vpop.f32.mrf.mxu0  ;;  %10110 = vmatmul.mubr.f32.gmra.mxu0 %v11643_v53  ;;  %v6454_v60 = vld [vmem:[#allocation2 + $0x1f0] sm:$0xff] }
 0x2d2   : > { %12648 = vst [vmem:[#allocation12_spill] sm:$0xff] %v11802_v18  ;;  %v11806_v1 = vadd.f32 %v5292_v45, %v4969_v19  ;;  %v4972_v29 = vadd.f32 %v9673_v5, %v11535_v24  ;;  %9978 = vmatprep.mubr.f32.mxu1 %v5791_v43  ;;  %10112 = vmatprep.mubr.f32.mxu0 %v6453_v57  ;;  %v12652_v45 = vld [vmem:[#allocation19_spill] sm:$0xff]  ;;  %v5794_v24 = vld [vmem:[#allocation2 + $0x1df] sm:$0xff] }
 0x2d3   : > { %v4644_v47 = vpop.f32.mrf.mxu1  ;;  %v5322_v35 = vpop.f32.mrf.mxu0 }
 0x2d4   : > { %v11809_v31 = vadd.f32 %v9801_v48, %v4972_v29  ;;  %v4971_v56 = vadd.f32 %v4644_v47, %v12650_v7  ;;  %v5795_v47 = vld [vmem:[#allocation2 + $0x1e7] sm:$0xff] }
 0x2d5   : > { %v9676_v36 = vpop.f32.mrf.mxu1  ;;  %9979 = vmatmul.mubr.f32.gmra.mxu1 %v5792_v30  ;;  %v9810_v18 = vpop.f32.mrf.mxu0  ;;  %10113 = vmatmul.mubr.f32.gmra.mxu0 %v6454_v60  ;;  %v12654_v30 = vld [vmem:[#allocation4_spill] sm:$0xff] }
 0x2d6   : > { %12649 = vst [vmem:[#allocation11_spill] sm:$0xff] %v11809_v31  ;;  %v11812_v9 = vadd.f32 %v5302_v0, %v4971_v56  ;;  %v4974_v19 = vadd.f32 %v9676_v36, %v12652_v45  ;;  %9981 = vmatprep.mubr.f32.mxu1 %v5793_v27  ;;  %10115 = vmatprep.mubr.f32.mxu0 %v11643_v53  ;;  %v6457_v0 = vld [vmem:[#allocation2 + $0x208] sm:$0xff] }
 0x2d7   : > { %v4654_v5 = vpop.f32.mrf.mxu1  ;;  %v5332_v48 = vpop.f32.mrf.mxu0 }
 0x2d8   : > { %12651 = vst [vmem:[#allocation15_spill] sm:$0xff] %v11812_v9  ;;  %v11816_v43 = vadd.f32 %v9804_v4, %v4974_v19  ;;  %v4973_v57 = vadd.f32 %v4654_v5, %v11546_v14  ;;  %v12655_v4 = vld [vmem:[#allocation5_spill] sm:$0xff]  ;;  %v5796_v14 = vld [vmem:[#allocation2 + $0x1ef] sm:$0xff] }
 0x2d9   : > { %v9679_v29 = vpop.f32.mrf.mxu1  ;;  %9982 = vmatmul.mubr.f32.gmra.mxu1 %v5794_v24  ;;  %v9813_v7 = vpop.f32.mrf.mxu0  ;;  %10116 = vmatmul.mubr.f32.gmra.mxu0 %v11643_v53  ;;  %v6458_v5 = vld [vmem:[#allocation2 + $0x210] sm:$0xff] }
 0x2da   : > { %12653 = vst [vmem:[#allocation14_spill] sm:$0xff] %v11816_v43  ;;  %v11820_v56 = vadd.f32 %v5312_v46, %v4973_v57  ;;  %v4976_v60 = vadd.f32 %v9679_v29, %v12654_v30  ;;  %9984 = vmatprep.mubr.f32.mxu1 %v5795_v47  ;;  %10118 = vmatprep.mubr.f32.mxu0 %v6457_v0  ;;  %v5797_v43 = vld [vmem:[#allocation2 + $0x1f7] sm:$0xff]  ;;  %v12656_v46 = vld [vmem:[#allocation6_spill] sm:$0xff] }
 0x2db   : > { %v4664_v36 = vpop.f32.mrf.mxu1  ;;  %v5342_v27 = vpop.f32.mrf.mxu0  ;;  %v5798_v29 = vld [vmem:[#allocation2 + $0x1ff] sm:$0xff] }
 0x2dc   : > { %v11823_v45 = vadd.f32 %v9807_v11, %v4976_v60  ;;  %v4975_v19 = vadd.f32 %v4664_v36, %v12655_v4  ;;  %v5799_v36 = vld [vmem:[#allocation2 + $0x207] sm:$0xff] }
 0x2dd   : > { %v9682_v24 = vpop.f32.mrf.mxu1  ;;  %9985 = vmatmul.mubr.f32.gmra.mxu1 %v5796_v14  ;;  %v9816_v9 = vpop.f32.mrf.mxu0  ;;  %10119 = vmatmul.mubr.f32.gmra.mxu0 %v6458_v5 }
 0x2de   : > { %v11826_v31 = vadd.f32 %v5322_v35, %v4975_v19  ;;  %v4978_v57 = vadd.f32 %v9682_v24, %v12656_v46  ;;  %9987 = vmatprep.mubr.f32.mxu1 %v5797_v43  ;;  %10121 = vmatprep.mubr.f32.mxu0 %v11643_v53  ;;  %v5801_v46 = vld [vmem:[#allocation2 + $0x217] sm:$0xff] }
 0x2df   : > { %v4674_v47 = vpop.f32.mrf.mxu1  ;;  %v5352_v11 = vpop.f32.mrf.mxu0 }
 0x2e0   : > { %v11830_v0 = vadd.f32 %v9810_v18, %v4978_v57  ;;  %v4977_v30 = vadd.f32 %v4674_v47, %v11560_v20  ;;  %v5800_v20 = vld [vmem:[#allocation2 + $0x20f] sm:$0xff] }
 0x2e1   : > { %v9685_v60 = vpop.f32.mrf.mxu1  ;;  %9988 = vmatmul.mubr.f32.gmra.mxu1 %v5798_v29  ;;  %v9819_v4 = vpop.f32.mrf.mxu0  ;;  %10122 = vmatmul.mubr.f32.gmra.mxu0 %v11643_v53  ;;  %v5802_v29 = vld [vmem:[#allocation2 + $0x21f] sm:$0xff] }
 0x2e2   : > { %v11834_v35 = vadd.f32 %v5332_v48, %v4977_v30  ;;  %v4980_v19 = vadd.f32 %v9685_v60, %v11563_v15  ;;  %9990 = vmatprep.mubr.f32.mxu1 %v5799_v36  ;;  %10124 = vmatprep.mubr.f32.mxu0 %v11643_v53 }
 0x2e3   : > { %v4684_v43 = vpop.f32.mrf.mxu1  ;;  %v5362_v14 = vpop.f32.mrf.mxu0 }
 0x2e4   : > { %v11838_v5 = vadd.f32 %v9813_v7, %v4980_v19  ;;  %v4979_v18 = vadd.f32 %v4684_v43, %v11566_v62  ;;  %v5803_v7 = vld [vmem:[#allocation2 + $0x227] sm:$0xff]  ;;  %v5804_v43 = vld [vmem:[#allocation2 + $0x22f] sm:$0xff] }
 0x2e5   : > { %v9688_v24 = vpop.f32.mrf.mxu1  ;;  %9991 = vmatmul.mubr.f32.gmra.mxu1 %v5800_v20  ;;  %v9822_v57 = vpop.f32.mrf.mxu0  ;;  %10125 = vmatmul.mubr.f32.gmra.mxu0 %v11643_v53  ;;  %v5805_v20 = vld [vmem:[#allocation2 + $0x237] sm:$0xff] }
 0x2e6   : > { %v11842_v48 = vadd.f32 %v5342_v27, %v4979_v18  ;;  %v4982_v15 = vadd.f32 %v9688_v24, %v11570_v55  ;;  %9993 = vmatprep.mubr.f32.mxu1 %v5801_v46  ;;  %10127 = vmatprep.mubr.f32.mxu0 %v11643_v53 }
 0x2e7   : > { %v4694_v47 = vpop.f32.mrf.mxu1  ;;  %v5372_v30 = vpop.f32.mrf.mxu0 }
 0x2e8   : > { %v11846_v60 = vadd.f32 %v9816_v9, %v4982_v15  ;;  %v4981_v62 = vadd.f32 %v4694_v47, %v11574_v39 }
 0x2e9   : > { %v9691_v36 = vpop.f32.mrf.mxu1  ;;  %9994 = vmatmul.mubr.f32.gmra.mxu1 %v5802_v29  ;;  %v9825_v19 = vpop.f32.mrf.mxu0  ;;  %10128 = vmatmul.mubr.f32.gmra.mxu0 %v11643_v53 }
 0x2ea   : > { %v11850_v27 = vadd.f32 %v5352_v11, %v4981_v62  ;;  %v4984_v55 = vadd.f32 %v9691_v36, %v11577_v59  ;;  %9996 = vmatprep.mubr.f32.mxu1 %v5803_v7  ;;  %v5806_v11 = vld [vmem:[#allocation2 + $0x23f] sm:$0xff] }
 0x2eb   : > { %v4704_v18 = vpop.f32.mrf.mxu1  ;;  %v5382_v24 = vpop.f32.mrf.mxu0 }
 0x2ec   : > { %v11853_v46 = vadd.f32 %v9819_v4, %v4984_v55  ;;  %v4983_v9 = vadd.f32 %v4704_v18, %v11580_v6  ;;  %v7059_v4 = vld [vmem:[#allocation2 + $0x49] sm:$0xff]  ;;  %v7061_v18 = vld [vmem:[#allocation2 + $0x59] sm:$0xff] }
 0x2ed   : > { %v9694_v15 = vpop.f32.mrf.mxu1  ;;  %9997 = vmatmul.mubr.f32.gmra.mxu1 %v5804_v43  ;;  %v9828_v39 = vpop.f32.mrf.mxu0 }
 0x2ee   : > { %v11856_v29 = vadd.f32 %v5362_v14, %v4983_v9  ;;  %v4986_v53 = vadd.f32 %v9694_v15, %v11585_v33  ;;  %9999 = vmatprep.mubr.f32.mxu1 %v5805_v20 }
 0x2ef   : > { %v4714_v47 = vpop.f32.mrf.mxu1  ;;  %v5392_v59 = vpop.f32.mrf.mxu0 }
 0x2f0   : > { %v11859_v7 = vadd.f32 %v9822_v57, %v4986_v53  ;;  %v4985_v62 = vadd.f32 %v4714_v47, %v11590_v2  ;;  %v7060_v57 = vld [vmem:[#allocation2 + $0x51] sm:$0xff] }
 0x2f1   : > { %v9697_v36 = vpop.f32.mrf.mxu1  ;;  %10000 = vmatmul.mubr.f32.gmra.mxu1 %v5806_v11  ;;  %v9831_v55 = vpop.f32.mrf.mxu0 }
 0x2f2   : > { %v11862_v6 = vadd.f32 %v5372_v30, %v4985_v62  ;;  %v4988_v43 = vadd.f32 %v9697_v36, %v11593_v23  ;;  %10162 = vmatprep.mubr.f32.mxu1 %v7059_v4  ;;  %v7062_v36 = vld [vmem:[#allocation2 + $0x61] sm:$0xff]  ;;  %v7063_v4 = vld [vmem:[#allocation2 + $0x69] sm:$0xff] }
 0x2f3   : > { %v4724_v14 = vpop.f32.mrf.mxu1  ;;  %v5402_v33 = vpop.f32.mrf.mxu0 }
 0x2f4   : > { %v11865_v20 = vadd.f32 %v9825_v19, %v4988_v43  ;;  %v4987_v9 = vadd.f32 %v4724_v14, %v11599_v25 }
 0x2f5   : > { %v9700_v15 = vpop.f32.mrf.mxu1  ;;  %10163 = vmatmul.mubr.f32.vlgmr.msra.gmra.mxu1 %v7060_v57  ;;  %v9834_v2 = vpop.f32.mrf.mxu0  ;;  %v7064_v57 = vld [vmem:[#allocation2 + $0x71] sm:$0xff] }
 0x2f6   : > { %v11868_v53 = vadd.f32 %v5382_v24, %v4987_v9  ;;  %v4990_v11 = vadd.f32 %v9700_v15, %v11604_v54  ;;  %10165 = vmatprep.mubr.f32.mxu1 %v7061_v18  ;;  %v7065_v9 = vld [vmem:[#allocation2 + $0x79] sm:$0xff] }
 0x2f7   : > { %v4734_v30 = vpop.f32.mrf.mxu1  ;;  %v5412_v47 = vpop.f32.mrf.mxu0 }
 0x2f8   : > { %v11871_v23 = vadd.f32 %v9828_v39, %v4990_v11  ;;  %v4989_v62 = vadd.f32 %v4734_v30, %v11611_v44 }
 0x2f9   : > { %v9703_v19 = vpop.f32.mrf.mxu1  ;;  %10166 = vmatmul.mubr.f32.gmra.mxu1 %v7062_v36  ;;  %v9837_v25 = vpop.f32.mrf.mxu0 }
 0x2fa   : > { %v11874_v43 = vadd.f32 %v5392_v59, %v4989_v62  ;;  %v4992_v14 = vadd.f32 %v9703_v19, %v11614_v34  ;;  %10168 = vmatprep.mubr.f32.mxu1 %v7063_v4  ;;  %v7066_v19 = vld [vmem:[#allocation2 + $0x81] sm:$0xff]  ;;  %v7067_v4 = vld [vmem:[#allocation2 + $0x89] sm:$0xff] }
 0x2fb   : > { %v4744_v24 = vpop.f32.mrf.mxu1  ;;  %v5422_v54 = vpop.f32.mrf.mxu0 }
 0x2fc   : > { %v11877_v18 = vadd.f32 %v9831_v55, %v4992_v14  ;;  %v4991_v39 = vadd.f32 %v4744_v24, %v11620_v12 }
 0x2fd   : > { %v9706_v15 = vpop.f32.mrf.mxu1  ;;  %10169 = vmatmul.mubr.f32.gmra.mxu1 %v7064_v57  ;;  %v9840_v44 = vpop.f32.mrf.mxu0  ;;  %v7068_v57 = vld [vmem:[#allocation2 + $0x91] sm:$0xff] }
 0x2fe   : > { %v11880_v11 = vadd.f32 %v5402_v33, %v4991_v39  ;;  %v4994_v30 = vadd.f32 %v9706_v15, %v11624_v13  ;;  %10171 = vmatprep.mubr.f32.mxu1 %v7065_v9  ;;  %v7069_v39 = vld [vmem:[#allocation2 + $0x99] sm:$0xff] }
 0x2ff   : > { %v4754_v59 = vpop.f32.mrf.mxu1  ;;  %v5432_v62 = vpop.f32.mrf.mxu0 }
 0x300   : > { %v11883_v34 = vadd.f32 %v9834_v2, %v4994_v30  ;;  %v4993_v36 = vadd.f32 %v4754_v59, %v11631_v58 }
 0x301   : > { %v9709_v55 = vpop.f32.mrf.mxu1  ;;  %10172 = vmatmul.mubr.f32.gmra.mxu1 %v7066_v19  ;;  %v9843_v12 = vpop.f32.mrf.mxu0 }
 0x302   : > { %v11886_v14 = vadd.f32 %v5412_v47, %v4993_v36  ;;  %v4996_v24 = vadd.f32 %v9709_v55, %v11634_v26  ;;  %10174 = vmatprep.mubr.f32.mxu1 %v7067_v4  ;;  %v7070_v55 = vld [vmem:[#allocation2 + $0xa1] sm:$0xff]  ;;  %v7071_v4 = vld [vmem:[#allocation2 + $0xa9] sm:$0xff] }
 0x303   : > { %v4764_v33 = vpop.f32.mrf.mxu1  ;;  %v5442_v13 = vpop.f32.mrf.mxu0 }
 0x304   : > { %v11889_v9 = vadd.f32 %v9837_v25, %v4996_v24  ;;  %v4995_v2 = vadd.f32 %v4764_v33, %v11640_v50 }
 0x305   : > { %v9712_v15 = vpop.f32.mrf.mxu1  ;;  %10175 = vmatmul.mubr.f32.gmra.mxu1 %v7068_v57  ;;  %v9846_v58 = vpop.f32.mrf.mxu0  ;;  %v7072_v57 = vld [vmem:[#allocation2 + $0xb1] sm:$0xff] }
 0x306   : > { %v11892_v30 = vadd.f32 %v5422_v54, %v4995_v2  ;;  %v4998_v59 = vadd.f32 %v9712_v15, %v11646_v63  ;;  %10177 = vmatprep.mubr.f32.mxu1 %v7069_v39  ;;  %v7073_v2 = vld [vmem:[#allocation2 + $0xb9] sm:$0xff] }
 0x307   : > { %v4774_v47 = vpop.f32.mrf.mxu1  ;;  %v5452_v36 = vpop.f32.mrf.mxu0 }
 0x308   : > { %v11895_v26 = vadd.f32 %v9840_v44, %v4998_v59  ;;  %v4997_v19 = vadd.f32 %v4774_v47, %v11653_v42 }
 0x309   : > { %v9715_v25 = vpop.f32.mrf.mxu1  ;;  %10178 = vmatmul.mubr.f32.gmra.mxu1 %v7070_v55  ;;  %v9849_v50 = vpop.f32.mrf.mxu0 }
 0x30a   : > { %v11898_v24 = vadd.f32 %v5432_v62, %v4997_v19  ;;  %v5000_v33 = vadd.f32 %v9715_v25, %v11656_v52  ;;  %10180 = vmatprep.mubr.f32.mxu1 %v7071_v4  ;;  %v7074_v25 = vld [vmem:[#allocation2 + $0xc1] sm:$0xff]  ;;  %v7075_v4 = vld [vmem:[#allocation2 + $0xc9] sm:$0xff] }
 0x30b   : > { %v4784_v54 = vpop.f32.mrf.mxu1  ;;  %v5462_v63 = vpop.f32.mrf.mxu0 }
 0x30c   : > { %v11901_v39 = vadd.f32 %v9843_v12, %v5000_v33  ;;  %v4999_v44 = vadd.f32 %v4784_v54, %v11662_v37 }
 0x30d   : > { %v9718_v15 = vpop.f32.mrf.mxu1  ;;  %10181 = vmatmul.mubr.f32.gmra.mxu1 %v7072_v57  ;;  %v9852_v42 = vpop.f32.mrf.mxu0  ;;  %v7076_v57 = vld [vmem:[#allocation2 + $0xd1] sm:$0xff] }
 0x30e   : > { %v11904_v59 = vadd.f32 %v5442_v13, %v4999_v44  ;;  %v5002_v47 = vadd.f32 %v9718_v15, %v11666_v51  ;;  %10183 = vmatprep.mubr.f32.mxu1 %v7073_v2  ;;  %v7077_v44 = vld [vmem:[#allocation2 + $0xd9] sm:$0xff] }
 0x30f   : > { %v4794_v62 = vpop.f32.mrf.mxu1  ;;  %v5472_v19 = vpop.f32.mrf.mxu0 }
 0x310   : > { %v11907_v52 = vadd.f32 %v9846_v58, %v5002_v47  ;;  %v5001_v55 = vadd.f32 %v4794_v62, %v11673_v3 }
 0x311   : > { %v9721_v12 = vpop.f32.mrf.mxu1  ;;  %10184 = vmatmul.mubr.f32.gmra.mxu1 %v7074_v25  ;;  %v9855_v37 = vpop.f32.mrf.mxu0 }
 0x312   : > { %v11910_v33 = vadd.f32 %v5452_v36, %v5001_v55  ;;  %v5004_v54 = vadd.f32 %v9721_v12, %v11676_v17  ;;  %10186 = vmatprep.mubr.f32.mxu1 %v7075_v4  ;;  %v7078_v12 = vld [vmem:[#allocation2 + $0xe1] sm:$0xff]  ;;  %v7079_v4 = vld [vmem:[#allocation2 + $0xe9] sm:$0xff] }
 0x313   : > { %v4804_v13 = vpop.f32.mrf.mxu1  ;;  %v5482_v51 = vpop.f32.mrf.mxu0 }
 0x314   : > { %v11913_v2 = vadd.f32 %v9849_v50, %v5004_v54  ;;  %v5003_v58 = vadd.f32 %v4804_v13, %v11682_v49 }
 0x315   : > { %v9724_v15 = vpop.f32.mrf.mxu1  ;;  %10187 = vmatmul.mubr.f32.gmra.mxu1 %v7076_v57  ;;  %v9858_v3 = vpop.f32.mrf.mxu0  ;;  %v12660_v57 = vld [vmem:[#allocation7_spill] sm:$0xff] }
 0x316   : > { %v11916_v47 = vadd.f32 %v5462_v63, %v5003_v58  ;;  %v5006_v62 = vadd.f32 %v9724_v15, %v11686_v8  ;;  %10189 = vmatprep.mubr.f32.mxu1 %v7077_v44  ;;  %v7081_v58 = vld [vmem:[#allocation2 + $0xf9] sm:$0xff]  ;;  %v7080_v15 = vld [vmem:[#allocation2 + $0xf1] sm:$0xff] }
 0x317   : > { %v4814_v36 = vpop.f32.mrf.mxu1  ;;  %v5492_v55 = vpop.f32.mrf.mxu0 }
 0x318   : > { %v11919_v17 = vadd.f32 %v9852_v42, %v5006_v62  ;;  %v5005_v25 = vadd.f32 %v4814_v36, %v11693_v28 }
 0x319   : > { %v9727_v50 = vpop.f32.mrf.mxu1  ;;  %10190 = vmatmul.mubr.f32.gmra.mxu1 %v7078_v12  ;;  %v9861_v49 = vpop.f32.mrf.mxu0  ;;  %v12662_v12 = vld [vmem:[#allocation8_spill] sm:$0xff] }
 0x31a   : > { %12657 = vst [vmem:[#allocation13_spill] sm:$0xff] %v11919_v17  ;;  %v11922_v54 = vadd.f32 %v5472_v19, %v5005_v25  ;;  %v5008_v13 = vadd.f32 %v9727_v50, %v11696_v61  ;;  %10192 = vmatprep.mubr.f32.mxu1 %v7079_v4  ;;  %v12664_v50 = vld [vmem:[#allocation9_spill] sm:$0xff] }
 0x31b   : > { %v4824_v63 = vpop.f32.mrf.mxu1  ;;  %v5502_v8 = vpop.f32.mrf.mxu0 }
 0x31c   : > { %12658 = vst [vmem:[#allocation16_spill] sm:$0xff] %v11922_v54  ;;  %v11925_v44 = vadd.f32 %v9855_v37, %v5008_v13  ;;  %v5007_v42 = vadd.f32 %v4824_v63, %v12660_v57  ;;  %v7082_v54 = vld [vmem:[#allocation2 + $0x101] sm:$0xff]  ;;  %v7083_v13 = vld [vmem:[#allocation2 + $0x109] sm:$0xff] }
 0x31d   : > { %v9730_v62 = vpop.f32.mrf.mxu1  ;;  %10193 = vmatmul.mubr.f32.gmra.mxu1 %v7080_v15  ;;  %v9864_v28 = vpop.f32.mrf.mxu0  ;;  %v12666_v15 = vld [vmem:[#allocation10_spill] sm:$0xff] }
 0x31e   : > { %12659 = vst [vmem:[#allocation17_spill] sm:$0xff] %v11925_v44  ;;  %v11928_v36 = vadd.f32 %v5482_v51, %v5007_v42  ;;  %v5010_v17 = vadd.f32 %v9730_v62, %v12662_v12  ;;  %10195 = vmatprep.mubr.f32.mxu1 %v7081_v58  ;;  %v7085_v42 = vld [vmem:[#allocation2 + $0x119] sm:$0xff]  ;;  %v12667_v12 = vld [vmem:[#allocation20_spill] sm:$0xff] }
 0x31f   : > { %v4834_v19 = vpop.f32.mrf.mxu1  ;;  %v5512_v25 = vpop.f32.mrf.mxu0 }
 0x320   : > { %12661 = vst [vmem:[#allocation18_spill] sm:$0xff] %v11928_v36  ;;  %v11931_v61 = vadd.f32 %v9858_v3, %v5010_v17  ;;  %v5009_v4 = vadd.f32 %v4834_v19, %v12664_v50  ;;  %v7084_v17 = vld [vmem:[#allocation2 + $0x111] sm:$0xff] }
 0x321   : > { %v9733_v37 = vpop.f32.mrf.mxu1  ;;  %10196 = vmatmul.mubr.f32.gmra.mxu1 %v7082_v54  ;;  %v9867_v63 = vpop.f32.mrf.mxu0  ;;  %v12669_v54 = vld [vmem:[#allocation21_spill] sm:$0xff] }
 0x322   : > { %12663 = vst [vmem:[#allocation19_spill] sm:$0xff] %v11931_v61  ;;  %v11934_v57 = vadd.f32 %v5492_v55, %v5009_v4  ;;  %v5012_v44 = vadd.f32 %v9733_v37, %v12666_v15  ;;  %10198 = vmatprep.mubr.f32.mxu1 %v7083_v13  ;;  %v12670_v37 = vld [vmem:[#allocation22_spill] sm:$0xff] }
 0x323   : > { %v4844_v51 = vpop.f32.mrf.mxu1  ;;  %v5522_v62 = vpop.f32.mrf.mxu0  ;;  %v7086_v15 = vld [vmem:[#allocation2 + $0x121] sm:$0xff] }
 0x324   : > { %12665 = vst [vmem:[#allocation4_spill] sm:$0xff] %v11934_v57  ;;  %v11937_v58 = vadd.f32 %v9861_v49, %v5012_v44  ;;  %v5011_v3 = vadd.f32 %v4844_v51, %v12667_v12  ;;  %v7087_v49 = vld [vmem:[#allocation2 + $0x129] sm:$0xff] }
 0x325   : > { %v9736_v61 = vpop.f32.mrf.mxu1  ;;  %10199 = vmatmul.mubr.f32.gmra.mxu1 %v7084_v17  ;;  %v9870_v19 = vpop.f32.mrf.mxu0  ;;  %v12671_v12 = vld [vmem:[#allocation23_spill] sm:$0xff] }
 0x326   : > { %v11940_v50 = vadd.f32 %v5502_v8, %v5011_v3  ;;  %v5014_v36 = vadd.f32 %v9736_v61, %v12669_v54  ;;  %10201 = vmatprep.mubr.f32.mxu1 %v7085_v42  ;;  %v7089_v3 = vld [vmem:[#allocation2 + $0x139] sm:$0xff]  ;;  %v12672_v61 = vld [vmem:[#allocation24_spill] sm:$0xff] }
 0x327   : > { %v4854_v55 = vpop.f32.mrf.mxu1  ;;  %v5532_v44 = vpop.f32.mrf.mxu0 }
 0x328   : > { %12668 = vst [vmem:[#allocation5_spill] sm:$0xff] %v11940_v50  ;;  %v11943_v4 = vadd.f32 %v9864_v28, %v5014_v36  ;;  %v5013_v13 = vadd.f32 %v4854_v55, %v12670_v37  ;;  %v7088_v28 = vld [vmem:[#allocation2 + $0x131] sm:$0xff] }
 0x329   : > { %v9739_v57 = vpop.f32.mrf.mxu1  ;;  %10202 = vmatmul.mubr.f32.gmra.mxu1 %v7086_v15  ;;  %v9873_v54 = vpop.f32.mrf.mxu0  ;;  %v12673_v37 = vld [vmem:[#allocation25_spill] sm:$0xff] }
 0x32a   : > { %v11946_v51 = vadd.f32 %v5512_v25, %v5013_v13  ;;  %v5016_v17 = vadd.f32 %v9739_v57, %v12671_v12  ;;  %10204 = vmatprep.mubr.f32.mxu1 %v7087_v49  ;;  %v7090_v49 = vld [vmem:[#allocation2 + $0x141] sm:$0xff] }
 0x32b   : > { %v4864_v8 = vpop.f32.mrf.mxu1 }
 0x32c   : > { %v11949_v50 = vadd.f32 %v9867_v63, %v5016_v17  ;;  %v5015_v42 = vadd.f32 %v4864_v8, %v12672_v61  ;;  %v7091_v63 = vld [vmem:[#allocation2 + $0x149] sm:$0xff]  ;;  %v5542_v17 = vpop.f32.mrf.mxu0 }
 0x32d   : > { %v9742_v36 = vpop.f32.mrf.mxu1  ;;  %10205 = vmatmul.mubr.f32.gmra.mxu1 %v7088_v28 }
 0x32e   : > { %v11952_v55 = vadd.f32 %v5522_v62, %v5015_v42  ;;  %v5018_v15 = vadd.f32 %v9742_v36, %v12673_v37  ;;  %10207 = vmatprep.mubr.f32.mxu1 %v7089_v3  ;;  %v7093_v42 = vld [vmem:[#allocation2 + $0x159] sm:$0xff]  ;;  %v11964_v37 = vpop.f32.mrf.mxu0 }
 0x32f   : > { %v4874_v25 = vpop.f32.mrf.mxu1 }
 0x330   : > { %v11955_v13 = vadd.f32 %v9870_v19, %v5018_v15  ;;  %v5017_v57 = vadd.f32 %v4874_v25, %v11750_v16  ;;  %v7092_v19 = vld [vmem:[#allocation2 + $0x151] sm:$0xff]  ;;  %v12674_v15 = vld [vmem:[#allocation26_spill] sm:$0xff] }
 0x331   : > { %v9745_v12 = vpop.f32.mrf.mxu1  ;;  %10208 = vmatmul.mubr.f32.gmra.mxu1 %v7090_v49 }
 0x332   : > { %v11958_v8 = vadd.f32 %v5532_v44, %v5017_v57  ;;  %v5020_v61 = vadd.f32 %v9745_v12, %v11753_v21  ;;  %10210 = vmatprep.mubr.f32.mxu1 %v7091_v63  ;;  %v7094_v57 = vld [vmem:[#allocation2 + $0x161] sm:$0xff] }
 0x333   : > { %v4884_v62 = vpop.f32.mrf.mxu1 }
 0x334   : > { %v11961_v28 = vadd.f32 %v9873_v54, %v5020_v61  ;;  %v5019_v3 = vadd.f32 %v4884_v62, %v11756_v41  ;;  %v11974_v54 = vpop.f32.mrf.mxu0  ;;  %v7095_v41 = vld [vmem:[#allocation2 + $0x169] sm:$0xff] }
 0x335   : > { %v9908_v36 = vpop.f32.mrf.mxu1  ;;  %10211 = vmatmul.mubr.f32.gmra.mxu1 %v7092_v19  ;;  %v12675_v61 = vld [vmem:[#allocation27_spill] sm:$0xff]  ;;  %v12678_v19 = vld [vmem:[#allocation28_spill] sm:$0xff] }
 0x336   : > { %v11966_v16 = vadd.f32 %v5542_v17, %v5019_v3  ;;  %v11969_v25 = vadd.f32 %v9908_v36, %v12674_v15  ;;  %10213 = vmatprep.mubr.f32.mxu1 %v7093_v42  ;;  %v7097_v17 = vld [vmem:[#allocation2 + $0x179] sm:$0xff]  ;;  %v7096_v42 = vld [vmem:[#allocation2 + $0x171] sm:$0xff]  ;;  %v11982_v3 = vpop.f32.mrf.mxu0 }
 0x337   : > { %v5890_v44 = vpop.f32.mrf.mxu1  ;;  %12677 = vst [vmem:[#allocation7_spill] sm:$0xff] %v11982_v3  ;;  %v12683_v3 = vld [vmem:[#allocation30_spill] sm:$0xff] }
 0x338   : > { %v11972_v21 = vadd.f32 %v5890_v44, %v11764_v40 }
 0x339   : > { %v9911_v49 = vpop.f32.mrf.mxu1  ;;  %10214 = vmatmul.mubr.f32.gmra.mxu1 %v7094_v57  ;;  %v11990_v57 = vpop.f32.mrf.mxu0 }
 0x33a   : > { %v11977_v12 = vadd.f32 %v9911_v49, %v11767_v38  ;;  %10216 = vmatprep.mubr.f32.mxu1 %v7095_v41  ;;  %v7098_v38 = vld [vmem:[#allocation2 + $0x181] sm:$0xff]  ;;  %v7099_v41 = vld [vmem:[#allocation2 + $0x189] sm:$0xff] }
 0x33b   : > { %v5900_v63 = vpop.f32.mrf.mxu1 }
 0x33c   : > { %v11980_v62 = vadd.f32 %v5900_v63, %v12675_v61  ;;  %v12681_v63 = vld [vmem:[#allocation29_spill] sm:$0xff] }
 0x33d   : > { %v9914_v40 = vpop.f32.mrf.mxu1  ;;  %10217 = vmatmul.mubr.f32.gmra.mxu1 %v7096_v42  ;;  %v7101_v42 = vld [vmem:[#allocation2 + $0x199] sm:$0xff] }
 0x33e   : > { %12676 = vst [vmem:[#allocation6_spill] sm:$0xff] %v11980_v62  ;;  %v11985_v36 = vadd.f32 %v9914_v40, %v12678_v19  ;;  %10219 = vmatprep.mubr.f32.mxu1 %v7097_v17  ;;  %v7100_v17 = vld [vmem:[#allocation2 + $0x191] sm:$0xff]  ;;  %v11998_v19 = vpop.f32.mrf.mxu0 }
 0x33f   : > { %v5910_v15 = vpop.f32.mrf.mxu1 }
 0x340   : > { %12679 = vst [vmem:[#allocation8_spill] sm:$0xff] %v11985_v36  ;;  %v11988_v44 = vadd.f32 %v5910_v15, %v11778_v22  ;;  %v12685_v15 = vld [vmem:[#allocation31_spill] sm:$0xff] }
 0x341   : > { %v9917_v49 = vpop.f32.mrf.mxu1  ;;  %10220 = vmatmul.mubr.f32.gmra.mxu1 %v7098_v38 }
 0x342   : > { %12680 = vst [vmem:[#allocation9_spill] sm:$0xff] %v11988_v44  ;;  %v11993_v61 = vadd.f32 %v9917_v49, %v12681_v63  ;;  %10222 = vmatprep.mubr.f32.mxu1 %v7099_v41  ;;  %v7102_v49 = vld [vmem:[#allocation2 + $0x1a1] sm:$0xff]  ;;  %v12006_v41 = vpop.f32.mrf.mxu0 }
 0x343   : > { %v5920_v62 = vpop.f32.mrf.mxu1 }
 0x344   : > { %12682 = vst [vmem:[#allocation10_spill] sm:$0xff] %v11993_v61  ;;  %v11996_v40 = vadd.f32 %v5920_v62, %v12683_v3  ;;  %v7103_v62 = vld [vmem:[#allocation2 + $0x1a9] sm:$0xff] }
 0x345   : > { %v9920_v22 = vpop.f32.mrf.mxu1  ;;  %10223 = vmatmul.mubr.f32.gmra.mxu1 %v7100_v17  ;;  %v7105_v17 = vld [vmem:[#allocation2 + $0x1b9] sm:$0xff]  ;;  %v12689_v61 = vld [vmem:[#allocation32_spill] sm:$0xff] }
 0x346   : > { %12684 = vst [vmem:[#allocation20_spill] sm:$0xff] %v11996_v40  ;;  %v12001_v44 = vadd.f32 %v9920_v22, %v12685_v15  ;;  %10225 = vmatprep.mubr.f32.mxu1 %v7101_v42  ;;  %v7104_v42 = vld [vmem:[#allocation2 + $0x1b1] sm:$0xff]  ;;  %v12014_v15 = vpop.f32.mrf.mxu0 }
 0x347   : > { %v5930_v38 = vpop.f32.mrf.mxu1  ;;  %12691 = vst [vmem:[#allocation25_spill] sm:$0xff] %v12014_v15  ;;  %v12696_v15 = vld [vmem:[#allocation15_spill] sm:$0xff] }
 0x348   : > { %12686 = vst [vmem:[#allocation21_spill] sm:$0xff] %v12001_v44  ;;  %v12004_v36 = vadd.f32 %v5930_v38, %v11792_v32  ;;  %v12692_v38 = vld [vmem:[#allocation12_spill] sm:$0xff] }
 0x349   : > { %v9923_v63 = vpop.f32.mrf.mxu1  ;;  %10226 = vmatmul.mubr.f32.gmra.mxu1 %v7102_v49 }
 0x34a   : > { %12687 = vst [vmem:[#allocation22_spill] sm:$0xff] %v12004_v36  ;;  %v12009_v3 = vadd.f32 %v9923_v63, %v11795_v10  ;;  %10228 = vmatprep.mubr.f32.mxu1 %v7103_v62  ;;  %v7106_v10 = vld [vmem:[#allocation2 + $0x1c1] sm:$0xff]  ;;  %v12022_v63 = vpop.f32.mrf.mxu0 }
 0x34b   : > { %v5940_v40 = vpop.f32.mrf.mxu1 }
 0x34c   : > { %12688 = vst [vmem:[#allocation23_spill] sm:$0xff] %v12009_v3  ;;  %v12012_v22 = vadd.f32 %v5940_v40, %v12689_v61  ;;  %v7107_v61 = vld [vmem:[#allocation2 + $0x1c9] sm:$0xff] }
 0x34d   : > { %v9926_v32 = vpop.f32.mrf.mxu1  ;;  %10229 = vmatmul.mubr.f32.gmra.mxu1 %v7104_v42  ;;  %v12695_v40 = vld [vmem:[#allocation11_spill] sm:$0xff]  ;;  %v7109_v42 = vld [vmem:[#allocation2 + $0x1d9] sm:$0xff] }
 0x34e   : > { %12690 = vst [vmem:[#allocation24_spill] sm:$0xff] %v12012_v22  ;;  %v12017_v36 = vadd.f32 %v9926_v32, %v12692_v38  ;;  %10231 = vmatprep.mubr.f32.mxu1 %v7105_v17  ;;  %v7108_v17 = vld [vmem:[#allocation2 + $0x1d1] sm:$0xff]  ;;  %v12030_v38 = vpop.f32.mrf.mxu0 }
 0x34f   : > { %v5950_v49 = vpop.f32.mrf.mxu1 }
 0x350   : > { %12693 = vst [vmem:[#allocation26_spill] sm:$0xff] %v12017_v36  ;;  %v12020_v44 = vadd.f32 %v5950_v49, %v11806_v1  ;;  %v12698_v49 = vld [vmem:[#allocation14_spill] sm:$0xff] }
 0x351   : > { %v9929_v62 = vpop.f32.mrf.mxu1  ;;  %10232 = vmatmul.mubr.f32.gmra.mxu1 %v7106_v10 }
 0x352   : > { %12694 = vst [vmem:[#allocation27_spill] sm:$0xff] %v12020_v44  ;;  %v12025_v22 = vadd.f32 %v9929_v62, %v12695_v40  ;;  %10234 = vmatprep.mubr.f32.mxu1 %v7107_v61  ;;  %v7110_v62 = vld [vmem:[#allocation2 + $0x1e1] sm:$0xff]  ;;  %v12038_v61 = vpop.f32.mrf.mxu0 }
 0x353   : > { %v5960_v3 = vpop.f32.mrf.mxu1 }
 0x354   : > { %v12028_v32 = vadd.f32 %v5960_v3, %v12696_v15  ;;  %v7111_v3 = vld [vmem:[#allocation2 + $0x1e9] sm:$0xff] }
 0x355   : > { %v9932_v1 = vpop.f32.mrf.mxu1  ;;  %10235 = vmatmul.mubr.f32.gmra.mxu1 %v7108_v17  ;;  %v7113_v17 = vld [vmem:[#allocation2 + $0x1f9] sm:$0xff] }
 0x356   : > { %12697 = vst [vmem:[#allocation28_spill] sm:$0xff] %v12028_v32  ;;  %v12033_v44 = vadd.f32 %v9932_v1, %v12698_v49  ;;  %10237 = vmatprep.mubr.f32.mxu1 %v7109_v42  ;;  %v7112_v42 = vld [vmem:[#allocation2 + $0x1f1] sm:$0xff]  ;;  %v12046_v49 = vpop.f32.mrf.mxu0 }
 0x357   : > { %v5970_v10 = vpop.f32.mrf.mxu1 }
 0x358   : > { %v12036_v36 = vadd.f32 %v5970_v10, %v11820_v56 }
 0x359   : > { %v9935_v40 = vpop.f32.mrf.mxu1  ;;  %10238 = vmatmul.mubr.f32.gmra.mxu1 %v7110_v62 }
 0x35a   : > { %12699 = vst [vmem:[#allocation29_spill] sm:$0xff] %v12036_v36  ;;  %v12041_v15 = vadd.f32 %v9935_v40, %v11823_v45  ;;  %10240 = vmatprep.mubr.f32.mxu1 %v7111_v3  ;;  %v7114_v45 = vld [vmem:[#allocation2 + $0x201] sm:$0xff]  ;;  %v12054_v40 = vpop.f32.mrf.mxu0 }
 0x35b   : > { %v5980_v32 = vpop.f32.mrf.mxu1 }
 0x35c   : > { %v12044_v1 = vadd.f32 %v5980_v32, %v11826_v31  ;;  %v7115_v31 = vld [vmem:[#allocation2 + $0x209] sm:$0xff] }
 0x35d   : > { %v9938_v56 = vpop.f32.mrf.mxu1  ;;  %10241 = vmatmul.mubr.f32.gmra.mxu1 %v7112_v42  ;;  %v7117_v42 = vld [vmem:[#allocation2 + $0x219] sm:$0xff] }
 0x35e   : > { %12700 = vst [vmem:[#allocation30_spill] sm:$0xff] %v12044_v1  ;;  %v12049_v10 = vadd.f32 %v9938_v56, %v11830_v0  ;;  %10243 = vmatprep.mubr.f32.mxu1 %v7113_v17  ;;  %v7116_v17 = vld [vmem:[#allocation2 + $0x211] sm:$0xff]  ;;  %v12062_v56 = vpop.f32.mrf.mxu0 }
 0x35f   : > { %v5990_v62 = vpop.f32.mrf.mxu1 }
 0x360   : > { %12701 = vst [vmem:[#allocation31_spill] sm:$0xff] %v12049_v10  ;;  %v12052_v36 = vadd.f32 %v5990_v62, %v11834_v35  ;;  %v7119_v10 = vld [vmem:[#allocation2 + $0x229] sm:$0xff] }
 0x361   : > { %v9941_v3 = vpop.f32.mrf.mxu1  ;;  %10244 = vmatmul.mubr.f32.gmra.mxu1 %v7114_v45  ;;  %v7118_v45 = vld [vmem:[#allocation2 + $0x221] sm:$0xff] }
 0x362   : > { %12702 = vst [vmem:[#allocation32_spill] sm:$0xff] %v12052_v36  ;;  %v12057_v32 = vadd.f32 %v9941_v3, %v11838_v5  ;;  %10246 = vmatprep.mubr.f32.mxu1 %v7115_v31  ;;  %v12070_v3 = vpop.f32.mrf.mxu0 }
 0x363   : > { %v6000_v1 = vpop.f32.mrf.mxu1 }
 0x364   : > { %v12060_v0 = vadd.f32 %v6000_v1, %v11842_v48  ;;  %v7120_v1 = vld [vmem:[#allocation2 + $0x231] sm:$0xff] }
 0x365   : > { %v9944_v35 = vpop.f32.mrf.mxu1  ;;  %10247 = vmatmul.mubr.f32.gmra.mxu1 %v7116_v17 }
 0x366   : > { %12703 = vst [vmem:[#allocation12_spill] sm:$0xff] %v12060_v0  ;;  %v12065_v62 = vadd.f32 %v9944_v35, %v11846_v60  ;;  %10249 = vmatprep.mubr.f32.mxu1 %v7117_v42  ;;  %v7121_v0 = vld [vmem:[#allocation2 + $0x239] sm:$0xff]  ;;  %v12078_v42 = vpop.f32.mrf.mxu0 }
 0x367   : > { %v6010_v36 = vpop.f32.mrf.mxu1 }
 0x368   : > { %v12068_v5 = vadd.f32 %v6010_v36, %v11850_v27  ;;  %v7122_v36 = vld [vmem:[#allocation2 + $0x241] sm:$0xff] }
 0x369   : > { %v9947_v31 = vpop.f32.mrf.mxu1  ;;  %10250 = vmatmul.mubr.f32.gmra.mxu1 %v7118_v45 }
 0x36a   : > { %v12073_v48 = vadd.f32 %v9947_v31, %v11853_v46  ;;  %10252 = vmatprep.mubr.f32.mxu1 %v7119_v10  ;;  %v12086_v10 = vpop.f32.mrf.mxu0 }
 0x36b   : > { %v6020_v17 = vpop.f32.mrf.mxu1 }
 0x36c   : > { %v12076_v60 = vadd.f32 %v6020_v17, %v11856_v29 }
 0x36d   : > { %v9950_v35 = vpop.f32.mrf.mxu1  ;;  %10253 = vmatmul.mubr.f32.gmra.mxu1 %v7120_v1  ;;  %v12094_v1 = vpop.f32.mrf.mxu0 }
 0x36e   : > { %12704 = vst [vmem:[#allocation11_spill] sm:$0xff] %v12076_v60  ;;  %v12081_v27 = vadd.f32 %v9950_v35, %v11859_v7  ;;  %10255 = vmatprep.mubr.f32.mxu1 %v7121_v0 }
 0x36f   : > { %v6030_v45 = vpop.f32.mrf.mxu1 }
 0x370   : > { %v12084_v46 = vadd.f32 %v6030_v45, %v11862_v6  ;;  %v12102_v45 = vpop.f32.mrf.mxu0 }
 0x371   : > { %v9953_v31 = vpop.f32.mrf.mxu1  ;;  %10256 = vmatmul.mubr.f32.gmra.mxu1 %v7122_v36 }
 0x372   : > { %v12089_v29 = vadd.f32 %v9953_v31, %v11865_v20 }
 0x373   : > { %v6040_v17 = vpop.f32.mrf.mxu1 }
 0x374   : > { %v12092_v60 = vadd.f32 %v6040_v17, %v11868_v53  ;;  %v12110_v17 = vpop.f32.mrf.mxu0 }
 0x375   : > { %v9956_v7 = vpop.f32.mrf.mxu1 }
 0x376   : > { %12705 = vst [vmem:[#allocation15_spill] sm:$0xff] %v12092_v60  ;;  %v12097_v0 = vadd.f32 %v9956_v7, %v11871_v23 }
 0x377   : > { %v6050_v35 = vpop.f32.mrf.mxu1 }
 0x378   : > { %v12100_v6 = vadd.f32 %v6050_v35, %v11874_v43  ;;  %v12118_v35 = vpop.f32.mrf.mxu0 }
 0x379   : > { %v9959_v36 = vpop.f32.mrf.mxu1 }
 0x37a   : > { %12706 = vst [vmem:[#allocation14_spill] sm:$0xff] %v12100_v6  ;;  %v12105_v20 = vadd.f32 %v9959_v36, %v11877_v18 }
 0x37b   : > { %v6060_v31 = vpop.f32.mrf.mxu1 }
 0x37c   : > { %v12108_v53 = vadd.f32 %v6060_v31, %v11880_v11  ;;  %v12126_v31 = vpop.f32.mrf.mxu0 }
 0x37d   : > { %v9962_v60 = vpop.f32.mrf.mxu1 }
 0x37e   : > { %12707 = vst [vmem:[#allocation33_spill] sm:$0xff] %v12108_v53  ;;  %v12113_v23 = vadd.f32 %v9962_v60, %v11883_v34 }
 0x37f   : > { %v6070_v7 = vpop.f32.mrf.mxu1 }
 0x380   : > { %v12116_v43 = vadd.f32 %v6070_v7, %v11886_v14  ;;  %v12134_v7 = vpop.f32.mrf.mxu0 }
 0x381   : > { %v9965_v6 = vpop.f32.mrf.mxu1 }
 0x382   : > { %12708 = vst [vmem:[#allocation34_spill] sm:$0xff] %v12116_v43  ;;  %v12121_v18 = vadd.f32 %v9965_v6, %v11889_v9 }
 0x383   : > { %v6080_v36 = vpop.f32.mrf.mxu1 }
 0x384   : > { %12709 = vst [vmem:[#allocation35_spill] sm:$0xff] %v12121_v18  ;;  %v12124_v11 = vadd.f32 %v6080_v36, %v11892_v30  ;;  %v12142_v36 = vpop.f32.mrf.mxu0  ;;  %v12727_v18 = vld [vmem:[#allocation19_spill] sm:$0xff] }
 0x385   : > { %v9968_v53 = vpop.f32.mrf.mxu1 }
 0x386   : > { %12710 = vst [vmem:[#allocation36_spill] sm:$0xff] %v12124_v11  ;;  %v12129_v34 = vadd.f32 %v9968_v53, %v11895_v26 }
 0x387   : > { %v6090_v60 = vpop.f32.mrf.mxu1 }
 0x388   : > { %12711 = vst [vmem:[#allocation37_spill] sm:$0xff] %v12129_v34  ;;  %v12132_v14 = vadd.f32 %v6090_v60, %v11898_v24  ;;  %v12150_v60 = vpop.f32.mrf.mxu0  ;;  %v12723_v34 = vld [vmem:[#allocation17_spill] sm:$0xff] }
 0x389   : > { %v9971_v43 = vpop.f32.mrf.mxu1 }
 0x38a   : > { %12712 = vst [vmem:[#allocation38_spill] sm:$0xff] %v12132_v14  ;;  %v12137_v9 = vadd.f32 %v9971_v43, %v11901_v39 }
 0x38b   : > { %v6100_v6 = vpop.f32.mrf.mxu1 }
 0x38c   : > { %12713 = vst [vmem:[#allocation39_spill] sm:$0xff] %v12137_v9  ;;  %v12140_v30 = vadd.f32 %v6100_v6, %v11904_v59  ;;  %v12158_v6 = vpop.f32.mrf.mxu0  ;;  %v12719_v9 = vld [vmem:[#allocation13_spill] sm:$0xff] }
 0x38d   : > { %v9974_v11 = vpop.f32.mrf.mxu1 }
 0x38e   : > { %12714 = vst [vmem:[#allocation40_spill] sm:$0xff] %v12140_v30  ;;  %v12145_v26 = vadd.f32 %v9974_v11, %v11907_v52 }
 0x38f   : > { %v6110_v53 = vpop.f32.mrf.mxu1 }
 0x390   : > { %12715 = vst [vmem:[#allocation41_spill] sm:$0xff] %v12145_v26  ;;  %v12148_v24 = vadd.f32 %v6110_v53, %v11910_v33  ;;  %v12721_v26 = vld [vmem:[#allocation16_spill] sm:$0xff]  ;;  %v12166_v53 = vpop.f32.mrf.mxu0 }
 0x391   : > { %v9977_v14 = vpop.f32.mrf.mxu1 }
 0x392   : > { %12716 = vst [vmem:[#allocation42_spill] sm:$0xff] %v12148_v24  ;;  %v12153_v39 = vadd.f32 %v9977_v14, %v11913_v2 }
 0x393   : > { %v6120_v43 = vpop.f32.mrf.mxu1 }
 0x394   : > { %12717 = vst [vmem:[#allocation43_spill] sm:$0xff] %v12153_v39  ;;  %v12156_v59 = vadd.f32 %v6120_v43, %v11916_v47  ;;  %v12725_v39 = vld [vmem:[#allocation18_spill] sm:$0xff]  ;;  %v12174_v43 = vpop.f32.mrf.mxu0 }
 0x395   : > { %v9980_v30 = vpop.f32.mrf.mxu1 }
 0x396   : > { %12718 = vst [vmem:[#allocation44_spill] sm:$0xff] %v12156_v59  ;;  %v12161_v52 = vadd.f32 %v9980_v30, %v12719_v9 }
 0x397   : > { %v6130_v11 = vpop.f32.mrf.mxu1 }
 0x398   : > { %12720 = vst [vmem:[#allocation13_spill] sm:$0xff] %v12161_v52  ;;  %v12164_v33 = vadd.f32 %v6130_v11, %v12721_v26  ;;  %v12728_v52 = vld [vmem:[#allocation4_spill] sm:$0xff]  ;;  %v12182_v11 = vpop.f32.mrf.mxu0 }
 0x399   : > { %v9983_v24 = vpop.f32.mrf.mxu1 }
 0x39a   : > { %12722 = vst [vmem:[#allocation16_spill] sm:$0xff] %v12164_v33  ;;  %v12169_v2 = vadd.f32 %v9983_v24, %v12723_v34 }
 0x39b   : > { %v6140_v14 = vpop.f32.mrf.mxu1 }
 0x39c   : > { %12724 = vst [vmem:[#allocation17_spill] sm:$0xff] %v12169_v2  ;;  %v12172_v47 = vadd.f32 %v6140_v14, %v12725_v39  ;;  %v12730_v2 = vld [vmem:[#allocation5_spill] sm:$0xff]  ;;  %v12190_v14 = vpop.f32.mrf.mxu0 }
 0x39d   : > { %v9986_v59 = vpop.f32.mrf.mxu1 }
 0x39e   : > { %12726 = vst [vmem:[#allocation18_spill] sm:$0xff] %v12172_v47  ;;  %v12177_v9 = vadd.f32 %v9986_v59, %v12727_v18 }
 0x39f   : > { %v6150_v30 = vpop.f32.mrf.mxu1 }
 0x3a0   : > { %v12180_v26 = vadd.f32 %v6150_v30, %v12728_v52  ;;  %v12198_v30 = vpop.f32.mrf.mxu0 }
 0x3a1   : > { %v9989_v33 = vpop.f32.mrf.mxu1 }
 0x3a2   : > { %12729 = vst [vmem:[#allocation19_spill] sm:$0xff] %v12180_v26  ;;  %v12185_v34 = vadd.f32 %v9989_v33, %v11937_v58 }
 0x3a3   : > { %v6160_v24 = vpop.f32.mrf.mxu1 }
 0x3a4   : > { %v12188_v39 = vadd.f32 %v6160_v24, %v12730_v2  ;;  %v12206_v24 = vpop.f32.mrf.mxu0 }
 0x3a5   : > { %v9992_v47 = vpop.f32.mrf.mxu1 }
 0x3a6   : > { %12731 = vst [vmem:[#allocation4_spill] sm:$0xff] %v12188_v39  ;;  %v12193_v18 = vadd.f32 %v9992_v47, %v11943_v4 }
 0x3a7   : > { %v6170_v59 = vpop.f32.mrf.mxu1 }
 0x3a8   : > { %12732 = vst [vmem:[#allocation5_spill] sm:$0xff] %v12193_v18  ;;  %v12196_v52 = vadd.f32 %v6170_v59, %v11946_v51  ;;  %v12214_v59 = vpop.f32.mrf.mxu0  ;;  %v12743_v18 = vld [vmem:[#allocation9_spill] sm:$0xff] }
 0x3a9   : > { %v9995_v26 = vpop.f32.mrf.mxu1 }
 0x3aa   : > { %12733 = vst [vmem:[#allocation45_spill] sm:$0xff] %v12196_v52  ;;  %v12201_v58 = vadd.f32 %v9995_v26, %v11949_v50 }
 0x3ab   : > { %v6180_v33 = vpop.f32.mrf.mxu1 }
 0x3ac   : > { %12734 = vst [vmem:[#allocation46_spill] sm:$0xff] %v12201_v58  ;;  %v12204_v2 = vadd.f32 %v6180_v33, %v11952_v55  ;;  %v6932_v55 = vadd.f32 %v11964_v37, %v11969_v25 }
 0x3ad   : > { %v9998_v39 = vpop.f32.mrf.mxu1 }
 0x3ae   : > { %12735 = vst [vmem:[#allocation47_spill] sm:$0xff] %v12204_v2  ;;  %v12209_v4 = vadd.f32 %v9998_v39, %v11955_v13  ;;  %v12224_v13 = vpop.f32.mrf.mxu0 }
 0x3af   : > { %v6190_v47 = vpop.f32.mrf.mxu1 }
 0x3b0   : > { %12736 = vst [vmem:[#allocation48_spill] sm:$0xff] %v12209_v4  ;;  %v12212_v51 = vadd.f32 %v6190_v47, %v11958_v8  ;;  %v12229_v8 = vld [vmem:[%s12531_s4] ss:$0 sm:$0xff]  ;;  %v6931_v47 = vadd.f32 %v11974_v54, %v11972_v21  ;;  %v12243_v25 = vpop.f32.mrf.mxu0 }
 0x3b1   : > { %v10001_v52 = vpop.f32.mrf.mxu1  ;;  %v12741_v21 = vld [vmem:[#allocation6_spill] sm:$0xff] }
 0x3b2   : > { %12737 = vst [vmem:[#allocation49_spill] sm:$0xff] %v12212_v51  ;;  %v12217_v50 = vadd.f32 %v10001_v52, %v11961_v28  ;;  %v6933_v54 = vadd.f32 %v11990_v57, %v12741_v21  ;;  %v12252_v2 = vpop.f32.mrf.mxu0  ;;  %v6935_v57 = vadd.f32 %v12006_v41, %v12743_v18  ;;  %v12745_v21 = vld [vmem:[#allocation25_spill] sm:$0xff]  ;;  %v12746_v41 = vld [vmem:[#allocation20_spill] sm:$0xff] }
 0x3b3   : > { %v6200_v26 = vpop.f32.mrf.mxu1  ;;  %v6937_v18 = vadd.f32 %v12022_v63, %v12746_v41  ;;  %v12748_v63 = vld [vmem:[#allocation22_spill] sm:$0xff] }
 0x3b4   : > { %12738 = vst [vmem:[#allocation50_spill] sm:$0xff] %v12217_v50  ;;  %v12222_v33 = vadd.f32 %v6200_v26, %v11966_v16  ;;  %v12740_v50 = vld [vmem:[#allocation7_spill] sm:$0xff] }
 0x3b5   : > { %v10164_v39 = vpop.f32.mrf.mxu1  ;;  %v6934_v51 = vadd.f32 %v12740_v50, %v11977_v12 }
 0x3b6   : > { %12739 = vst [vmem:[#allocation51_spill] sm:$0xff] %v12222_v33  ;;  %v7590_v28 = vadd.f32 %v10164_v39, %v6932_v55 }
 0x3b7   : > { %v7206_v52 = vpop.f32.mrf.mxu1 }
 0x3b8   : > { %v7789_v37 = vadd.f32 %v12229_v8, %v7590_v28  ;;  %v7589_v16 = vadd.f32 %v7206_v52, %v6931_v47  ;;  %v12742_v47 = vld [vmem:[#allocation8_spill] sm:$0xff] }
 0x3b9   : > { %v10167_v26 = vpop.f32.mrf.mxu1  ;;  %v6936_v28 = vadd.f32 %v11998_v19, %v12742_v47  ;;  %v12744_v19 = vld [vmem:[#allocation10_spill] sm:$0xff] }
 0x3ba   : > { %v7853_v55 = vmax.f32 %v7789_v37, 0.0  ;;  %v7788_v12 = vadd.f32 %v12229_v8, %v7589_v16  ;;  %v7592_v50 = vadd.f32 %v10167_v26, %v6934_v51 }
 0x3bb   : > { %v7216_v39 = vpop.f32.mrf.mxu1 }
 0x3bc   : > { %7917 = vst [vmem:[%s12241_s23 + $0x8] sm:$0xff] %v7853_v55  ;;  %v7852_v52 = vmax.f32 %v7788_v12, 0.0  ;;  %v7791_v33 = vadd.f32 %v12229_v8, %v7592_v50  ;;  %v7591_v4 = vadd.f32 %v7216_v39, %v6933_v54  ;;  %v6938_v55 = vadd.f32 %v12745_v21, %v12744_v19  ;;  %v12262_v39 = vpop.f32.mrf.mxu0 }
 0x3bd   : > { %v10170_v58 = vpop.f32.mrf.mxu1  ;;  %v6939_v21 = vadd.f32 %v12038_v61, %v12748_v63  ;;  %v12750_v61 = vld [vmem:[#allocation24_spill] sm:$0xff] }
 0x3be   : > { %7916 = vst [vmem:[%s12241_s23] sm:$0xff] %v7852_v52  ;;  %v7855_v37 = vmax.f32 %v7791_v33, 0.0  ;;  %v7790_v51 = vadd.f32 %v12229_v8, %v7591_v4  ;;  %v7594_v16 = vadd.f32 %v10170_v58, %v6936_v28  ;;  %v12747_v52 = vld [vmem:[#allocation21_spill] sm:$0xff] }
 0x3bf   : > { %v7226_v26 = vpop.f32.mrf.mxu1 }
 0x3c0   : > { %7919 = vst [vmem:[%s12241_s23 + $0x18] sm:$0xff] %v7855_v37  ;;  %v7854_v12 = vmax.f32 %v7790_v51, 0.0  ;;  %v7793_v54 = vadd.f32 %v12229_v8, %v7594_v16  ;;  %v7593_v50 = vadd.f32 %v7226_v26, %v6935_v57  ;;  %v6940_v37 = vadd.f32 %v12030_v38, %v12747_v52  ;;  %v12272_v26 = vpop.f32.mrf.mxu0  ;;  %v12749_v38 = vld [vmem:[#allocation23_spill] sm:$0xff] }
 0x3c1   : > { %v10173_v47 = vpop.f32.mrf.mxu1 }
 0x3c2   : > { %7918 = vst [vmem:[%s12241_s23 + $0x10] sm:$0xff] %v7854_v12  ;;  %v7857_v4 = vmax.f32 %v7793_v54, 0.0  ;;  %v7792_v58 = vadd.f32 %v12229_v8, %v7593_v50  ;;  %v7596_v33 = vadd.f32 %v10173_v47, %v6938_v55  ;;  %v6942_v47 = vadd.f32 %v12046_v49, %v12749_v38  ;;  %v12751_v49 = vld [vmem:[#allocation26_spill] sm:$0xff] }
 0x3c3   : > { %v7236_v28 = vpop.f32.mrf.mxu1 }
 0x3c4   : > { %7921 = vst [vmem:[%s12241_s23 + $0x28] sm:$0xff] %v7857_v4  ;;  %v7856_v51 = vmax.f32 %v7792_v58, 0.0  ;;  %v7795_v57 = vadd.f32 %v12229_v8, %v7596_v33  ;;  %v7595_v16 = vadd.f32 %v7236_v28, %v6937_v18  ;;  %v12282_v58 = vpop.f32.mrf.mxu0  ;;  %v6941_v28 = vadd.f32 %v12054_v40, %v12750_v61  ;;  %v12752_v40 = vld [vmem:[#allocation27_spill] sm:$0xff] }
 0x3c5   : > { %v10176_v19 = vpop.f32.mrf.mxu1 }
 0x3c6   : > { %7920 = vst [vmem:[%s12241_s23 + $0x20] sm:$0xff] %v7856_v51  ;;  %v7859_v12 = vmax.f32 %v7795_v57, 0.0  ;;  %v7794_v55 = vadd.f32 %v12229_v8, %v7595_v16  ;;  %v7598_v54 = vadd.f32 %v10176_v19, %v6940_v37  ;;  %v6944_v16 = vadd.f32 %v12062_v56, %v12751_v49 }
 0x3c7   : > { %v7246_v50 = vpop.f32.mrf.mxu1  ;;  %v6946_v56 = vadd.f32 %v12078_v42, %v12025_v22  ;;  %v6948_v22 = vadd.f32 %v12094_v1, %v12033_v44  ;;  %v6950_v44 = vadd.f32 %v12110_v17, %v12041_v15  ;;  %v12756_v15 = vld [vmem:[#allocation31_spill] sm:$0xff] }
 0x3c8   : > { %7923 = vst [vmem:[%s12241_s23 + $0x38] sm:$0xff] %v7859_v12  ;;  %v7858_v41 = vmax.f32 %v7794_v55, 0.0  ;;  %v7797_v18 = vadd.f32 %v12229_v8, %v7598_v54  ;;  %v7597_v4 = vadd.f32 %v7246_v50, %v6939_v21  ;;  %v12292_v12 = vpop.f32.mrf.mxu0  ;;  %v6943_v54 = vadd.f32 %v12070_v3, %v12752_v40  ;;  %v12753_v3 = vld [vmem:[#allocation28_spill] sm:$0xff] }
 0x3c9   : > { %v10179_v33 = vpop.f32.mrf.mxu1  ;;  %v6952_v17 = vadd.f32 %v12126_v31, %v12756_v15  ;;  %v6954_v31 = vadd.f32 %v12142_v36, %v12057_v32  ;;  %v6956_v32 = vadd.f32 %v12158_v6, %v12065_v62  ;;  %v6958_v62 = vadd.f32 %v12174_v43, %v12073_v48 }
 0x3ca   : > { %7922 = vst [vmem:[%s12241_s23 + $0x30] sm:$0xff] %v7858_v41  ;;  %v7861_v52 = vmax.f32 %v7797_v18, 0.0  ;;  %v7796_v37 = vadd.f32 %v12229_v8, %v7597_v4  ;;  %v7600_v51 = vadd.f32 %v10179_v33, %v6942_v47  ;;  %v12302_v61 = vpop.f32.mrf.mxu0  ;;  %v6960_v48 = vadd.f32 %v12190_v14, %v12081_v27 }
 0x3cb   : > { %v7256_v57 = vpop.f32.mrf.mxu1  ;;  %v6962_v27 = vadd.f32 %v12206_v24, %v12089_v29  ;;  %v6964_v29 = vadd.f32 %v12224_v13, %v12097_v0  ;;  %v6966_v0 = vadd.f32 %v12252_v2, %v12105_v20  ;;  %v6968_v20 = vadd.f32 %v12272_v26, %v12113_v23  ;;  %v12764_v23 = vld [vmem:[#allocation35_spill] sm:$0xff] }
 0x3cc   : > { %7925 = vst [vmem:[%s12241_s23 + $0x48] sm:$0xff] %v7861_v52  ;;  %v7860_v19 = vmax.f32 %v7796_v37, 0.0  ;;  %v7799_v63 = vadd.f32 %v12229_v8, %v7600_v51  ;;  %v7599_v21 = vadd.f32 %v7256_v57, %v6941_v28  ;;  %v6945_v52 = vadd.f32 %v12086_v10, %v12753_v3  ;;  %v12754_v10 = vld [vmem:[#allocation29_spill] sm:$0xff] }
 0x3cd   : > { %v10182_v55 = vpop.f32.mrf.mxu1  ;;  %v6970_v26 = vadd.f32 %v12292_v12, %v12764_v23  ;;  %v12766_v12 = vld [vmem:[#allocation37_spill] sm:$0xff] }
 0x3ce   : > { %7924 = vst [vmem:[%s12241_s23 + $0x40] sm:$0xff] %v7860_v19  ;;  %v7863_v50 = vmax.f32 %v7799_v63, 0.0  ;;  %v7798_v38 = vadd.f32 %v12229_v8, %v7599_v21  ;;  %v7602_v47 = vadd.f32 %v10182_v55, %v6944_v16  ;;  %v12312_v63 = vpop.f32.mrf.mxu0  ;;  %v6947_v55 = vadd.f32 %v12102_v45, %v12754_v10  ;;  %v12755_v45 = vld [vmem:[#allocation30_spill] sm:$0xff] }
 0x3cf   : > { %v7266_v41 = vpop.f32.mrf.mxu1 }
 0x3d0   : > { %7927 = vst [vmem:[%s12241_s23 + $0x58] sm:$0xff] %v7863_v50  ;;  %v7862_v18 = vmax.f32 %v7798_v38, 0.0  ;;  %v7801_v4 = vadd.f32 %v12229_v8, %v7602_v47  ;;  %v7601_v33 = vadd.f32 %v7266_v41, %v6943_v54 }
 0x3d1   : > { %v10185_v28 = vpop.f32.mrf.mxu1 }
 0x3d2   : > { %7926 = vst [vmem:[%s12241_s23 + $0x50] sm:$0xff] %v7862_v18  ;;  %v7865_v37 = vmax.f32 %v7801_v4, 0.0  ;;  %v7800_v51 = vadd.f32 %v12229_v8, %v7601_v33  ;;  %v7604_v57 = vadd.f32 %v10185_v28, %v6946_v56  ;;  %v12322_v56 = vpop.f32.mrf.mxu0  ;;  %v6949_v4 = vadd.f32 %v12118_v35, %v12755_v45  ;;  %v12757_v35 = vld [vmem:[#allocation32_spill] sm:$0xff] }
 0x3d3   : > { %v7276_v49 = vpop.f32.mrf.mxu1 }
 0x3d4   : > { %7929 = vst [vmem:[%s12241_s23 + $0x68] sm:$0xff] %v7865_v37  ;;  %v7864_v42 = vmax.f32 %v7800_v51, 0.0  ;;  %v7803_v16 = vadd.f32 %v12229_v8, %v7604_v57  ;;  %v7603_v19 = vadd.f32 %v7276_v49, %v6945_v52  ;;  %v12332_v49 = vpop.f32.mrf.mxu0 }
 0x3d5   : > { %v10188_v21 = vpop.f32.mrf.mxu1 }
 0x3d6   : > { %7928 = vst [vmem:[%s12241_s23 + $0x60] sm:$0xff] %v7864_v42  ;;  %v7867_v40 = vmax.f32 %v7803_v16, 0.0  ;;  %v7802_v54 = vadd.f32 %v12229_v8, %v7603_v19  ;;  %v7606_v50 = vadd.f32 %v10188_v21, %v6948_v22  ;;  %v6951_v42 = vadd.f32 %v12134_v7, %v12757_v35  ;;  %v12758_v7 = vld [vmem:[#allocation12_spill] sm:$0xff] }
 0x3d7   : > { %v7286_v38 = vpop.f32.mrf.mxu1 }
 0x3d8   : > { %7931 = vst [vmem:[%s12241_s23 + $0x78] sm:$0xff] %v7867_v40  ;;  %v7866_v1 = vmax.f32 %v7802_v54, 0.0  ;;  %v7805_v47 = vadd.f32 %v12229_v8, %v7606_v50  ;;  %v7605_v41 = vadd.f32 %v7286_v38, %v6947_v55  ;;  %v12342_v50 = vpop.f32.mrf.mxu0 }
 0x3d9   : > { %v10191_v18 = vpop.f32.mrf.mxu1 }
 0x3da   : > { %7930 = vst [vmem:[%s12241_s23 + $0x70] sm:$0xff] %v7866_v1  ;;  %v7869_v33 = vmax.f32 %v7805_v47, 0.0  ;;  %v7804_v28 = vadd.f32 %v12229_v8, %v7605_v41  ;;  %v7608_v3 = vadd.f32 %v10191_v18, %v6950_v44  ;;  %v6953_v44 = vadd.f32 %v12150_v60, %v12758_v7 }
 0x3db   : > { %v7296_v52 = vpop.f32.mrf.mxu1  ;;  %v6955_v60 = vadd.f32 %v12166_v53, %v12068_v5  ;;  %v12759_v5 = vld [vmem:[#allocation11_spill] sm:$0xff] }
 0x3dc   : > { %7933 = vst [vmem:[%s12241_s23 + $0x88] sm:$0xff] %v7869_v33  ;;  %v7868_v37 = vmax.f32 %v7804_v28, 0.0  ;;  %v7807_v51 = vadd.f32 %v12229_v8, %v7608_v3  ;;  %v7607_v57 = vadd.f32 %v7296_v52, %v6949_v4  ;;  %v12352_v33 = vpop.f32.mrf.mxu0  ;;  %v6957_v53 = vadd.f32 %v12182_v11, %v12759_v5 }
 0x3dd   : > { %v10194_v22 = vpop.f32.mrf.mxu1  ;;  %v6959_v11 = vadd.f32 %v12198_v30, %v12084_v46  ;;  %v12760_v46 = vld [vmem:[#allocation15_spill] sm:$0xff] }
 0x3de   : > { %7932 = vst [vmem:[%s12241_s23 + $0x80] sm:$0xff] %v7868_v37  ;;  %v7871_v16 = vmax.f32 %v7807_v51, 0.0  ;;  %v7806_v19 = vadd.f32 %v12229_v8, %v7607_v57  ;;  %v7610_v21 = vadd.f32 %v10194_v22, %v6952_v17  ;;  %v12362_v57 = vpop.f32.mrf.mxu0  ;;  %v6961_v30 = vadd.f32 %v12214_v59, %v12760_v46  ;;  %v12761_v59 = vld [vmem:[#allocation14_spill] sm:$0xff] }
 0x3df   : > { %v7306_v10 = vpop.f32.mrf.mxu1 }
 0x3e0   : > { %7935 = vst [vmem:[%s12241_s23 + $0x98] sm:$0xff] %v7871_v16  ;;  %v7870_v55 = vmax.f32 %v7806_v19, 0.0  ;;  %v7809_v40 = vadd.f32 %v12229_v8, %v7610_v21  ;;  %v7609_v54 = vadd.f32 %v7306_v10, %v6951_v42 }
 0x3e1   : > { %v10197_v38 = vpop.f32.mrf.mxu1 }
 0x3e2   : > { %7934 = vst [vmem:[%s12241_s23 + $0x90] sm:$0xff] %v7870_v55  ;;  %v7873_v1 = vmax.f32 %v7809_v40, 0.0  ;;  %v7808_v47 = vadd.f32 %v12229_v8, %v7609_v54  ;;  %v7612_v41 = vadd.f32 %v10197_v38, %v6954_v31  ;;  %v12372_v31 = vpop.f32.mrf.mxu0 }
 0x3e3   : > { %v7316_v18 = vpop.f32.mrf.mxu1 }
 0x3e4   : > { %7937 = vst [vmem:[%s12241_s23 + $0xa8] sm:$0xff] %v7873_v1  ;;  %v7872_v36 = vmax.f32 %v7808_v47, 0.0  ;;  %v7811_v45 = vadd.f32 %v12229_v8, %v7612_v41  ;;  %v7611_v4 = vadd.f32 %v7316_v18, %v6953_v44  ;;  %v12382_v47 = vpop.f32.mrf.mxu0 }
 0x3e5   : > { %v10200_v28 = vpop.f32.mrf.mxu1 }
 0x3e6   : > { %7936 = vst [vmem:[%s12241_s23 + $0xa0] sm:$0xff] %v7872_v36  ;;  %v7875_v3 = vmax.f32 %v7811_v45, 0.0  ;;  %v7810_v52 = vadd.f32 %v12229_v8, %v7611_v4  ;;  %v7614_v15 = vadd.f32 %v10200_v28, %v6956_v32 }
 0x3e7   : > { %v7326_v17 = vpop.f32.mrf.mxu1 }
 0x3e8   : > { %7939 = vst [vmem:[%s12241_s23 + $0xb8] sm:$0xff] %v7875_v3  ;;  %v7874_v6 = vmax.f32 %v7810_v52, 0.0  ;;  %v7813_v37 = vadd.f32 %v12229_v8, %v7614_v15  ;;  %v7613_v51 = vadd.f32 %v7326_v17, %v6955_v60  ;;  %v12392_v60 = vpop.f32.mrf.mxu0  ;;  %v6963_v52 = vadd.f32 %v12243_v25, %v12761_v59  ;;  %v12762_v25 = vld [vmem:[#allocation33_spill] sm:$0xff] }
 0x3e9   : > { %v10203_v22 = vpop.f32.mrf.mxu1 }
 0x3ea   : > { %7938 = vst [vmem:[%s12241_s23 + $0xb0] sm:$0xff] %v7874_v6  ;;  %v7877_v35 = vmax.f32 %v7813_v37, 0.0  ;;  %v7812_v42 = vadd.f32 %v12229_v8, %v7613_v51  ;;  %v7616_v16 = vadd.f32 %v10203_v22, %v6958_v62  ;;  %v12402_v22 = vpop.f32.mrf.mxu0 }
 0x3eb   : > { %v7336_v19 = vpop.f32.mrf.mxu1 }
 0x3ec   : > { %7941 = vst [vmem:[%s12241_s23 + $0xc8] sm:$0xff] %v7877_v35  ;;  %v7876_v43 = vmax.f32 %v7812_v42, 0.0  ;;  %v7815_v21 = vadd.f32 %v12229_v8, %v7616_v16  ;;  %v7615_v10 = vadd.f32 %v7336_v19, %v6957_v53  ;;  %v6965_v53 = vadd.f32 %v12262_v39, %v12762_v25  ;;  %v12763_v39 = vld [vmem:[#allocation34_spill] sm:$0xff] }
 0x3ed   : > { %v10206_v55 = vpop.f32.mrf.mxu1 }
 0x3ee   : > { %7940 = vst [vmem:[%s12241_s23 + $0xc0] sm:$0xff] %v7876_v43  ;;  %v7879_v40 = vmax.f32 %v7815_v21, 0.0  ;;  %v7814_v54 = vadd.f32 %v12229_v8, %v7615_v10  ;;  %v7618_v38 = vadd.f32 %v10206_v55, %v6960_v48  ;;  %v12412_v21 = vpop.f32.mrf.mxu0  ;;  %v6967_v55 = vadd.f32 %v12282_v58, %v12763_v39  ;;  %v12765_v58 = vld [vmem:[#allocation36_spill] sm:$0xff] }
 0x3ef   : > { %v7346_v7 = vpop.f32.mrf.mxu1 }
 0x3f0   : > { %7943 = vst [vmem:[%s12241_s23 + $0xd8] sm:$0xff] %v7879_v40  ;;  %v7878_v14 = vmax.f32 %v7814_v54, 0.0  ;;  %v7817_v44 = vadd.f32 %v12229_v8, %v7618_v38  ;;  %v7617_v1 = vadd.f32 %v7346_v7, %v6959_v11 }
 0x3f1   : > { %v10209_v41 = vpop.f32.mrf.mxu1 }
 0x3f2   : > { %7942 = vst [vmem:[%s12241_s23 + $0xd0] sm:$0xff] %v7878_v14  ;;  %v7881_v18 = vmax.f32 %v7817_v44, 0.0  ;;  %v7816_v32 = vadd.f32 %v12229_v8, %v7617_v1  ;;  %v7620_v36 = vadd.f32 %v10209_v41, %v6962_v27  ;;  %v12422_v44 = vpop.f32.mrf.mxu0  ;;  %v6969_v41 = vadd.f32 %v12302_v61, %v12765_v58  ;;  %v12767_v61 = vld [vmem:[#allocation38_spill] sm:$0xff] }
 0x3f3   : > { %v7356_v45 = vpop.f32.mrf.mxu1 }
 0x3f4   : > { %7945 = vst [vmem:[%s12241_s23 + $0xe8] sm:$0xff] %v7881_v18  ;;  %v7880_v24 = vmax.f32 %v7816_v32, 0.0  ;;  %v7819_v4 = vadd.f32 %v12229_v8, %v7620_v36  ;;  %v7619_v28 = vadd.f32 %v7356_v45, %v6961_v30  ;;  %v6972_v36 = vadd.f32 %v12312_v63, %v12766_v12  ;;  %v12768_v63 = vld [vmem:[#allocation39_spill] sm:$0xff] }
 0x3f5   : > { %v10212_v3 = vpop.f32.mrf.mxu1 }
 0x3f6   : > { %7944 = vst [vmem:[%s12241_s23 + $0xe0] sm:$0xff] %v7880_v24  ;;  %v7883_v15 = vmax.f32 %v7819_v4, 0.0  ;;  %v7818_v17 = vadd.f32 %v12229_v8, %v7619_v28  ;;  %v7622_v62 = vadd.f32 %v10212_v3, %v6964_v29  ;;  %v12432_v4 = vpop.f32.mrf.mxu0  ;;  %v6971_v3 = vadd.f32 %v12322_v56, %v12767_v61  ;;  %v12769_v56 = vld [vmem:[#allocation40_spill] sm:$0xff] }
 0x3f7   : > { %v7366_v6 = vpop.f32.mrf.mxu1 }
 0x3f8   : > { %7947 = vst [vmem:[%s12241_s23 + $0xf8] sm:$0xff] %v7883_v15  ;;  %v7882_v13 = vmax.f32 %v7818_v17, 0.0  ;;  %v7821_v37 = vadd.f32 %v12229_v8, %v7622_v62  ;;  %v7621_v51 = vadd.f32 %v7366_v6, %v6963_v52  ;;  %v6974_v62 = vadd.f32 %v12332_v49, %v12768_v63  ;;  %v12770_v49 = vld [vmem:[#allocation41_spill] sm:$0xff] }
 0x3f9   : > { %v10215_v5 = vpop.f32.mrf.mxu1 }
 0x3fa   : > { %7946 = vst [vmem:[%s12241_s23 + $0xf0] sm:$0xff] %v7882_v13  ;;  %v7885_v35 = vmax.f32 %v7821_v37, 0.0  ;;  %v7820_v42 = vadd.f32 %v12229_v8, %v7621_v51  ;;  %v7624_v16 = vadd.f32 %v10215_v5, %v6966_v0  ;;  %v12442_v37 = vpop.f32.mrf.mxu0  ;;  %v6973_v5 = vadd.f32 %v12342_v50, %v12769_v56 }
 0x3fb   : > { %v7376_v19 = vpop.f32.mrf.mxu1 }
 0x3fc   : > { %7949 = vst [vmem:[%s12241_s23 + $0x108] sm:$0xff] %v7885_v35  ;;  %v7884_v2 = vmax.f32 %v7820_v42, 0.0  ;;  %v7823_v48 = vadd.f32 %v12229_v8, %v7624_v16  ;;  %v7623_v43 = vadd.f32 %v7376_v19, %v6965_v53  ;;  %v6976_v16 = vadd.f32 %v12352_v33, %v12770_v49  ;;  %v12778_v49 = vld [vmem:[#allocation19_spill] sm:$0xff] }
 0x3fd   : > { %v10218_v10 = vpop.f32.mrf.mxu1 }
 0x3fe   : > { %7948 = vst [vmem:[%s12241_s23 + $0x100] sm:$0xff] %v7884_v2  ;;  %v7887_v11 = vmax.f32 %v7823_v48, 0.0  ;;  %v7822_v40 = vadd.f32 %v12229_v8, %v7623_v43  ;;  %v7626_v54 = vadd.f32 %v10218_v10, %v6968_v20  ;;  %v10117_v48 = vpop.f32.mrf.mxu0  ;;  %v12771_v10 = vld [vmem:[#allocation42_spill] sm:$0xff] }
 0x3ff   : > { %v7386_v38 = vpop.f32.mrf.mxu1  ;;  %v6975_v50 = vadd.f32 %v12362_v57, %v12771_v10 }
 0x400   : > { %7951 = vst [vmem:[%s12241_s23 + $0x118] sm:$0xff] %v7887_v11  ;;  %v7886_v7 = vmax.f32 %v7822_v40, 0.0  ;;  %v7825_v27 = vadd.f32 %v12229_v8, %v7626_v54  ;;  %v7625_v14 = vadd.f32 %v7386_v38, %v6967_v55  ;;  %v12772_v54 = vld [vmem:[#allocation43_spill] sm:$0xff] }
 0x401   : > { %v10221_v1 = vpop.f32.mrf.mxu1  ;;  %v6978_v33 = vadd.f32 %v12372_v31, %v12772_v54 }
 0x402   : > { %7950 = vst [vmem:[%s12241_s23 + $0x110] sm:$0xff] %v7886_v7  ;;  %v7889_v46 = vmax.f32 %v7825_v27, 0.0  ;;  %v7824_v30 = vadd.f32 %v12229_v8, %v7625_v14  ;;  %v7628_v18 = vadd.f32 %v10221_v1, %v6970_v26  ;;  %v6818_v7 = vpop.f32.mrf.mxu0  ;;  %v12773_v14 = vld [vmem:[#allocation44_spill] sm:$0xff] }
 0x403   : > { %v7396_v32 = vpop.f32.mrf.mxu1  ;;  %v6977_v57 = vadd.f32 %v12382_v47, %v12773_v14 }
 0x404   : > { %7953 = vst [vmem:[%s12241_s23 + $0x128] sm:$0xff] %v7889_v46  ;;  %v7888_v45 = vmax.f32 %v7824_v30, 0.0  ;;  %v7827_v29 = vadd.f32 %v12229_v8, %v7628_v18  ;;  %v7627_v24 = vadd.f32 %v7396_v32, %v6969_v41  ;;  %v12774_v30 = vld [vmem:[#allocation13_spill] sm:$0xff] }
 0x405   : > { %v10224_v28 = vpop.f32.mrf.mxu1  ;;  %v6980_v31 = vadd.f32 %v12392_v60, %v12774_v30 }
 0x406   : > { %7952 = vst [vmem:[%s12241_s23 + $0x120] sm:$0xff] %v7888_v45  ;;  %v7891_v59 = vmax.f32 %v7827_v29, 0.0  ;;  %v7826_v52 = vadd.f32 %v12229_v8, %v7627_v24  ;;  %v7630_v15 = vadd.f32 %v10224_v28, %v6972_v36  ;;  %v10120_v36 = vpop.f32.mrf.mxu0  ;;  %v12775_v29 = vld [vmem:[#allocation16_spill] sm:$0xff] }
 0x407   : > { %v7406_v17 = vpop.f32.mrf.mxu1  ;;  %v6979_v47 = vadd.f32 %v12402_v22, %v12775_v29  ;;  %v12783_v29 = vld [vmem:[#allocation47_spill] sm:$0xff] }
 0x408   : > { %7955 = vst [vmem:[%s12241_s23 + $0x138] sm:$0xff] %v7891_v59  ;;  %v7890_v6 = vmax.f32 %v7826_v52, 0.0  ;;  %v7829_v0 = vadd.f32 %v12229_v8, %v7630_v15  ;;  %v7629_v13 = vadd.f32 %v7406_v17, %v6971_v3  ;;  %v12776_v59 = vld [vmem:[#allocation17_spill] sm:$0xff]  ;;  %v6828_v63 = vpop.f32.mrf.mxu0 }
 0x409   : > { %v10227_v51 = vpop.f32.mrf.mxu1  ;;  %v6982_v60 = vadd.f32 %v12412_v21, %v12776_v59  ;;  %v6984_v21 = vadd.f32 %v12432_v4, %v12177_v9  ;;  %v6986_v9 = vadd.f32 %v10117_v48, %v12185_v34 }
 0x40a   : > { %7954 = vst [vmem:[%s12241_s23 + $0x130] sm:$0xff] %v7890_v6  ;;  %v7893_v25 = vmax.f32 %v7829_v0, 0.0  ;;  %v7828_v53 = vadd.f32 %v12229_v8, %v7629_v13  ;;  %v7632_v35 = vadd.f32 %v10227_v51, %v6974_v62  ;;  %v12777_v6 = vld [vmem:[#allocation18_spill] sm:$0xff]  ;;  %v10123_v56 = vpop.f32.mrf.mxu0 }
 0x40b   : > { %v7416_v42 = vpop.f32.mrf.mxu1  ;;  %v6981_v22 = vadd.f32 %v12422_v44, %v12777_v6  ;;  %v6983_v44 = vadd.f32 %v12442_v37, %v12778_v49  ;;  %v12785_v6 = vld [vmem:[#allocation49_spill] sm:$0xff] }
 0x40c   : > { %7957 = vst [vmem:[%s12241_s23 + $0x148] sm:$0xff] %v7893_v25  ;;  %v7892_v19 = vmax.f32 %v7828_v53, 0.0  ;;  %v7831_v20 = vadd.f32 %v12229_v8, %v7632_v35  ;;  %v7631_v2 = vadd.f32 %v7416_v42, %v6973_v5 }
 0x40d   : > { %v10230_v43 = vpop.f32.mrf.mxu1 }
 0x40e   : > { %7956 = vst [vmem:[%s12241_s23 + $0x140] sm:$0xff] %v7892_v19  ;;  %v7895_v39 = vmax.f32 %v7831_v20, 0.0  ;;  %v7830_v55 = vadd.f32 %v12229_v8, %v7631_v2  ;;  %v7634_v11 = vadd.f32 %v10230_v43, %v6976_v16  ;;  %v6838_v2 = vpop.f32.mrf.mxu0 }
 0x40f   : > { %v7426_v40 = vpop.f32.mrf.mxu1 }
 0x410   : > { %7959 = vst [vmem:[%s12241_s23 + $0x158] sm:$0xff] %v7895_v39  ;;  %v7894_v38 = vmax.f32 %v7830_v55, 0.0  ;;  %v7833_v23 = vadd.f32 %v12229_v8, %v7634_v11  ;;  %v7633_v26 = vadd.f32 %v7426_v40, %v6975_v50  ;;  %v12779_v55 = vld [vmem:[#allocation4_spill] sm:$0xff] }
 0x411   : > { %v10233_v27 = vpop.f32.mrf.mxu1  ;;  %v6985_v11 = vadd.f32 %v6818_v7, %v12779_v55 }
 0x412   : > { %7958 = vst [vmem:[%s12241_s23 + $0x150] sm:$0xff] %v7894_v38  ;;  %v7897_v1 = vmax.f32 %v7833_v23, 0.0  ;;  %v7832_v58 = vadd.f32 %v12229_v8, %v7633_v26  ;;  %v7636_v41 = vadd.f32 %v10233_v27, %v6978_v33  ;;  %v10126_v33 = vpop.f32.mrf.mxu0  ;;  %v12780_v23 = vld [vmem:[#allocation5_spill] sm:$0xff] }
 0x413   : > { %v7436_v46 = vpop.f32.mrf.mxu1  ;;  %v6988_v26 = vadd.f32 %v10120_v36, %v12780_v23 }
 0x414   : > { %7961 = vst [vmem:[%s12241_s23 + $0x168] sm:$0xff] %v7897_v1  ;;  %v7896_v18 = vmax.f32 %v7832_v58, 0.0  ;;  %v7835_v32 = vadd.f32 %v12229_v8, %v7636_v41  ;;  %v7635_v12 = vadd.f32 %v7436_v46, %v6977_v57  ;;  %v12781_v57 = vld [vmem:[#allocation45_spill] sm:$0xff]  ;;  %v6848_v46 = vpop.f32.mrf.mxu0 }
 0x415   : > { %v10236_v45 = vpop.f32.mrf.mxu1  ;;  %v6987_v1 = vadd.f32 %v6828_v63, %v12781_v57 }
 0x416   : > { %7960 = vst [vmem:[%s12241_s23 + $0x160] sm:$0xff] %v7896_v18  ;;  %v7899_v24 = vmax.f32 %v7835_v32, 0.0  ;;  %v7834_v28 = vadd.f32 %v12229_v8, %v7635_v12  ;;  %v7638_v61 = vadd.f32 %v10236_v45, %v6980_v31  ;;  %v12782_v31 = vld [vmem:[#allocation46_spill] sm:$0xff] }
 0x417   : > { %v7446_v3 = vpop.f32.mrf.mxu1  ;;  %v6990_v18 = vadd.f32 %v10123_v56, %v12782_v31 }
 0x418   : > { %7963 = vst [vmem:[%s12241_s23 + $0x178] sm:$0xff] %v7899_v24  ;;  %v7898_v52 = vmax.f32 %v7834_v28, 0.0  ;;  %v7837_v15 = vadd.f32 %v12229_v8, %v7638_v61  ;;  %v7637_v17 = vadd.f32 %v7446_v3, %v6979_v47  ;;  %v6989_v47 = vadd.f32 %v6838_v2, %v12783_v29  ;;  %v10129_v3 = vpop.f32.mrf.mxu0 }
 0x419   : > { %v10239_v62 = vpop.f32.mrf.mxu1 }
 0x41a   : > { %7962 = vst [vmem:[%s12241_s23 + $0x170] sm:$0xff] %v7898_v52  ;;  %v7901_v0 = vmax.f32 %v7837_v15, 0.0  ;;  %v7836_v13 = vadd.f32 %v12229_v8, %v7637_v17  ;;  %v7640_v51 = vadd.f32 %v10239_v62, %v6982_v60  ;;  %v12784_v60 = vld [vmem:[#allocation48_spill] sm:$0xff]  ;;  %v6858_v56 = vpop.f32.mrf.mxu0 }
 0x41b   : > { %v7456_v5 = vpop.f32.mrf.mxu1  ;;  %v6992_v52 = vadd.f32 %v10126_v33, %v12784_v60 }
 0x41c   : > { %7965 = vst [vmem:[%s12241_s23 + $0x188] sm:$0xff] %v7901_v0  ;;  %v7900_v25 = vmax.f32 %v7836_v13, 0.0  ;;  %v7839_v53 = vadd.f32 %v12229_v8, %v7640_v51  ;;  %v7639_v35 = vadd.f32 %v7456_v5, %v6981_v22  ;;  %v6991_v22 = vadd.f32 %v6848_v46, %v12785_v6 }
 0x41d   : > { %v10242_v42 = vpop.f32.mrf.mxu1 }
 0x41e   : > { %7964 = vst [vmem:[%s12241_s23 + $0x180] sm:$0xff] %v7900_v25  ;;  %v7903_v16 = vmax.f32 %v7839_v53, 0.0  ;;  %v7838_v19 = vadd.f32 %v12229_v8, %v7639_v35  ;;  %v7642_v20 = vadd.f32 %v10242_v42, %v6984_v21  ;;  %v12786_v21 = vld [vmem:[#allocation50_spill] sm:$0xff] }
 0x41f   : > { %v7466_v43 = vpop.f32.mrf.mxu1  ;;  %v6994_v25 = vadd.f32 %v10129_v3, %v12786_v21 }
 0x420   : > { %7967 = vst [vmem:[%s12241_s23 + $0x198] sm:$0xff] %v7903_v16  ;;  %v7902_v4 = vmax.f32 %v7838_v19, 0.0  ;;  %v7841_v10 = vadd.f32 %v12229_v8, %v7642_v20  ;;  %v7641_v50 = vadd.f32 %v7466_v43, %v6983_v44  ;;  %v12787_v44 = vld [vmem:[#allocation51_spill] sm:$0xff] }
 0x421   : > { %v10245_v39 = vpop.f32.mrf.mxu1  ;;  %v6993_v16 = vadd.f32 %v6858_v56, %v12787_v44 }
 0x422   : > { %7966 = vst [vmem:[%s12241_s23 + $0x190] sm:$0xff] %v7902_v4  ;;  %v7905_v37 = vmax.f32 %v7841_v10, 0.0  ;;  %v7840_v40 = vadd.f32 %v12229_v8, %v7641_v50  ;;  %v7644_v54 = vadd.f32 %v10245_v39, %v6986_v9 }
 0x423   : > { %v7476_v38 = vpop.f32.mrf.mxu1 }
 0x424   : > { %7969 = vst [vmem:[%s12241_s23 + $0x1a8] sm:$0xff] %v7905_v37  ;;  %v7904_v34 = vmax.f32 %v7840_v40, 0.0  ;;  %v7843_v48 = vadd.f32 %v12229_v8, %v7644_v54  ;;  %v7643_v27 = vadd.f32 %v7476_v38, %v6985_v11 }
 0x425   : > { %v10248_v14 = vpop.f32.mrf.mxu1 }
 0x426   : > { %7968 = vst [vmem:[%s12241_s23 + $0x1a0] sm:$0xff] %v7904_v34  ;;  %v7907_v7 = vmax.f32 %v7843_v48, 0.0  ;;  %v7842_v58 = vadd.f32 %v12229_v8, %v7643_v27  ;;  %v7646_v41 = vadd.f32 %v10248_v14, %v6988_v26 }
 0x427   : > { %v7486_v30 = vpop.f32.mrf.mxu1 }
 0x428   : > { %7971 = vst [vmem:[%s12241_s23 + $0x1b8] sm:$0xff] %v7907_v7  ;;  %v7906_v32 = vmax.f32 %v7842_v58, 0.0  ;;  %v7845_v12 = vadd.f32 %v12229_v8, %v7646_v41  ;;  %v7645_v36 = vadd.f32 %v7486_v30, %v6987_v1 }
 0x429   : > { %v10251_v45 = vpop.f32.mrf.mxu1 }
 0x42a   : > { %7970 = vst [vmem:[%s12241_s23 + $0x1b0] sm:$0xff] %v7906_v32  ;;  %v7909_v24 = vmax.f32 %v7845_v12, 0.0  ;;  %v7844_v28 = vadd.f32 %v12229_v8, %v7645_v36  ;;  %v7648_v61 = vadd.f32 %v10251_v45, %v6990_v18 }
 0x42b   : > { %v7496_v59 = vpop.f32.mrf.mxu1 }
 0x42c   : > { %7973 = vst [vmem:[%s12241_s23 + $0x1c8] sm:$0xff] %v7909_v24  ;;  %v7908_v15 = vmax.f32 %v7844_v28, 0.0  ;;  %v7847_v17 = vadd.f32 %v12229_v8, %v7648_v61  ;;  %v7647_v63 = vadd.f32 %v7496_v59, %v6989_v47 }
 0x42d   : > { %v10254_v62 = vpop.f32.mrf.mxu1 }
 0x42e   : > { %7972 = vst [vmem:[%s12241_s23 + $0x1c0] sm:$0xff] %v7908_v15  ;;  %v7911_v0 = vmax.f32 %v7847_v17, 0.0  ;;  %v7846_v13 = vadd.f32 %v12229_v8, %v7647_v63  ;;  %v7650_v51 = vadd.f32 %v10254_v62, %v6992_v52 }
 0x42f   : > { %v7506_v5 = vpop.f32.mrf.mxu1 }
 0x430   : > { %7975 = vst [vmem:[%s12241_s23 + $0x1d8] sm:$0xff] %v7911_v0  ;;  %v7910_v53 = vmax.f32 %v7846_v13, 0.0  ;;  %v7849_v35 = vadd.f32 %v12229_v8, %v7650_v51  ;;  %v7649_v42 = vadd.f32 %v7506_v5, %v6991_v22 }
 0x431   : > { %v10257_v49 = vpop.f32.mrf.mxu1 }
 0x432   : > { %7974 = vst [vmem:[%s12241_s23 + $0x1d0] sm:$0xff] %v7910_v53  ;;  %v7913_v19 = vmax.f32 %v7849_v35, 0.0  ;;  %v7848_v20 = vadd.f32 %v12229_v8, %v7649_v42  ;;  %v7652_v2 = vadd.f32 %v10257_v49, %v6994_v25 }
 0x433   : > { %v7516_v43 = vpop.f32.mrf.mxu1 }
 0x434   : > { %7977 = vst [vmem:[%s12241_s23 + $0x1e8] sm:$0xff] %v7913_v19  ;;  %v7912_v9 = vmax.f32 %v7848_v20, 0.0  ;;  %v7851_v4 = vadd.f32 %v12229_v8, %v7652_v2  ;;  %v7651_v10 = vadd.f32 %v7516_v43, %v6993_v16 }
 0x436   : > { %7976 = vst [vmem:[%s12241_s23 + $0x1e0] sm:$0xff] %v7912_v9  ;;  %v7915_v50 = vmax.f32 %v7851_v4, 0.0  ;;  %v7850_v39 = vadd.f32 %v12229_v8, %v7651_v10 }
 0x438   : > { %7979 = vst [vmem:[%s12241_s23 + $0x1f8] sm:$0xff] %v7915_v50  ;;  %v7914_v55 = vmax.f32 %v7850_v39, 0.0 }
 0x43a   : > { %7978 = vst [vmem:[%s12241_s23 + $0x1f0] sm:$0xff] %v7914_v55 }
 0x43b PF: > { %s15_s18 = sadd.s32 1, %s10276_s18  }
 0x43c   : > { %p12_p4 = scmp.ge.s32.totalorder %s15_s18, 4  }
 0x43e   :  { %14 = sbr.rel (!%p12_p4) target bundleno = 1 (0x1), region = 78 }

</bundles_post_ra>
